<compile_context>
chip_gen: v7x
topology: tpu7x:2x2x1
jax: 0.10.0
libtpu: 0.0.40
codegen_flags: <defaults>
</compile_context>

<pallas_src>
from functools import partial

import jax
import jax.numpy as jnp
from jax import lax
from jax.experimental import pallas as pl
from jax.experimental.pallas import tpu as pltpu


# ---------------------------------------------------------------------------
# Fused kernel factory.
# ---------------------------------------------------------------------------
def _make_bilstm_kernel(num_layers, seq_len, batch_block, hidden_dim):
    T, Bb, H = seq_len, batch_block, hidden_dim

    def kernel(*refs):
        x_ref = refs[0]                                # (T*Bb, E)   time-major rows: t*Bb + b
        w_refs = refs[1:1 + 4 * num_layers]            # per layer: wih, whh_f, whh_b, bias
        out_ref = refs[1 + 4 * num_layers]             # (T*Bb, 2H)  [fwd | bwd] columns
        act0, act1, xg_ref = refs[2 + 4 * num_layers:]
        acts = (act0, act1)                            # ping-pong layer activations

        for layer in range(num_layers):
            wih_ref = w_refs[4 * layer + 0]            # (Din, 8H) cols [fwd ifog | bwd ifog]
            whhf_ref = w_refs[4 * layer + 1]           # (H, 4H)   cols [i f o g]
            whhb_ref = w_refs[4 * layer + 2]           # (H, 4H)
            b_ref = w_refs[4 * layer + 3]              # (1, 8H)

            # ---- input projection: both directions, all timesteps, one MXU
            #      matmul, staged in VMEM scratch -------------------------------
            src = x_ref[...] if layer == 0 else acts[(layer - 1) % 2][...]
            xg_ref[...] = (jnp.dot(src, wih_ref[...],
                                   preferred_element_type=jnp.float32)
                           + b_ref[...])

            dst = out_ref if layer == num_layers - 1 else acts[layer % 2]

            # Hoist the (small) recurrent weights out of the timestep loop.
            whh_f = whhf_ref[...]
            whh_b = whhb_ref[...]

            # ---- recurrence: fwd (time s) and bwd (time T-1-s) as two
            #      independent dense chains, fully unrolled (T static) ---------
            h_f = jnp.zeros((Bb, H), jnp.float32)
            c_f = jnp.zeros((Bb, H), jnp.float32)
            h_b = jnp.zeros((Bb, H), jnp.float32)
            c_b = jnp.zeros((Bb, H), jnp.float32)

            for s in range(T):
                r = T - 1 - s
                gx_f = xg_ref[pl.ds(s * Bb, Bb), pl.ds(0, 4 * H)]        # (Bb, 4H)
                gx_b = xg_ref[pl.ds(r * Bb, Bb), pl.ds(4 * H, 4 * H)]    # (Bb, 4H)

                g_f = gx_f + jnp.dot(h_f, whh_f, preferred_element_type=jnp.float32)
                g_b = gx_b + jnp.dot(h_b, whh_b, preferred_element_type=jnp.float32)

                # Gate layout per direction: [i | f | o | g] -> one sigmoid
                # over 3H contiguous lanes, one tanh over H lanes.
                s_f = jax.nn.sigmoid(g_f[:, 0:3 * H])
                s_b = jax.nn.sigmoid(g_b[:, 0:3 * H])
                t_f = jnp.tanh(g_f[:, 3 * H:4 * H])
                t_b = jnp.tanh(g_b[:, 3 * H:4 * H])

                c_f = s_f[:, H:2 * H] * c_f + s_f[:, 0:H] * t_f
                c_b = s_b[:, H:2 * H] * c_b + s_b[:, 0:H] * t_b
                h_f = s_f[:, 2 * H:3 * H] * jnp.tanh(c_f)
                h_b = s_b[:, 2 * H:3 * H] * jnp.tanh(c_b)

                # fwd output at time s, bwd output at time r, into the two
                # column halves of the (T*Bb, 2H) destination.
                dst[pl.ds(s * Bb, Bb), pl.ds(0, H)] = h_f
                dst[pl.ds(r * Bb, Bb), pl.ds(H, H)] = h_b

    return kernel


# ---------------------------------------------------------------------------
# Parameter init (PyTorch layout) and one-time packing into the kernel layout.
# ---------------------------------------------------------------------------
def init_bilstm_params(key, embedding_dim, hidden_dim, num_layers):
    """Deterministic init matching PyTorch LSTM parameter shapes
    (uniform(-1/sqrt(H), 1/sqrt(H)))."""
    params = []
    stdv = 1.0 / jnp.sqrt(jnp.float32(hidden_dim))
    for layer in range(num_layers):
        din = embedding_dim if layer == 0 else 2 * hidden_dim
        layer_p = {}
        for direction in ("fwd", "bwd"):
            key, k1, k2, k3, k4 = jax.random.split(key, 5)
            layer_p[direction] = {
                "w_ih": jax.random.uniform(
                    k1, (4 * hidden_dim, din), jnp.float32, -stdv, stdv),
                "w_hh": jax.random.uniform(
                    k2, (4 * hidden_dim, hidden_dim), jnp.float32, -stdv, stdv),
                "b_ih": jax.random.uniform(
                    k3, (4 * hidden_dim,), jnp.float32, -stdv, stdv),
                "b_hh": jax.random.uniform(
                    k4, (4 * hidden_dim,), jnp.float32, -stdv, stdv),
            }
        params.append(layer_p)
    return params


def pack_bilstm_params(params, hidden_dim):
    """Pre-transpose / fuse the PyTorch-layout LSTM weights once.

    Per layer produces (gate order reordered from PyTorch [i f g o] to
    [i f o g] so the sigmoid gates are contiguous):
      wih   : (Din, 8H)  columns [fwd: i f o g | bwd: i f o g]
      whh_f : (H, 4H)    forward recurrent weight, columns [i f o g]
      whh_b : (H, 4H)    backward recurrent weight, columns [i f o g]
      bias  : (1, 8H)    b_ih + b_hh, same column layout as wih
    """
    H = hidden_dim
    order = (0, 1, 3, 2)   # [i f o g] out of PyTorch's [i f g o]
    packed = []
    for layer_p in params:
        pf, pb = layer_p["fwd"], layer_p["bwd"]

        def gate_t(w):      # (4H, Din) -> list of (Din, H) blocks in [i f o g]
            return [w[k * H:(k + 1) * H, :].T for k in order]

        def gate_b(p):      # fused bias blocks in [i f o g]
            b = p["b_ih"] + p["b_hh"]
            return [b[k * H:(k + 1) * H] for k in order]

        wih = jnp.concatenate(gate_t(pf["w_ih"]) + gate_t(pb["w_ih"]), axis=1)
        whh_f = jnp.concatenate(gate_t(pf["w_hh"]), axis=1)
        whh_b = jnp.concatenate(gate_t(pb["w_hh"]), axis=1)
        bias = jnp.concatenate(gate_b(pf) + gate_b(pb)).reshape(1, 8 * H)

        packed.extend([wih, whh_f, whh_b, bias])
    return tuple(packed)


# ---------------------------------------------------------------------------
# Forward pass (single pallas_call; grid over batch chunks).
# ---------------------------------------------------------------------------
@partial(jax.jit, static_argnames=("batch_block",))
def bilstm_forward_batched(x, packed_params, batch_block=None):
    """x: (B, seq_len, embedding_dim) -> (B, seq_len, 2*hidden_dim)."""
    x = x.astype(jnp.float32)
    B, T, E = x.shape
    num_layers = len(packed_params) // 4
    H = packed_params[1].shape[0]           # whh_f is (H, 4H)

    Bb = B if batch_block is None else batch_block
    assert B % Bb == 0, "batch must be divisible by batch_block"
    G = B // Bb
    R = T * Bb
    # (8, 128) BlockSpec rule: second-to-last block dim must be a multiple of 8
    # (or the full dim, which holds automatically when G == 1).
    assert G == 1 or R % 8 == 0, \
        "seq_len * batch_block must be a multiple of 8 when using a batch grid"

    # Time-major flatten per batch chunk: row index = chunk*R + t*Bb + b_local.
    x_k = x.reshape(G, Bb, T, E).transpose(0, 2, 1, 3).reshape(G * R, E)

    kernel = _make_bilstm_kernel(num_layers, T, Bb, H)
    weight_specs = [pl.BlockSpec(w.shape, lambda g: (0, 0)) for w in packed_params]

    out_flat = pl.pallas_call(
        kernel,
        out_shape=jax.ShapeDtypeStruct((G * R, 2 * H), jnp.float32),
        grid=(G,),
        in_specs=[pl.BlockSpec((R, E), lambda g: (g, 0))] + weight_specs,
        out_specs=pl.BlockSpec((R, 2 * H), lambda g: (g, 0)),
        scratch_shapes=[
            pltpu.VMEM((R, 2 * H), jnp.float32),     # layer activations (ping)
            pltpu.VMEM((R, 2 * H), jnp.float32),     # layer activations (pong)
            pltpu.VMEM((R, 8 * H), jnp.float32),     # staged input projection xg
        ],
        compiler_params=pltpu.CompilerParams(
            dimension_semantics=("parallel",)),      # shards batch chunks across TCs (v7x)
    )(x_k, *packed_params)

    out = (out_flat.reshape(G, T, Bb, 2 * H)
           .transpose(0, 2, 1, 3)
           .reshape(B, T, 2 * H))
    return out


def bilstm_forward(sentence, packed_params):
    """Original module semantics: one sentence (seq_len, E) -> (seq_len, 2H)."""
    return bilstm_forward_batched(sentence[None], packed_params, batch_block=1)[0]


# ---------------------------------------------------------------------------
# Pure-JAX reference (same math, no Pallas) for a correctness check.
# ---------------------------------------------------------------------------
def _ref_direction(x, p):
    H = p["w_hh"].shape[1]
    wih_t = p["w_ih"].T
    whh_t = p["w_hh"].T
    b = p["b_ih"] + p["b_hh"]

    def step(carry, xt):
        h, c = carry
        g = xt @ wih_t + h @ whh_t + b
        i = jax.nn.sigmoid(g[0 * H:1 * H])
        f = jax.nn.sigmoid(g[1 * H:2 * H])
        gg = jnp.tanh(g[2 * H:3 * H])
        o = jax.nn.sigmoid(g[3 * H:4 * H])
        c = f * c + i * gg
        h = o * jnp.tanh(c)
        return (h, c), h

    h0 = jnp.zeros((H,), jnp.float32)
    _, hs = lax.scan(step, (h0, h0), x)
    return hs


def bilstm_reference(sentence, params, num_layers):
    h = sentence.astype(jnp.float32)
    for layer in range(num_layers):
        out_f = _ref_direction(h, params[layer]["fwd"])
        out_b = jnp.flip(_ref_direction(jnp.flip(h, 0), params[layer]["bwd"]), 0)
        h = jnp.concatenate([out_f, out_b], axis=-1)
    return h


if __name__ == "__main__":
    embedding_dim = 16
    hidden_dim = 32
    num_layers = 2
    seq_len = 8
    batch = 8          # sentences batched into the MXU M dimension

    key = jax.random.PRNGKey(0)
    key_x, key_p = jax.random.split(key)
    # Batch of "sentences": each is seq_len word-embedding vectors.
    sentences = jax.random.normal(
        key_x, (batch, seq_len, embedding_dim), jnp.float32)
    params = init_bilstm_params(key_p, embedding_dim, hidden_dim, num_layers)
    packed = pack_bilstm_params(params, hidden_dim)   # one-time weight packing

    # Batched path: 2 grid points of 4 sentences each (parallel across TCs on v7x).
    out_batched = bilstm_forward_batched(sentences, packed, batch_block=4)
    out_batched = jax.block_until_ready(out_batched)
    assert out_batched.shape == (batch, seq_len, 2 * hidden_dim), out_batched.shape

    # Single-sentence path keeps the original nn.Module forward semantics.
    out_single = jax.block_until_ready(bilstm_forward(sentences[0], packed))
    assert out_single.shape == (seq_len, 2 * hidden_dim), out_single.shape

    # Correctness vs. pure-JAX reference.
    ref_all = jnp.stack(
        [bilstm_reference(sentences[i], params, num_layers) for i in range(batch)])
    max_err = float(jnp.max(jnp.abs(out_batched - ref_all)))
    assert jnp.allclose(out_batched, ref_all, rtol=1e-4, atol=1e-4), (
        f"Pallas BiLSTM (batched) mismatch vs reference: max abs err = {max_err}")
    assert jnp.allclose(out_single, ref_all[0], rtol=1e-4, atol=1e-4), (
        "Pallas BiLSTM (single) mismatch vs reference")

    print("KERNEL_OK")
</pallas_src>

<mosaic_0001>
module attributes {stable_mosaic.version = 11 : i64} {
  func.func @kernel(%arg0: i32, %arg1: memref<32x16xf32, #tpu.memory_space<vmem>>, %arg2: memref<16x256xf32, #tpu.memory_space<vmem>>, %arg3: memref<32x128xf32, #tpu.memory_space<vmem>>, %arg4: memref<32x128xf32, #tpu.memory_space<vmem>>, %arg5: memref<1x256xf32, #tpu.memory_space<vmem>>, %arg6: memref<64x256xf32, #tpu.memory_space<vmem>>, %arg7: memref<32x128xf32, #tpu.memory_space<vmem>>, %arg8: memref<32x128xf32, #tpu.memory_space<vmem>>, %arg9: memref<1x256xf32, #tpu.memory_space<vmem>>, %arg10: memref<32x64xf32, #tpu.memory_space<vmem>>, %arg11: memref<32x64xf32, #tpu.memory_space<vmem>>, %arg12: memref<32x64xf32, #tpu.memory_space<vmem>>, %arg13: memref<32x256xf32, #tpu.memory_space<vmem>>) attributes {dimension_semantics = [#tpu.dimension_semantics<parallel>], iteration_bounds = array<i64: 2>, scalar_prefetch = 0 : i64, scratch_operands = 3 : i64, tpu.core_type = #tpu.core_type<tc>, window_params = [{transform_indices = @transform_0, window_bounds = array<i64: 32, 16>}, {pipeline_mode = #tpu.pipeline_mode<synchronous>, transform_indices = @transform_1, window_bounds = array<i64: 16, 256>}, {pipeline_mode = #tpu.pipeline_mode<synchronous>, transform_indices = @transform_2, window_bounds = array<i64: 32, 128>}, {pipeline_mode = #tpu.pipeline_mode<synchronous>, transform_indices = @transform_3, window_bounds = array<i64: 32, 128>}, {pipeline_mode = #tpu.pipeline_mode<synchronous>, transform_indices = @transform_4, window_bounds = array<i64: 1, 256>}, {pipeline_mode = #tpu.pipeline_mode<synchronous>, transform_indices = @transform_5, window_bounds = array<i64: 64, 256>}, {pipeline_mode = #tpu.pipeline_mode<synchronous>, transform_indices = @transform_6, window_bounds = array<i64: 32, 128>}, {pipeline_mode = #tpu.pipeline_mode<synchronous>, transform_indices = @transform_7, window_bounds = array<i64: 32, 128>}, {pipeline_mode = #tpu.pipeline_mode<synchronous>, transform_indices = @transform_8, window_bounds = array<i64: 1, 256>}, {transform_indices = @transform_9, window_bounds = array<i64: 32, 64>}]} {
    %c0 = arith.constant 0 : index
    %c0_0 = arith.constant 0 : index
    %0 = vector.load %arg1[%c0, %c0_0] : memref<32x16xf32, #tpu.memory_space<vmem>>, vector<32x16xf32>
    %c0_1 = arith.constant 0 : index
    %c0_2 = arith.constant 0 : index
    %1 = vector.load %arg2[%c0_1, %c0_2] : memref<16x256xf32, #tpu.memory_space<vmem>>, vector<16x256xf32>
    %cst = arith.constant dense<0.000000e+00> : vector<32x256xf32>
    %2 = tpu.matmul %0, %1, %cst {dimension_numbers = #tpu.dot_dimension_numbers<[1], [0], [0], [1], [0, 0, 1, 1], [], []>} : vector<32x16xf32>, vector<16x256xf32>, vector<32x256xf32> -> vector<32x256xf32>
    %c0_3 = arith.constant 0 : index
    %c0_4 = arith.constant 0 : index
    %3 = vector.load %arg5[%c0_3, %c0_4] : memref<1x256xf32, #tpu.memory_space<vmem>>, vector<1x256xf32>
    %4 = vector.broadcast %3 : vector<1x256xf32> to vector<32x256xf32>
    %5 = arith.addf %2, %4 : vector<32x256xf32>
    %c0_5 = arith.constant 0 : index
    %c0_6 = arith.constant 0 : index
    %6 = vector.load %arg13[%c0_5, %c0_6] : memref<32x256xf32, #tpu.memory_space<vmem>>, vector<32x256xf32>
    tpu.vector_store %arg13[%c0_5, %c0_6], %5 {strides = array<i32>} : memref<32x256xf32, #tpu.memory_space<vmem>>, vector<32x256xf32>,
    %c0_7 = arith.constant 0 : index
    %c0_8 = arith.constant 0 : index
    %7 = vector.load %arg3[%c0_7, %c0_8] : memref<32x128xf32, #tpu.memory_space<vmem>>, vector<32x128xf32>
    %c0_9 = arith.constant 0 : index
    %c0_10 = arith.constant 0 : index
    %8 = vector.load %arg4[%c0_9, %c0_10] : memref<32x128xf32, #tpu.memory_space<vmem>>, vector<32x128xf32>
    %cst_11 = arith.constant 0.000000e+00 : f32
    %9 = vector.broadcast %cst_11 : f32 to vector<4x32xf32>
    %cst_12 = arith.constant 0.000000e+00 : f32
    %10 = vector.broadcast %cst_12 : f32 to vector<4x32xf32>
    %cst_13 = arith.constant 0.000000e+00 : f32
    %11 = vector.broadcast %cst_13 : f32 to vector<4x32xf32>
    %cst_14 = arith.constant 0.000000e+00 : f32
    %12 = vector.broadcast %cst_14 : f32 to vector<4x32xf32>
    %c0_15 = arith.constant 0 : index
    %c0_16 = arith.constant 0 : index
    %13 = vector.load %arg13[%c0_15, %c0_16] : memref<32x256xf32, #tpu.memory_space<vmem>>, vector<4x128xf32>
    %c28 = arith.constant 28 : index
    %c128 = arith.constant 128 : index
    %14 = vector.load %arg13[%c28, %c128] : memref<32x256xf32, #tpu.memory_space<vmem>>, vector<4x128xf32>
    %cst_17 = arith.constant dense<0.000000e+00> : vector<4x128xf32>
    %15 = tpu.matmul %9, %7, %cst_17 {dimension_numbers = #tpu.dot_dimension_numbers<[1], [0], [0], [1], [0, 0, 1, 1], [], []>} : vector<4x32xf32>, vector<32x128xf32>, vector<4x128xf32> -> vector<4x128xf32>
    %16 = arith.addf %13, %15 : vector<4x128xf32>
    %cst_18 = arith.constant dense<0.000000e+00> : vector<4x128xf32>
    %17 = tpu.matmul %11, %8, %cst_18 {dimension_numbers = #tpu.dot_dimension_numbers<[1], [0], [0], [1], [0, 0, 1, 1], [], []>} : vector<4x32xf32>, vector<32x128xf32>, vector<4x128xf32> -> vector<4x128xf32>
    %18 = arith.addf %14, %17 : vector<4x128xf32>
    %19 = vector.extract_strided_slice %16 {offsets = [0, 0], sizes = [4, 96], strides = [1, 1]} : vector<4x128xf32> to vector<4x96xf32>
    %20 = arith.negf %19 : vector<4x96xf32>
    %21 = math.exp %20 : vector<4x96xf32>
    %cst_19 = arith.constant 1.000000e+00 : f32
    %22 = vector.broadcast %cst_19 : f32 to vector<4x96xf32>
    %23 = arith.addf %22, %21 : vector<4x96xf32>
    %24 = arith.divf %22, %23 : vector<4x96xf32>
    %25 = vector.extract_strided_slice %18 {offsets = [0, 0], sizes = [4, 96], strides = [1, 1]} : vector<4x128xf32> to vector<4x96xf32>
    %26 = arith.negf %25 : vector<4x96xf32>
    %27 = math.exp %26 : vector<4x96xf32>
    %cst_20 = arith.constant 1.000000e+00 : f32
    %28 = vector.broadcast %cst_20 : f32 to vector<4x96xf32>
    %29 = arith.addf %28, %27 : vector<4x96xf32>
    %30 = arith.divf %28, %29 : vector<4x96xf32>
    %31 = vector.extract_strided_slice %16 {offsets = [0, 96], sizes = [4, 32], strides = [1, 1]} : vector<4x128xf32> to vector<4x32xf32>
    %32 = math.tanh %31 : vector<4x32xf32>
    %33 = vector.extract_strided_slice %18 {offsets = [0, 96], sizes = [4, 32], strides = [1, 1]} : vector<4x128xf32> to vector<4x32xf32>
    %34 = math.tanh %33 : vector<4x32xf32>
    %35 = vector.extract_strided_slice %24 {offsets = [0, 32], sizes = [4, 32], strides = [1, 1]} : vector<4x96xf32> to vector<4x32xf32>
    %36 = arith.mulf %35, %10 : vector<4x32xf32>
    %37 = vector.extract_strided_slice %24 {offsets = [0, 0], sizes = [4, 32], strides = [1, 1]} : vector<4x96xf32> to vector<4x32xf32>
    %38 = arith.mulf %37, %32 : vector<4x32xf32>
    %39 = arith.addf %36, %38 : vector<4x32xf32>
    %40 = vector.extract_strided_slice %30 {offsets = [0, 32], sizes = [4, 32], strides = [1, 1]} : vector<4x96xf32> to vector<4x32xf32>
    %41 = arith.mulf %40, %12 : vector<4x32xf32>
    %42 = vector.extract_strided_slice %30 {offsets = [0, 0], sizes = [4, 32], strides = [1, 1]} : vector<4x96xf32> to vector<4x32xf32>
    %43 = arith.mulf %42, %34 : vector<4x32xf32>
    %44 = arith.addf %41, %43 : vector<4x32xf32>
    %45 = vector.extract_strided_slice %24 {offsets = [0, 64], sizes = [4, 32], strides = [1, 1]} : vector<4x96xf32> to vector<4x32xf32>
    %46 = math.tanh %39 : vector<4x32xf32>
    %47 = arith.mulf %45, %46 : vector<4x32xf32>
    %48 = vector.extract_strided_slice %30 {offsets = [0, 64], sizes = [4, 32], strides = [1, 1]} : vector<4x96xf32> to vector<4x32xf32>
    %49 = math.tanh %44 : vector<4x32xf32>
    %50 = arith.mulf %48, %49 : vector<4x32xf32>
    %c0_21 = arith.constant 0 : index
    %c0_22 = arith.constant 0 : index
    %51 = vector.load %arg11[%c0_21, %c0_22] : memref<32x64xf32, #tpu.memory_space<vmem>>, vector<4x32xf32>
    tpu.vector_store %arg11[%c0_21, %c0_22], %47 {strides = array<i32>} : memref<32x64xf32, #tpu.memory_space<vmem>>, vector<4x32xf32>,
    %c28_23 = arith.constant 28 : index
    %c32 = arith.constant 32 : index
    %52 = vector.load %arg11[%c28_23, %c32] : memref<32x64xf32, #tpu.memory_space<vmem>>, vector<4x32xf32>
    tpu.vector_store %arg11[%c28_23, %c32], %50 {strides = array<i32>} : memref<32x64xf32, #tpu.memory_space<vmem>>, vector<4x32xf32>,
    %c4 = arith.constant 4 : index
    %c0_24 = arith.constant 0 : index
    %53 = vector.load %arg13[%c4, %c0_24] : memref<32x256xf32, #tpu.memory_space<vmem>>, vector<4x128xf32>
    %c24 = arith.constant 24 : index
    %c128_25 = arith.constant 128 : index
    %54 = vector.load %arg13[%c24, %c128_25] : memref<32x256xf32, #tpu.memory_space<vmem>>, vector<4x128xf32>
    %cst_26 = arith.constant dense<0.000000e+00> : vector<4x128xf32>
    %55 = tpu.matmul %47, %7, %cst_26 {dimension_numbers = #tpu.dot_dimension_numbers<[1], [0], [0], [1], [0, 0, 1, 1], [], []>} : vector<4x32xf32>, vector<32x128xf32>, vector<4x128xf32> -> vector<4x128xf32>
    %56 = arith.addf %53, %55 : vector<4x128xf32>
    %cst_27 = arith.constant dense<0.000000e+00> : vector<4x128xf32>
    %57 = tpu.matmul %50, %8, %cst_27 {dimension_numbers = #tpu.dot_dimension_numbers<[1], [0], [0], [1], [0, 0, 1, 1], [], []>} : vector<4x32xf32>, vector<32x128xf32>, vector<4x128xf32> -> vector<4x128xf32>
    %58 = arith.addf %54, %57 : vector<4x128xf32>
    %59 = vector.extract_strided_slice %56 {offsets = [0, 0], sizes = [4, 96], strides = [1, 1]} : vector<4x128xf32> to vector<4x96xf32>
    %60 = arith.negf %59 : vector<4x96xf32>
    %61 = math.exp %60 : vector<4x96xf32>
    %cst_28 = arith.constant 1.000000e+00 : f32
    %62 = vector.broadcast %cst_28 : f32 to vector<4x96xf32>
    %63 = arith.addf %62, %61 : vector<4x96xf32>
    %64 = arith.divf %62, %63 : vector<4x96xf32>
    %65 = vector.extract_strided_slice %58 {offsets = [0, 0], sizes = [4, 96], strides = [1, 1]} : vector<4x128xf32> to vector<4x96xf32>
    %66 = arith.negf %65 : vector<4x96xf32>
    %67 = math.exp %66 : vector<4x96xf32>
    %cst_29 = arith.constant 1.000000e+00 : f32
    %68 = vector.broadcast %cst_29 : f32 to vector<4x96xf32>
    %69 = arith.addf %68, %67 : vector<4x96xf32>
    %70 = arith.divf %68, %69 : vector<4x96xf32>
    %71 = vector.extract_strided_slice %56 {offsets = [0, 96], sizes = [4, 32], strides = [1, 1]} : vector<4x128xf32> to vector<4x32xf32>
    %72 = math.tanh %71 : vector<4x32xf32>
    %73 = vector.extract_strided_slice %58 {offsets = [0, 96], sizes = [4, 32], strides = [1, 1]} : vector<4x128xf32> to vector<4x32xf32>
    %74 = math.tanh %73 : vector<4x32xf32>
    %75 = vector.extract_strided_slice %64 {offsets = [0, 32], sizes = [4, 32], strides = [1, 1]} : vector<4x96xf32> to vector<4x32xf32>
    %76 = arith.mulf %75, %39 : vector<4x32xf32>
    %77 = vector.extract_strided_slice %64 {offsets = [0, 0], sizes = [4, 32], strides = [1, 1]} : vector<4x96xf32> to vector<4x32xf32>
    %78 = arith.mulf %77, %72 : vector<4x32xf32>
    %79 = arith.addf %76, %78 : vector<4x32xf32>
    %80 = vector.extract_strided_slice %70 {offsets = [0, 32], sizes = [4, 32], strides = [1, 1]} : vector<4x96xf32> to vector<4x32xf32>
    %81 = arith.mulf %80, %44 : vector<4x32xf32>
    %82 = vector.extract_strided_slice %70 {offsets = [0, 0], sizes = [4, 32], strides = [1, 1]} : vector<4x96xf32> to vector<4x32xf32>
    %83 = arith.mulf %82, %74 : vector<4x32xf32>
    %84 = arith.addf %81, %83 : vector<4x32xf32>
    %85 = vector.extract_strided_slice %64 {offsets = [0, 64], sizes = [4, 32], strides = [1, 1]} : vector<4x96xf32> to vector<4x32xf32>
    %86 = math.tanh %79 : vector<4x32xf32>
    %87 = arith.mulf %85, %86 : vector<4x32xf32>
    %88 = vector.extract_strided_slice %70 {offsets = [0, 64], sizes = [4, 32], strides = [1, 1]} : vector<4x96xf32> to vector<4x32xf32>
    %89 = math.tanh %84 : vector<4x32xf32>
    %90 = arith.mulf %88, %89 : vector<4x32xf32>
    %c4_30 = arith.constant 4 : index
    %c0_31 = arith.constant 0 : index
    %91 = vector.load %arg11[%c4_30, %c0_31] : memref<32x64xf32, #tpu.memory_space<vmem>>, vector<4x32xf32>
    tpu.vector_store %arg11[%c4_30, %c0_31], %87 {strides = array<i32>} : memref<32x64xf32, #tpu.memory_space<vmem>>, vector<4x32xf32>,
    %c24_32 = arith.constant 24 : index
    %c32_33 = arith.constant 32 : index
    %92 = vector.load %arg11[%c24_32, %c32_33] : memref<32x64xf32, #tpu.memory_space<vmem>>, vector<4x32xf32>
    tpu.vector_store %arg11[%c24_32, %c32_33], %90 {strides = array<i32>} : memref<32x64xf32, #tpu.memory_space<vmem>>, vector<4x32xf32>,
    %c8 = arith.constant 8 : index
    %c0_34 = arith.constant 0 : index
    %93 = vector.load %arg13[%c8, %c0_34] : memref<32x256xf32, #tpu.memory_space<vmem>>, vector<4x128xf32>
    %c20 = arith.constant 20 : index
    %c128_35 = arith.constant 128 : index
    %94 = vector.load %arg13[%c20, %c128_35] : memref<32x256xf32, #tpu.memory_space<vmem>>, vector<4x128xf32>
    %cst_36 = arith.constant dense<0.000000e+00> : vector<4x128xf32>
    %95 = tpu.matmul %87, %7, %cst_36 {dimension_numbers = #tpu.dot_dimension_numbers<[1], [0], [0], [1], [0, 0, 1, 1], [], []>} : vector<4x32xf32>, vector<32x128xf32>, vector<4x128xf32> -> vector<4x128xf32>
    %96 = arith.addf %93, %95 : vector<4x128xf32>
    %cst_37 = arith.constant dense<0.000000e+00> : vector<4x128xf32>
    %97 = tpu.matmul %90, %8, %cst_37 {dimension_numbers = #tpu.dot_dimension_numbers<[1], [0], [0], [1], [0, 0, 1, 1], [], []>} : vector<4x32xf32>, vector<32x128xf32>, vector<4x128xf32> -> vector<4x128xf32>
    %98 = arith.addf %94, %97 : vector<4x128xf32>
    %99 = vector.extract_strided_slice %96 {offsets = [0, 0], sizes = [4, 96], strides = [1, 1]} : vector<4x128xf32> to vector<4x96xf32>
    %100 = arith.negf %99 : vector<4x96xf32>
    %101 = math.exp %100 : vector<4x96xf32>
    %cst_38 = arith.constant 1.000000e+00 : f32
    %102 = vector.broadcast %cst_38 : f32 to vector<4x96xf32>
    %103 = arith.addf %102, %101 : vector<4x96xf32>
    %104 = arith.divf %102, %103 : vector<4x96xf32>
    %105 = vector.extract_strided_slice %98 {offsets = [0, 0], sizes = [4, 96], strides = [1, 1]} : vector<4x128xf32> to vector<4x96xf32>
    %106 = arith.negf %105 : vector<4x96xf32>
    %107 = math.exp %106 : vector<4x96xf32>
    %cst_39 = arith.constant 1.000000e+00 : f32
    %108 = vector.broadcast %cst_39 : f32 to vector<4x96xf32>
    %109 = arith.addf %108, %107 : vector<4x96xf32>
    %110 = arith.divf %108, %109 : vector<4x96xf32>
    %111 = vector.extract_strided_slice %96 {offsets = [0, 96], sizes = [4, 32], strides = [1, 1]} : vector<4x128xf32> to vector<4x32xf32>
    %112 = math.tanh %111 : vector<4x32xf32>
    %113 = vector.extract_strided_slice %98 {offsets = [0, 96], sizes = [4, 32], strides = [1, 1]} : vector<4x128xf32> to vector<4x32xf32>
    %114 = math.tanh %113 : vector<4x32xf32>
    %115 = vector.extract_strided_slice %104 {offsets = [0, 32], sizes = [4, 32], strides = [1, 1]} : vector<4x96xf32> to vector<4x32xf32>
    %116 = arith.mulf %115, %79 : vector<4x32xf32>
    %117 = vector.extract_strided_slice %104 {offsets = [0, 0], sizes = [4, 32], strides = [1, 1]} : vector<4x96xf32> to vector<4x32xf32>
    %118 = arith.mulf %117, %112 : vector<4x32xf32>
    %119 = arith.addf %116, %118 : vector<4x32xf32>
    %120 = vector.extract_strided_slice %110 {offsets = [0, 32], sizes = [4, 32], strides = [1, 1]} : vector<4x96xf32> to vector<4x32xf32>
    %121 = arith.mulf %120, %84 : vector<4x32xf32>
    %122 = vector.extract_strided_slice %110 {offsets = [0, 0], sizes = [4, 32], strides = [1, 1]} : vector<4x96xf32> to vector<4x32xf32>
    %123 = arith.mulf %122, %114 : vector<4x32xf32>
    %124 = arith.addf %121, %123 : vector<4x32xf32>
    %125 = vector.extract_strided_slice %104 {offsets = [0, 64], sizes = [4, 32], strides = [1, 1]} : vector<4x96xf32> to vector<4x32xf32>
    %126 = math.tanh %119 : vector<4x32xf32>
    %127 = arith.mulf %125, %126 : vector<4x32xf32>
    %128 = vector.extract_strided_slice %110 {offsets = [0, 64], sizes = [4, 32], strides = [1, 1]} : vector<4x96xf32> to vector<4x32xf32>
    %129 = math.tanh %124 : vector<4x32xf32>
    %130 = arith.mulf %128, %129 : vector<4x32xf32>
    %c8_40 = arith.constant 8 : index
    %c0_41 = arith.constant 0 : index
    %131 = vector.load %arg11[%c8_40, %c0_41] : memref<32x64xf32, #tpu.memory_space<vmem>>, vector<4x32xf32>
    tpu.vector_store %arg11[%c8_40, %c0_41], %127 {strides = array<i32>} : memref<32x64xf32, #tpu.memory_space<vmem>>, vector<4x32xf32>,
    %c20_42 = arith.constant 20 : index
    %c32_43 = arith.constant 32 : index
    %132 = vector.load %arg11[%c20_42, %c32_43] : memref<32x64xf32, #tpu.memory_space<vmem>>, vector<4x32xf32>
    tpu.vector_store %arg11[%c20_42, %c32_43], %130 {strides = array<i32>} : memref<32x64xf32, #tpu.memory_space<vmem>>, vector<4x32xf32>,
    %c12 = arith.constant 12 : index
    %c0_44 = arith.constant 0 : index
    %133 = vector.load %arg13[%c12, %c0_44] : memref<32x256xf32, #tpu.memory_space<vmem>>, vector<4x128xf32>
    %c16 = arith.constant 16 : index
    %c128_45 = arith.constant 128 : index
    %134 = vector.load %arg13[%c16, %c128_45] : memref<32x256xf32, #tpu.memory_space<vmem>>, vector<4x128xf32>
    %cst_46 = arith.constant dense<0.000000e+00> : vector<4x128xf32>
    %135 = tpu.matmul %127, %7, %cst_46 {dimension_numbers = #tpu.dot_dimension_numbers<[1], [0], [0], [1], [0, 0, 1, 1], [], []>} : vector<4x32xf32>, vector<32x128xf32>, vector<4x128xf32> -> vector<4x128xf32>
    %136 = arith.addf %133, %135 : vector<4x128xf32>
    %cst_47 = arith.constant dense<0.000000e+00> : vector<4x128xf32>
    %137 = tpu.matmul %130, %8, %cst_47 {dimension_numbers = #tpu.dot_dimension_numbers<[1], [0], [0], [1], [0, 0, 1, 1], [], []>} : vector<4x32xf32>, vector<32x128xf32>, vector<4x128xf32> -> vector<4x128xf32>
    %138 = arith.addf %134, %137 : vector<4x128xf32>
    %139 = vector.extract_strided_slice %136 {offsets = [0, 0], sizes = [4, 96], strides = [1, 1]} : vector<4x128xf32> to vector<4x96xf32>
    %140 = arith.negf %139 : vector<4x96xf32>
    %141 = math.exp %140 : vector<4x96xf32>
    %cst_48 = arith.constant 1.000000e+00 : f32
    %142 = vector.broadcast %cst_48 : f32 to vector<4x96xf32>
    %143 = arith.addf %142, %141 : vector<4x96xf32>
    %144 = arith.divf %142, %143 : vector<4x96xf32>
    %145 = vector.extract_strided_slice %138 {offsets = [0, 0], sizes = [4, 96], strides = [1, 1]} : vector<4x128xf32> to vector<4x96xf32>
    %146 = arith.negf %145 : vector<4x96xf32>
    %147 = math.exp %146 : vector<4x96xf32>
    %cst_49 = arith.constant 1.000000e+00 : f32
    %148 = vector.broadcast %cst_49 : f32 to vector<4x96xf32>
    %149 = arith.addf %148, %147 : vector<4x96xf32>
    %150 = arith.divf %148, %149 : vector<4x96xf32>
    %151 = vector.extract_strided_slice %136 {offsets = [0, 96], sizes = [4, 32], strides = [1, 1]} : vector<4x128xf32> to vector<4x32xf32>
    %152 = math.tanh %151 : vector<4x32xf32>
    %153 = vector.extract_strided_slice %138 {offsets = [0, 96], sizes = [4, 32], strides = [1, 1]} : vector<4x128xf32> to vector<4x32xf32>
    %154 = math.tanh %153 : vector<4x32xf32>
    %155 = vector.extract_strided_slice %144 {offsets = [0, 32], sizes = [4, 32], strides = [1, 1]} : vector<4x96xf32> to vector<4x32xf32>
    %156 = arith.mulf %155, %119 : vector<4x32xf32>
    %157 = vector.extract_strided_slice %144 {offsets = [0, 0], sizes = [4, 32], strides = [1, 1]} : vector<4x96xf32> to vector<4x32xf32>
    %158 = arith.mulf %157, %152 : vector<4x32xf32>
    %159 = arith.addf %156, %158 : vector<4x32xf32>
    %160 = vector.extract_strided_slice %150 {offsets = [0, 32], sizes = [4, 32], strides = [1, 1]} : vector<4x96xf32> to vector<4x32xf32>
    %161 = arith.mulf %160, %124 : vector<4x32xf32>
    %162 = vector.extract_strided_slice %150 {offsets = [0, 0], sizes = [4, 32], strides = [1, 1]} : vector<4x96xf32> to vector<4x32xf32>
    %163 = arith.mulf %162, %154 : vector<4x32xf32>
    %164 = arith.addf %161, %163 : vector<4x32xf32>
    %165 = vector.extract_strided_slice %144 {offsets = [0, 64], sizes = [4, 32], strides = [1, 1]} : vector<4x96xf32> to vector<4x32xf32>
    %166 = math.tanh %159 : vector<4x32xf32>
    %167 = arith.mulf %165, %166 : vector<4x32xf32>
    %168 = vector.extract_strided_slice %150 {offsets = [0, 64], sizes = [4, 32], strides = [1, 1]} : vector<4x96xf32> to vector<4x32xf32>
    %169 = math.tanh %164 : vector<4x32xf32>
    %170 = arith.mulf %168, %169 : vector<4x32xf32>
    %c12_50 = arith.constant 12 : index
    %c0_51 = arith.constant 0 : index
    %171 = vector.load %arg11[%c12_50, %c0_51] : memref<32x64xf32, #tpu.memory_space<vmem>>, vector<4x32xf32>
    tpu.vector_store %arg11[%c12_50, %c0_51], %167 {strides = array<i32>} : memref<32x64xf32, #tpu.memory_space<vmem>>, vector<4x32xf32>,
    %c16_52 = arith.constant 16 : index
    %c32_53 = arith.constant 32 : index
    %172 = vector.load %arg11[%c16_52, %c32_53] : memref<32x64xf32, #tpu.memory_space<vmem>>, vector<4x32xf32>
    tpu.vector_store %arg11[%c16_52, %c32_53], %170 {strides = array<i32>} : memref<32x64xf32, #tpu.memory_space<vmem>>, vector<4x32xf32>,
    %c16_54 = arith.constant 16 : index
    %c0_55 = arith.constant 0 : index
    %173 = vector.load %arg13[%c16_54, %c0_55] : memref<32x256xf32, #tpu.memory_space<vmem>>, vector<4x128xf32>
    %c12_56 = arith.constant 12 : index
    %c128_57 = arith.constant 128 : index
    %174 = vector.load %arg13[%c12_56, %c128_57] : memref<32x256xf32, #tpu.memory_space<vmem>>, vector<4x128xf32>
    %cst_58 = arith.constant dense<0.000000e+00> : vector<4x128xf32>
    %175 = tpu.matmul %167, %7, %cst_58 {dimension_numbers = #tpu.dot_dimension_numbers<[1], [0], [0], [1], [0, 0, 1, 1], [], []>} : vector<4x32xf32>, vector<32x128xf32>, vector<4x128xf32> -> vector<4x128xf32>
    %176 = arith.addf %173, %175 : vector<4x128xf32>
    %cst_59 = arith.constant dense<0.000000e+00> : vector<4x128xf32>
    %177 = tpu.matmul %170, %8, %cst_59 {dimension_numbers = #tpu.dot_dimension_numbers<[1], [0], [0], [1], [0, 0, 1, 1], [], []>} : vector<4x32xf32>, vector<32x128xf32>, vector<4x128xf32> -> vector<4x128xf32>
    %178 = arith.addf %174, %177 : vector<4x128xf32>
    %179 = vector.extract_strided_slice %176 {offsets = [0, 0], sizes = [4, 96], strides = [1, 1]} : vector<4x128xf32> to vector<4x96xf32>
    %180 = arith.negf %179 : vector<4x96xf32>
    %181 = math.exp %180 : vector<4x96xf32>
    %cst_60 = arith.constant 1.000000e+00 : f32
    %182 = vector.broadcast %cst_60 : f32 to vector<4x96xf32>
    %183 = arith.addf %182, %181 : vector<4x96xf32>
    %184 = arith.divf %182, %183 : vector<4x96xf32>
    %185 = vector.extract_strided_slice %178 {offsets = [0, 0], sizes = [4, 96], strides = [1, 1]} : vector<4x128xf32> to vector<4x96xf32>
    %186 = arith.negf %185 : vector<4x96xf32>
    %187 = math.exp %186 : vector<4x96xf32>
    %cst_61 = arith.constant 1.000000e+00 : f32
    %188 = vector.broadcast %cst_61 : f32 to vector<4x96xf32>
    %189 = arith.addf %188, %187 : vector<4x96xf32>
    %190 = arith.divf %188, %189 : vector<4x96xf32>
    %191 = vector.extract_strided_slice %176 {offsets = [0, 96], sizes = [4, 32], strides = [1, 1]} : vector<4x128xf32> to vector<4x32xf32>
    %192 = math.tanh %191 : vector<4x32xf32>
    %193 = vector.extract_strided_slice %178 {offsets = [0, 96], sizes = [4, 32], strides = [1, 1]} : vector<4x128xf32> to vector<4x32xf32>
    %194 = math.tanh %193 : vector<4x32xf32>
    %195 = vector.extract_strided_slice %184 {offsets = [0, 32], sizes = [4, 32], strides = [1, 1]} : vector<4x96xf32> to vector<4x32xf32>
    %196 = arith.mulf %195, %159 : vector<4x32xf32>
    %197 = vector.extract_strided_slice %184 {offsets = [0, 0], sizes = [4, 32], strides = [1, 1]} : vector<4x96xf32> to vector<4x32xf32>
    %198 = arith.mulf %197, %192 : vector<4x32xf32>
    %199 = arith.addf %196, %198 : vector<4x32xf32>
    %200 = vector.extract_strided_slice %190 {offsets = [0, 32], sizes = [4, 32], strides = [1, 1]} : vector<4x96xf32> to vector<4x32xf32>
    %201 = arith.mulf %200, %164 : vector<4x32xf32>
    %202 = vector.extract_strided_slice %190 {offsets = [0, 0], sizes = [4, 32], strides = [1, 1]} : vector<4x96xf32> to vector<4x32xf32>
    %203 = arith.mulf %202, %194 : vector<4x32xf32>
    %204 = arith.addf %201, %203 : vector<4x32xf32>
    %205 = vector.extract_strided_slice %184 {offsets = [0, 64], sizes = [4, 32], strides = [1, 1]} : vector<4x96xf32> to vector<4x32xf32>
    %206 = math.tanh %199 : vector<4x32xf32>
    %207 = arith.mulf %205, %206 : vector<4x32xf32>
    %208 = vector.extract_strided_slice %190 {offsets = [0, 64], sizes = [4, 32], strides = [1, 1]} : vector<4x96xf32> to vector<4x32xf32>
    %209 = math.tanh %204 : vector<4x32xf32>
    %210 = arith.mulf %208, %209 : vector<4x32xf32>
    %c16_62 = arith.constant 16 : index
    %c0_63 = arith.constant 0 : index
    %211 = vector.load %arg11[%c16_62, %c0_63] : memref<32x64xf32, #tpu.memory_space<vmem>>, vector<4x32xf32>
    tpu.vector_store %arg11[%c16_62, %c0_63], %207 {strides = array<i32>} : memref<32x64xf32, #tpu.memory_space<vmem>>, vector<4x32xf32>,
    %c12_64 = arith.constant 12 : index
    %c32_65 = arith.constant 32 : index
    %212 = vector.load %arg11[%c12_64, %c32_65] : memref<32x64xf32, #tpu.memory_space<vmem>>, vector<4x32xf32>
    tpu.vector_store %arg11[%c12_64, %c32_65], %210 {strides = array<i32>} : memref<32x64xf32, #tpu.memory_space<vmem>>, vector<4x32xf32>,
    %c20_66 = arith.constant 20 : index
    %c0_67 = arith.constant 0 : index
    %213 = vector.load %arg13[%c20_66, %c0_67] : memref<32x256xf32, #tpu.memory_space<vmem>>, vector<4x128xf32>
    %c8_68 = arith.constant 8 : index
    %c128_69 = arith.constant 128 : index
    %214 = vector.load %arg13[%c8_68, %c128_69] : memref<32x256xf32, #tpu.memory_space<vmem>>, vector<4x128xf32>
    %cst_70 = arith.constant dense<0.000000e+00> : vector<4x128xf32>
    %215 = tpu.matmul %207, %7, %cst_70 {dimension_numbers = #tpu.dot_dimension_numbers<[1], [0], [0], [1], [0, 0, 1, 1], [], []>} : vector<4x32xf32>, vector<32x128xf32>, vector<4x128xf32> -> vector<4x128xf32>
    %216 = arith.addf %213, %215 : vector<4x128xf32>
    %cst_71 = arith.constant dense<0.000000e+00> : vector<4x128xf32>
    %217 = tpu.matmul %210, %8, %cst_71 {dimension_numbers = #tpu.dot_dimension_numbers<[1], [0], [0], [1], [0, 0, 1, 1], [], []>} : vector<4x32xf32>, vector<32x128xf32>, vector<4x128xf32> -> vector<4x128xf32>
    %218 = arith.addf %214, %217 : vector<4x128xf32>
    %219 = vector.extract_strided_slice %216 {offsets = [0, 0], sizes = [4, 96], strides = [1, 1]} : vector<4x128xf32> to vector<4x96xf32>
    %220 = arith.negf %219 : vector<4x96xf32>
    %221 = math.exp %220 : vector<4x96xf32>
    %cst_72 = arith.constant 1.000000e+00 : f32
    %222 = vector.broadcast %cst_72 : f32 to vector<4x96xf32>
    %223 = arith.addf %222, %221 : vector<4x96xf32>
    %224 = arith.divf %222, %223 : vector<4x96xf32>
    %225 = vector.extract_strided_slice %218 {offsets = [0, 0], sizes = [4, 96], strides = [1, 1]} : vector<4x128xf32> to vector<4x96xf32>
    %226 = arith.negf %225 : vector<4x96xf32>
    %227 = math.exp %226 : vector<4x96xf32>
    %cst_73 = arith.constant 1.000000e+00 : f32
    %228 = vector.broadcast %cst_73 : f32 to vector<4x96xf32>
    %229 = arith.addf %228, %227 : vector<4x96xf32>
    %230 = arith.divf %228, %229 : vector<4x96xf32>
    %231 = vector.extract_strided_slice %216 {offsets = [0, 96], sizes = [4, 32], strides = [1, 1]} : vector<4x128xf32> to vector<4x32xf32>
    %232 = math.tanh %231 : vector<4x32xf32>
    %233 = vector.extract_strided_slice %218 {offsets = [0, 96], sizes = [4, 32], strides = [1, 1]} : vector<4x128xf32> to vector<4x32xf32>
    %234 = math.tanh %233 : vector<4x32xf32>
    %235 = vector.extract_strided_slice %224 {offsets = [0, 32], sizes = [4, 32], strides = [1, 1]} : vector<4x96xf32> to vector<4x32xf32>
    %236 = arith.mulf %235, %199 : vector<4x32xf32>
    %237 = vector.extract_strided_slice %224 {offsets = [0, 0], sizes = [4, 32], strides = [1, 1]} : vector<4x96xf32> to vector<4x32xf32>
    %238 = arith.mulf %237, %232 : vector<4x32xf32>
    %239 = arith.addf %236, %238 : vector<4x32xf32>
    %240 = vector.extract_strided_slice %230 {offsets = [0, 32], sizes = [4, 32], strides = [1, 1]} : vector<4x96xf32> to vector<4x32xf32>
    %241 = arith.mulf %240, %204 : vector<4x32xf32>
    %242 = vector.extract_strided_slice %230 {offsets = [0, 0], sizes = [4, 32], strides = [1, 1]} : vector<4x96xf32> to vector<4x32xf32>
    %243 = arith.mulf %242, %234 : vector<4x32xf32>
    %244 = arith.addf %241, %243 : vector<4x32xf32>
    %245 = vector.extract_strided_slice %224 {offsets = [0, 64], sizes = [4, 32], strides = [1, 1]} : vector<4x96xf32> to vector<4x32xf32>
    %246 = math.tanh %239 : vector<4x32xf32>
    %247 = arith.mulf %245, %246 : vector<4x32xf32>
    %248 = vector.extract_strided_slice %230 {offsets = [0, 64], sizes = [4, 32], strides = [1, 1]} : vector<4x96xf32> to vector<4x32xf32>
    %249 = math.tanh %244 : vector<4x32xf32>
    %250 = arith.mulf %248, %249 : vector<4x32xf32>
    %c20_74 = arith.constant 20 : index
    %c0_75 = arith.constant 0 : index
    %251 = vector.load %arg11[%c20_74, %c0_75] : memref<32x64xf32, #tpu.memory_space<vmem>>, vector<4x32xf32>
    tpu.vector_store %arg11[%c20_74, %c0_75], %247 {strides = array<i32>} : memref<32x64xf32, #tpu.memory_space<vmem>>, vector<4x32xf32>,
    %c8_76 = arith.constant 8 : index
    %c32_77 = arith.constant 32 : index
    %252 = vector.load %arg11[%c8_76, %c32_77] : memref<32x64xf32, #tpu.memory_space<vmem>>, vector<4x32xf32>
    tpu.vector_store %arg11[%c8_76, %c32_77], %250 {strides = array<i32>} : memref<32x64xf32, #tpu.memory_space<vmem>>, vector<4x32xf32>,
    %c24_78 = arith.constant 24 : index
    %c0_79 = arith.constant 0 : index
    %253 = vector.load %arg13[%c24_78, %c0_79] : memref<32x256xf32, #tpu.memory_space<vmem>>, vector<4x128xf32>
    %c4_80 = arith.constant 4 : index
    %c128_81 = arith.constant 128 : index
    %254 = vector.load %arg13[%c4_80, %c128_81] : memref<32x256xf32, #tpu.memory_space<vmem>>, vector<4x128xf32>
    %cst_82 = arith.constant dense<0.000000e+00> : vector<4x128xf32>
    %255 = tpu.matmul %247, %7, %cst_82 {dimension_numbers = #tpu.dot_dimension_numbers<[1], [0], [0], [1], [0, 0, 1, 1], [], []>} : vector<4x32xf32>, vector<32x128xf32>, vector<4x128xf32> -> vector<4x128xf32>
    %256 = arith.addf %253, %255 : vector<4x128xf32>
    %cst_83 = arith.constant dense<0.000000e+00> : vector<4x128xf32>
    %257 = tpu.matmul %250, %8, %cst_83 {dimension_numbers = #tpu.dot_dimension_numbers<[1], [0], [0], [1], [0, 0, 1, 1], [], []>} : vector<4x32xf32>, vector<32x128xf32>, vector<4x128xf32> -> vector<4x128xf32>
    %258 = arith.addf %254, %257 : vector<4x128xf32>
    %259 = vector.extract_strided_slice %256 {offsets = [0, 0], sizes = [4, 96], strides = [1, 1]} : vector<4x128xf32> to vector<4x96xf32>
    %260 = arith.negf %259 : vector<4x96xf32>
    %261 = math.exp %260 : vector<4x96xf32>
    %cst_84 = arith.constant 1.000000e+00 : f32
    %262 = vector.broadcast %cst_84 : f32 to vector<4x96xf32>
    %263 = arith.addf %262, %261 : vector<4x96xf32>
    %264 = arith.divf %262, %263 : vector<4x96xf32>
    %265 = vector.extract_strided_slice %258 {offsets = [0, 0], sizes = [4, 96], strides = [1, 1]} : vector<4x128xf32> to vector<4x96xf32>
    %266 = arith.negf %265 : vector<4x96xf32>
    %267 = math.exp %266 : vector<4x96xf32>
    %cst_85 = arith.constant 1.000000e+00 : f32
    %268 = vector.broadcast %cst_85 : f32 to vector<4x96xf32>
    %269 = arith.addf %268, %267 : vector<4x96xf32>
    %270 = arith.divf %268, %269 : vector<4x96xf32>
    %271 = vector.extract_strided_slice %256 {offsets = [0, 96], sizes = [4, 32], strides = [1, 1]} : vector<4x128xf32> to vector<4x32xf32>
    %272 = math.tanh %271 : vector<4x32xf32>
    %273 = vector.extract_strided_slice %258 {offsets = [0, 96], sizes = [4, 32], strides = [1, 1]} : vector<4x128xf32> to vector<4x32xf32>
    %274 = math.tanh %273 : vector<4x32xf32>
    %275 = vector.extract_strided_slice %264 {offsets = [0, 32], sizes = [4, 32], strides = [1, 1]} : vector<4x96xf32> to vector<4x32xf32>
    %276 = arith.mulf %275, %239 : vector<4x32xf32>
    %277 = vector.extract_strided_slice %264 {offsets = [0, 0], sizes = [4, 32], strides = [1, 1]} : vector<4x96xf32> to vector<4x32xf32>
    %278 = arith.mulf %277, %272 : vector<4x32xf32>
    %279 = arith.addf %276, %278 : vector<4x32xf32>
    %280 = vector.extract_strided_slice %270 {offsets = [0, 32], sizes = [4, 32], strides = [1, 1]} : vector<4x96xf32> to vector<4x32xf32>
    %281 = arith.mulf %280, %244 : vector<4x32xf32>
    %282 = vector.extract_strided_slice %270 {offsets = [0, 0], sizes = [4, 32], strides = [1, 1]} : vector<4x96xf32> to vector<4x32xf32>
    %283 = arith.mulf %282, %274 : vector<4x32xf32>
    %284 = arith.addf %281, %283 : vector<4x32xf32>
    %285 = vector.extract_strided_slice %264 {offsets = [0, 64], sizes = [4, 32], strides = [1, 1]} : vector<4x96xf32> to vector<4x32xf32>
    %286 = math.tanh %279 : vector<4x32xf32>
    %287 = arith.mulf %285, %286 : vector<4x32xf32>
    %288 = vector.extract_strided_slice %270 {offsets = [0, 64], sizes = [4, 32], strides = [1, 1]} : vector<4x96xf32> to vector<4x32xf32>
    %289 = math.tanh %284 : vector<4x32xf32>
    %290 = arith.mulf %288, %289 : vector<4x32xf32>
    %c24_86 = arith.constant 24 : index
    %c0_87 = arith.constant 0 : index
    %291 = vector.load %arg11[%c24_86, %c0_87] : memref<32x64xf32, #tpu.memory_space<vmem>>, vector<4x32xf32>
    tpu.vector_store %arg11[%c24_86, %c0_87], %287 {strides = array<i32>} : memref<32x64xf32, #tpu.memory_space<vmem>>, vector<4x32xf32>,
    %c4_88 = arith.constant 4 : index
    %c32_89 = arith.constant 32 : index
    %292 = vector.load %arg11[%c4_88, %c32_89] : memref<32x64xf32, #tpu.memory_space<vmem>>, vector<4x32xf32>
    tpu.vector_store %arg11[%c4_88, %c32_89], %290 {strides = array<i32>} : memref<32x64xf32, #tpu.memory_space<vmem>>, vector<4x32xf32>,
    %c28_90 = arith.constant 28 : index
    %c0_91 = arith.constant 0 : index
    %293 = vector.load %arg13[%c28_90, %c0_91] : memref<32x256xf32, #tpu.memory_space<vmem>>, vector<4x128xf32>
    %c0_92 = arith.constant 0 : index
    %c128_93 = arith.constant 128 : index
    %294 = vector.load %arg13[%c0_92, %c128_93] : memref<32x256xf32, #tpu.memory_space<vmem>>, vector<4x128xf32>
    %cst_94 = arith.constant dense<0.000000e+00> : vector<4x128xf32>
    %295 = tpu.matmul %287, %7, %cst_94 {dimension_numbers = #tpu.dot_dimension_numbers<[1], [0], [0], [1], [0, 0, 1, 1], [], []>} : vector<4x32xf32>, vector<32x128xf32>, vector<4x128xf32> -> vector<4x128xf32>
    %296 = arith.addf %293, %295 : vector<4x128xf32>
    %cst_95 = arith.constant dense<0.000000e+00> : vector<4x128xf32>
    %297 = tpu.matmul %290, %8, %cst_95 {dimension_numbers = #tpu.dot_dimension_numbers<[1], [0], [0], [1], [0, 0, 1, 1], [], []>} : vector<4x32xf32>, vector<32x128xf32>, vector<4x128xf32> -> vector<4x128xf32>
    %298 = arith.addf %294, %297 : vector<4x128xf32>
    %299 = vector.extract_strided_slice %296 {offsets = [0, 0], sizes = [4, 96], strides = [1, 1]} : vector<4x128xf32> to vector<4x96xf32>
    %300 = arith.negf %299 : vector<4x96xf32>
    %301 = math.exp %300 : vector<4x96xf32>
    %cst_96 = arith.constant 1.000000e+00 : f32
    %302 = vector.broadcast %cst_96 : f32 to vector<4x96xf32>
    %303 = arith.addf %302, %301 : vector<4x96xf32>
    %304 = arith.divf %302, %303 : vector<4x96xf32>
    %305 = vector.extract_strided_slice %298 {offsets = [0, 0], sizes = [4, 96], strides = [1, 1]} : vector<4x128xf32> to vector<4x96xf32>
    %306 = arith.negf %305 : vector<4x96xf32>
    %307 = math.exp %306 : vector<4x96xf32>
    %cst_97 = arith.constant 1.000000e+00 : f32
    %308 = vector.broadcast %cst_97 : f32 to vector<4x96xf32>
    %309 = arith.addf %308, %307 : vector<4x96xf32>
    %310 = arith.divf %308, %309 : vector<4x96xf32>
    %311 = vector.extract_strided_slice %296 {offsets = [0, 96], sizes = [4, 32], strides = [1, 1]} : vector<4x128xf32> to vector<4x32xf32>
    %312 = math.tanh %311 : vector<4x32xf32>
    %313 = vector.extract_strided_slice %298 {offsets = [0, 96], sizes = [4, 32], strides = [1, 1]} : vector<4x128xf32> to vector<4x32xf32>
    %314 = math.tanh %313 : vector<4x32xf32>
    %315 = vector.extract_strided_slice %304 {offsets = [0, 32], sizes = [4, 32], strides = [1, 1]} : vector<4x96xf32> to vector<4x32xf32>
    %316 = arith.mulf %315, %279 : vector<4x32xf32>
    %317 = vector.extract_strided_slice %304 {offsets = [0, 0], sizes = [4, 32], strides = [1, 1]} : vector<4x96xf32> to vector<4x32xf32>
    %318 = arith.mulf %317, %312 : vector<4x32xf32>
    %319 = arith.addf %316, %318 : vector<4x32xf32>
    %320 = vector.extract_strided_slice %310 {offsets = [0, 32], sizes = [4, 32], strides = [1, 1]} : vector<4x96xf32> to vector<4x32xf32>
    %321 = arith.mulf %320, %284 : vector<4x32xf32>
    %322 = vector.extract_strided_slice %310 {offsets = [0, 0], sizes = [4, 32], strides = [1, 1]} : vector<4x96xf32> to vector<4x32xf32>
    %323 = arith.mulf %322, %314 : vector<4x32xf32>
    %324 = arith.addf %321, %323 : vector<4x32xf32>
    %325 = vector.extract_strided_slice %304 {offsets = [0, 64], sizes = [4, 32], strides = [1, 1]} : vector<4x96xf32> to vector<4x32xf32>
    %326 = math.tanh %319 : vector<4x32xf32>
    %327 = arith.mulf %325, %326 : vector<4x32xf32>
    %328 = vector.extract_strided_slice %310 {offsets = [0, 64], sizes = [4, 32], strides = [1, 1]} : vector<4x96xf32> to vector<4x32xf32>
    %329 = math.tanh %324 : vector<4x32xf32>
    %330 = arith.mulf %328, %329 : vector<4x32xf32>
    %c28_98 = arith.constant 28 : index
    %c0_99 = arith.constant 0 : index
    %331 = vector.load %arg11[%c28_98, %c0_99] : memref<32x64xf32, #tpu.memory_space<vmem>>, vector<4x32xf32>
    tpu.vector_store %arg11[%c28_98, %c0_99], %327 {strides = array<i32>} : memref<32x64xf32, #tpu.memory_space<vmem>>, vector<4x32xf32>,
    %c0_100 = arith.constant 0 : index
    %c32_101 = arith.constant 32 : index
    %332 = vector.load %arg11[%c0_100, %c32_101] : memref<32x64xf32, #tpu.memory_space<vmem>>, vector<4x32xf32>
    tpu.vector_store %arg11[%c0_100, %c32_101], %330 {strides = array<i32>} : memref<32x64xf32, #tpu.memory_space<vmem>>, vector<4x32xf32>,
    %c0_102 = arith.constant 0 : index
    %c0_103 = arith.constant 0 : index
    %333 = vector.load %arg11[%c0_102, %c0_103] : memref<32x64xf32, #tpu.memory_space<vmem>>, vector<32x64xf32>
    %c0_104 = arith.constant 0 : index
    %c0_105 = arith.constant 0 : index
    %334 = vector.load %arg6[%c0_104, %c0_105] : memref<64x256xf32, #tpu.memory_space<vmem>>, vector<64x256xf32>
    %cst_106 = arith.constant dense<0.000000e+00> : vector<32x256xf32>
    %335 = tpu.matmul %333, %334, %cst_106 {dimension_numbers = #tpu.dot_dimension_numbers<[1], [0], [0], [1], [0, 0, 1, 1], [], []>} : vector<32x64xf32>, vector<64x256xf32>, vector<32x256xf32> -> vector<32x256xf32>
    %c0_107 = arith.constant 0 : index
    %c0_108 = arith.constant 0 : index
    %336 = vector.load %arg9[%c0_107, %c0_108] : memref<1x256xf32, #tpu.memory_space<vmem>>, vector<1x256xf32>
    %337 = vector.broadcast %336 : vector<1x256xf32> to vector<32x256xf32>
    %338 = arith.addf %335, %337 : vector<32x256xf32>
    %c0_109 = arith.constant 0 : index
    %c0_110 = arith.constant 0 : index
    %339 = vector.load %arg13[%c0_109, %c0_110] : memref<32x256xf32, #tpu.memory_space<vmem>>, vector<32x256xf32>
    tpu.vector_store %arg13[%c0_109, %c0_110], %338 {strides = array<i32>} : memref<32x256xf32, #tpu.memory_space<vmem>>, vector<32x256xf32>,
    %c0_111 = arith.constant 0 : index
    %c0_112 = arith.constant 0 : index
    %340 = vector.load %arg7[%c0_111, %c0_112] : memref<32x128xf32, #tpu.memory_space<vmem>>, vector<32x128xf32>
    %c0_113 = arith.constant 0 : index
    %c0_114 = arith.constant 0 : index
    %341 = vector.load %arg8[%c0_113, %c0_114] : memref<32x128xf32, #tpu.memory_space<vmem>>, vector<32x128xf32>
    %cst_115 = arith.constant 0.000000e+00 : f32
    %342 = vector.broadcast %cst_115 : f32 to vector<4x32xf32>
    %cst_116 = arith.constant 0.000000e+00 : f32
    %343 = vector.broadcast %cst_116 : f32 to vector<4x32xf32>
    %cst_117 = arith.constant 0.000000e+00 : f32
    %344 = vector.broadcast %cst_117 : f32 to vector<4x32xf32>
    %cst_118 = arith.constant 0.000000e+00 : f32
    %345 = vector.broadcast %cst_118 : f32 to vector<4x32xf32>
    %c0_119 = arith.constant 0 : index
    %c0_120 = arith.constant 0 : index
    %346 = vector.load %arg13[%c0_119, %c0_120] : memref<32x256xf32, #tpu.memory_space<vmem>>, vector<4x128xf32>
    %c28_121 = arith.constant 28 : index
    %c128_122 = arith.constant 128 : index
    %347 = vector.load %arg13[%c28_121, %c128_122] : memref<32x256xf32, #tpu.memory_space<vmem>>, vector<4x128xf32>
    %cst_123 = arith.constant dense<0.000000e+00> : vector<4x128xf32>
    %348 = tpu.matmul %342, %340, %cst_123 {dimension_numbers = #tpu.dot_dimension_numbers<[1], [0], [0], [1], [0, 0, 1, 1], [], []>} : vector<4x32xf32>, vector<32x128xf32>, vector<4x128xf32> -> vector<4x128xf32>
    %349 = arith.addf %346, %348 : vector<4x128xf32>
    %cst_124 = arith.constant dense<0.000000e+00> : vector<4x128xf32>
    %350 = tpu.matmul %344, %341, %cst_124 {dimension_numbers = #tpu.dot_dimension_numbers<[1], [0], [0], [1], [0, 0, 1, 1], [], []>} : vector<4x32xf32>, vector<32x128xf32>, vector<4x128xf32> -> vector<4x128xf32>
    %351 = arith.addf %347, %350 : vector<4x128xf32>
    %352 = vector.extract_strided_slice %349 {offsets = [0, 0], sizes = [4, 96], strides = [1, 1]} : vector<4x128xf32> to vector<4x96xf32>
    %353 = arith.negf %352 : vector<4x96xf32>
    %354 = math.exp %353 : vector<4x96xf32>
    %cst_125 = arith.constant 1.000000e+00 : f32
    %355 = vector.broadcast %cst_125 : f32 to vector<4x96xf32>
    %356 = arith.addf %355, %354 : vector<4x96xf32>
    %357 = arith.divf %355, %356 : vector<4x96xf32>
    %358 = vector.extract_strided_slice %351 {offsets = [0, 0], sizes = [4, 96], strides = [1, 1]} : vector<4x128xf32> to vector<4x96xf32>
    %359 = arith.negf %358 : vector<4x96xf32>
    %360 = math.exp %359 : vector<4x96xf32>
    %cst_126 = arith.constant 1.000000e+00 : f32
    %361 = vector.broadcast %cst_126 : f32 to vector<4x96xf32>
    %362 = arith.addf %361, %360 : vector<4x96xf32>
    %363 = arith.divf %361, %362 : vector<4x96xf32>
    %364 = vector.extract_strided_slice %349 {offsets = [0, 96], sizes = [4, 32], strides = [1, 1]} : vector<4x128xf32> to vector<4x32xf32>
    %365 = math.tanh %364 : vector<4x32xf32>
    %366 = vector.extract_strided_slice %351 {offsets = [0, 96], sizes = [4, 32], strides = [1, 1]} : vector<4x128xf32> to vector<4x32xf32>
    %367 = math.tanh %366 : vector<4x32xf32>
    %368 = vector.extract_strided_slice %357 {offsets = [0, 32], sizes = [4, 32], strides = [1, 1]} : vector<4x96xf32> to vector<4x32xf32>
    %369 = arith.mulf %368, %343 : vector<4x32xf32>
    %370 = vector.extract_strided_slice %357 {offsets = [0, 0], sizes = [4, 32], strides = [1, 1]} : vector<4x96xf32> to vector<4x32xf32>
    %371 = arith.mulf %370, %365 : vector<4x32xf32>
    %372 = arith.addf %369, %371 : vector<4x32xf32>
    %373 = vector.extract_strided_slice %363 {offsets = [0, 32], sizes = [4, 32], strides = [1, 1]} : vector<4x96xf32> to vector<4x32xf32>
    %374 = arith.mulf %373, %345 : vector<4x32xf32>
    %375 = vector.extract_strided_slice %363 {offsets = [0, 0], sizes = [4, 32], strides = [1, 1]} : vector<4x96xf32> to vector<4x32xf32>
    %376 = arith.mulf %375, %367 : vector<4x32xf32>
    %377 = arith.addf %374, %376 : vector<4x32xf32>
    %378 = vector.extract_strided_slice %357 {offsets = [0, 64], sizes = [4, 32], strides = [1, 1]} : vector<4x96xf32> to vector<4x32xf32>
    %379 = math.tanh %372 : vector<4x32xf32>
    %380 = arith.mulf %378, %379 : vector<4x32xf32>
    %381 = vector.extract_strided_slice %363 {offsets = [0, 64], sizes = [4, 32], strides = [1, 1]} : vector<4x96xf32> to vector<4x32xf32>
    %382 = math.tanh %377 : vector<4x32xf32>
    %383 = arith.mulf %381, %382 : vector<4x32xf32>
    %c0_127 = arith.constant 0 : index
    %c0_128 = arith.constant 0 : index
    %384 = vector.load %arg10[%c0_127, %c0_128] : memref<32x64xf32, #tpu.memory_space<vmem>>, vector<4x32xf32>
    tpu.vector_store %arg10[%c0_127, %c0_128], %380 {strides = array<i32>} : memref<32x64xf32, #tpu.memory_space<vmem>>, vector<4x32xf32>,
    %c28_129 = arith.constant 28 : index
    %c32_130 = arith.constant 32 : index
    %385 = vector.load %arg10[%c28_129, %c32_130] : memref<32x64xf32, #tpu.memory_space<vmem>>, vector<4x32xf32>
    tpu.vector_store %arg10[%c28_129, %c32_130], %383 {strides = array<i32>} : memref<32x64xf32, #tpu.memory_space<vmem>>, vector<4x32xf32>,
    %c4_131 = arith.constant 4 : index
    %c0_132 = arith.constant 0 : index
    %386 = vector.load %arg13[%c4_131, %c0_132] : memref<32x256xf32, #tpu.memory_space<vmem>>, vector<4x128xf32>
    %c24_133 = arith.constant 24 : index
    %c128_134 = arith.constant 128 : index
    %387 = vector.load %arg13[%c24_133, %c128_134] : memref<32x256xf32, #tpu.memory_space<vmem>>, vector<4x128xf32>
    %cst_135 = arith.constant dense<0.000000e+00> : vector<4x128xf32>
    %388 = tpu.matmul %380, %340, %cst_135 {dimension_numbers = #tpu.dot_dimension_numbers<[1], [0], [0], [1], [0, 0, 1, 1], [], []>} : vector<4x32xf32>, vector<32x128xf32>, vector<4x128xf32> -> vector<4x128xf32>
    %389 = arith.addf %386, %388 : vector<4x128xf32>
    %cst_136 = arith.constant dense<0.000000e+00> : vector<4x128xf32>
    %390 = tpu.matmul %383, %341, %cst_136 {dimension_numbers = #tpu.dot_dimension_numbers<[1], [0], [0], [1], [0, 0, 1, 1], [], []>} : vector<4x32xf32>, vector<32x128xf32>, vector<4x128xf32> -> vector<4x128xf32>
    %391 = arith.addf %387, %390 : vector<4x128xf32>
    %392 = vector.extract_strided_slice %389 {offsets = [0, 0], sizes = [4, 96], strides = [1, 1]} : vector<4x128xf32> to vector<4x96xf32>
    %393 = arith.negf %392 : vector<4x96xf32>
    %394 = math.exp %393 : vector<4x96xf32>
    %cst_137 = arith.constant 1.000000e+00 : f32
    %395 = vector.broadcast %cst_137 : f32 to vector<4x96xf32>
    %396 = arith.addf %395, %394 : vector<4x96xf32>
    %397 = arith.divf %395, %396 : vector<4x96xf32>
    %398 = vector.extract_strided_slice %391 {offsets = [0, 0], sizes = [4, 96], strides = [1, 1]} : vector<4x128xf32> to vector<4x96xf32>
    %399 = arith.negf %398 : vector<4x96xf32>
    %400 = math.exp %399 : vector<4x96xf32>
    %cst_138 = arith.constant 1.000000e+00 : f32
    %401 = vector.broadcast %cst_138 : f32 to vector<4x96xf32>
    %402 = arith.addf %401, %400 : vector<4x96xf32>
    %403 = arith.divf %401, %402 : vector<4x96xf32>
    %404 = vector.extract_strided_slice %389 {offsets = [0, 96], sizes = [4, 32], strides = [1, 1]} : vector<4x128xf32> to vector<4x32xf32>
    %405 = math.tanh %404 : vector<4x32xf32>
    %406 = vector.extract_strided_slice %391 {offsets = [0, 96], sizes = [4, 32], strides = [1, 1]} : vector<4x128xf32> to vector<4x32xf32>
    %407 = math.tanh %406 : vector<4x32xf32>
    %408 = vector.extract_strided_slice %397 {offsets = [0, 32], sizes = [4, 32], strides = [1, 1]} : vector<4x96xf32> to vector<4x32xf32>
    %409 = arith.mulf %408, %372 : vector<4x32xf32>
    %410 = vector.extract_strided_slice %397 {offsets = [0, 0], sizes = [4, 32], strides = [1, 1]} : vector<4x96xf32> to vector<4x32xf32>
    %411 = arith.mulf %410, %405 : vector<4x32xf32>
    %412 = arith.addf %409, %411 : vector<4x32xf32>
    %413 = vector.extract_strided_slice %403 {offsets = [0, 32], sizes = [4, 32], strides = [1, 1]} : vector<4x96xf32> to vector<4x32xf32>
    %414 = arith.mulf %413, %377 : vector<4x32xf32>
    %415 = vector.extract_strided_slice %403 {offsets = [0, 0], sizes = [4, 32], strides = [1, 1]} : vector<4x96xf32> to vector<4x32xf32>
    %416 = arith.mulf %415, %407 : vector<4x32xf32>
    %417 = arith.addf %414, %416 : vector<4x32xf32>
    %418 = vector.extract_strided_slice %397 {offsets = [0, 64], sizes = [4, 32], strides = [1, 1]} : vector<4x96xf32> to vector<4x32xf32>
    %419 = math.tanh %412 : vector<4x32xf32>
    %420 = arith.mulf %418, %419 : vector<4x32xf32>
    %421 = vector.extract_strided_slice %403 {offsets = [0, 64], sizes = [4, 32], strides = [1, 1]} : vector<4x96xf32> to vector<4x32xf32>
    %422 = math.tanh %417 : vector<4x32xf32>
    %423 = arith.mulf %421, %422 : vector<4x32xf32>
    %c4_139 = arith.constant 4 : index
    %c0_140 = arith.constant 0 : index
    %424 = vector.load %arg10[%c4_139, %c0_140] : memref<32x64xf32, #tpu.memory_space<vmem>>, vector<4x32xf32>
    tpu.vector_store %arg10[%c4_139, %c0_140], %420 {strides = array<i32>} : memref<32x64xf32, #tpu.memory_space<vmem>>, vector<4x32xf32>,
    %c24_141 = arith.constant 24 : index
    %c32_142 = arith.constant 32 : index
    %425 = vector.load %arg10[%c24_141, %c32_142] : memref<32x64xf32, #tpu.memory_space<vmem>>, vector<4x32xf32>
    tpu.vector_store %arg10[%c24_141, %c32_142], %423 {strides = array<i32>} : memref<32x64xf32, #tpu.memory_space<vmem>>, vector<4x32xf32>,
    %c8_143 = arith.constant 8 : index
    %c0_144 = arith.constant 0 : index
    %426 = vector.load %arg13[%c8_143, %c0_144] : memref<32x256xf32, #tpu.memory_space<vmem>>, vector<4x128xf32>
    %c20_145 = arith.constant 20 : index
    %c128_146 = arith.constant 128 : index
    %427 = vector.load %arg13[%c20_145, %c128_146] : memref<32x256xf32, #tpu.memory_space<vmem>>, vector<4x128xf32>
    %cst_147 = arith.constant dense<0.000000e+00> : vector<4x128xf32>
    %428 = tpu.matmul %420, %340, %cst_147 {dimension_numbers = #tpu.dot_dimension_numbers<[1], [0], [0], [1], [0, 0, 1, 1], [], []>} : vector<4x32xf32>, vector<32x128xf32>, vector<4x128xf32> -> vector<4x128xf32>
    %429 = arith.addf %426, %428 : vector<4x128xf32>
    %cst_148 = arith.constant dense<0.000000e+00> : vector<4x128xf32>
    %430 = tpu.matmul %423, %341, %cst_148 {dimension_numbers = #tpu.dot_dimension_numbers<[1], [0], [0], [1], [0, 0, 1, 1], [], []>} : vector<4x32xf32>, vector<32x128xf32>, vector<4x128xf32> -> vector<4x128xf32>
    %431 = arith.addf %427, %430 : vector<4x128xf32>
    %432 = vector.extract_strided_slice %429 {offsets = [0, 0], sizes = [4, 96], strides = [1, 1]} : vector<4x128xf32> to vector<4x96xf32>
    %433 = arith.negf %432 : vector<4x96xf32>
    %434 = math.exp %433 : vector<4x96xf32>
    %cst_149 = arith.constant 1.000000e+00 : f32
    %435 = vector.broadcast %cst_149 : f32 to vector<4x96xf32>
    %436 = arith.addf %435, %434 : vector<4x96xf32>
    %437 = arith.divf %435, %436 : vector<4x96xf32>
    %438 = vector.extract_strided_slice %431 {offsets = [0, 0], sizes = [4, 96], strides = [1, 1]} : vector<4x128xf32> to vector<4x96xf32>
    %439 = arith.negf %438 : vector<4x96xf32>
    %440 = math.exp %439 : vector<4x96xf32>
    %cst_150 = arith.constant 1.000000e+00 : f32
    %441 = vector.broadcast %cst_150 : f32 to vector<4x96xf32>
    %442 = arith.addf %441, %440 : vector<4x96xf32>
    %443 = arith.divf %441, %442 : vector<4x96xf32>
    %444 = vector.extract_strided_slice %429 {offsets = [0, 96], sizes = [4, 32], strides = [1, 1]} : vector<4x128xf32> to vector<4x32xf32>
    %445 = math.tanh %444 : vector<4x32xf32>
    %446 = vector.extract_strided_slice %431 {offsets = [0, 96], sizes = [4, 32], strides = [1, 1]} : vector<4x128xf32> to vector<4x32xf32>
    %447 = math.tanh %446 : vector<4x32xf32>
    %448 = vector.extract_strided_slice %437 {offsets = [0, 32], sizes = [4, 32], strides = [1, 1]} : vector<4x96xf32> to vector<4x32xf32>
    %449 = arith.mulf %448, %412 : vector<4x32xf32>
    %450 = vector.extract_strided_slice %437 {offsets = [0, 0], sizes = [4, 32], strides = [1, 1]} : vector<4x96xf32> to vector<4x32xf32>
    %451 = arith.mulf %450, %445 : vector<4x32xf32>
    %452 = arith.addf %449, %451 : vector<4x32xf32>
    %453 = vector.extract_strided_slice %443 {offsets = [0, 32], sizes = [4, 32], strides = [1, 1]} : vector<4x96xf32> to vector<4x32xf32>
    %454 = arith.mulf %453, %417 : vector<4x32xf32>
    %455 = vector.extract_strided_slice %443 {offsets = [0, 0], sizes = [4, 32], strides = [1, 1]} : vector<4x96xf32> to vector<4x32xf32>
    %456 = arith.mulf %455, %447 : vector<4x32xf32>
    %457 = arith.addf %454, %456 : vector<4x32xf32>
    %458 = vector.extract_strided_slice %437 {offsets = [0, 64], sizes = [4, 32], strides = [1, 1]} : vector<4x96xf32> to vector<4x32xf32>
    %459 = math.tanh %452 : vector<4x32xf32>
    %460 = arith.mulf %458, %459 : vector<4x32xf32>
    %461 = vector.extract_strided_slice %443 {offsets = [0, 64], sizes = [4, 32], strides = [1, 1]} : vector<4x96xf32> to vector<4x32xf32>
    %462 = math.tanh %457 : vector<4x32xf32>
    %463 = arith.mulf %461, %462 : vector<4x32xf32>
    %c8_151 = arith.constant 8 : index
    %c0_152 = arith.constant 0 : index
    %464 = vector.load %arg10[%c8_151, %c0_152] : memref<32x64xf32, #tpu.memory_space<vmem>>, vector<4x32xf32>
    tpu.vector_store %arg10[%c8_151, %c0_152], %460 {strides = array<i32>} : memref<32x64xf32, #tpu.memory_space<vmem>>, vector<4x32xf32>,
    %c20_153 = arith.constant 20 : index
    %c32_154 = arith.constant 32 : index
    %465 = vector.load %arg10[%c20_153, %c32_154] : memref<32x64xf32, #tpu.memory_space<vmem>>, vector<4x32xf32>
    tpu.vector_store %arg10[%c20_153, %c32_154], %463 {strides = array<i32>} : memref<32x64xf32, #tpu.memory_space<vmem>>, vector<4x32xf32>,
    %c12_155 = arith.constant 12 : index
    %c0_156 = arith.constant 0 : index
    %466 = vector.load %arg13[%c12_155, %c0_156] : memref<32x256xf32, #tpu.memory_space<vmem>>, vector<4x128xf32>
    %c16_157 = arith.constant 16 : index
    %c128_158 = arith.constant 128 : index
    %467 = vector.load %arg13[%c16_157, %c128_158] : memref<32x256xf32, #tpu.memory_space<vmem>>, vector<4x128xf32>
    %cst_159 = arith.constant dense<0.000000e+00> : vector<4x128xf32>
    %468 = tpu.matmul %460, %340, %cst_159 {dimension_numbers = #tpu.dot_dimension_numbers<[1], [0], [0], [1], [0, 0, 1, 1], [], []>} : vector<4x32xf32>, vector<32x128xf32>, vector<4x128xf32> -> vector<4x128xf32>
    %469 = arith.addf %466, %468 : vector<4x128xf32>
    %cst_160 = arith.constant dense<0.000000e+00> : vector<4x128xf32>
    %470 = tpu.matmul %463, %341, %cst_160 {dimension_numbers = #tpu.dot_dimension_numbers<[1], [0], [0], [1], [0, 0, 1, 1], [], []>} : vector<4x32xf32>, vector<32x128xf32>, vector<4x128xf32> -> vector<4x128xf32>
    %471 = arith.addf %467, %470 : vector<4x128xf32>
    %472 = vector.extract_strided_slice %469 {offsets = [0, 0], sizes = [4, 96], strides = [1, 1]} : vector<4x128xf32> to vector<4x96xf32>
    %473 = arith.negf %472 : vector<4x96xf32>
    %474 = math.exp %473 : vector<4x96xf32>
    %cst_161 = arith.constant 1.000000e+00 : f32
    %475 = vector.broadcast %cst_161 : f32 to vector<4x96xf32>
    %476 = arith.addf %475, %474 : vector<4x96xf32>
    %477 = arith.divf %475, %476 : vector<4x96xf32>
    %478 = vector.extract_strided_slice %471 {offsets = [0, 0], sizes = [4, 96], strides = [1, 1]} : vector<4x128xf32> to vector<4x96xf32>
    %479 = arith.negf %478 : vector<4x96xf32>
    %480 = math.exp %479 : vector<4x96xf32>
    %cst_162 = arith.constant 1.000000e+00 : f32
    %481 = vector.broadcast %cst_162 : f32 to vector<4x96xf32>
    %482 = arith.addf %481, %480 : vector<4x96xf32>
    %483 = arith.divf %481, %482 : vector<4x96xf32>
    %484 = vector.extract_strided_slice %469 {offsets = [0, 96], sizes = [4, 32], strides = [1, 1]} : vector<4x128xf32> to vector<4x32xf32>
    %485 = math.tanh %484 : vector<4x32xf32>
    %486 = vector.extract_strided_slice %471 {offsets = [0, 96], sizes = [4, 32], strides = [1, 1]} : vector<4x128xf32> to vector<4x32xf32>
    %487 = math.tanh %486 : vector<4x32xf32>
    %488 = vector.extract_strided_slice %477 {offsets = [0, 32], sizes = [4, 32], strides = [1, 1]} : vector<4x96xf32> to vector<4x32xf32>
    %489 = arith.mulf %488, %452 : vector<4x32xf32>
    %490 = vector.extract_strided_slice %477 {offsets = [0, 0], sizes = [4, 32], strides = [1, 1]} : vector<4x96xf32> to vector<4x32xf32>
    %491 = arith.mulf %490, %485 : vector<4x32xf32>
    %492 = arith.addf %489, %491 : vector<4x32xf32>
    %493 = vector.extract_strided_slice %483 {offsets = [0, 32], sizes = [4, 32], strides = [1, 1]} : vector<4x96xf32> to vector<4x32xf32>
    %494 = arith.mulf %493, %457 : vector<4x32xf32>
    %495 = vector.extract_strided_slice %483 {offsets = [0, 0], sizes = [4, 32], strides = [1, 1]} : vector<4x96xf32> to vector<4x32xf32>
    %496 = arith.mulf %495, %487 : vector<4x32xf32>
    %497 = arith.addf %494, %496 : vector<4x32xf32>
    %498 = vector.extract_strided_slice %477 {offsets = [0, 64], sizes = [4, 32], strides = [1, 1]} : vector<4x96xf32> to vector<4x32xf32>
    %499 = math.tanh %492 : vector<4x32xf32>
    %500 = arith.mulf %498, %499 : vector<4x32xf32>
    %501 = vector.extract_strided_slice %483 {offsets = [0, 64], sizes = [4, 32], strides = [1, 1]} : vector<4x96xf32> to vector<4x32xf32>
    %502 = math.tanh %497 : vector<4x32xf32>
    %503 = arith.mulf %501, %502 : vector<4x32xf32>
    %c12_163 = arith.constant 12 : index
    %c0_164 = arith.constant 0 : index
    %504 = vector.load %arg10[%c12_163, %c0_164] : memref<32x64xf32, #tpu.memory_space<vmem>>, vector<4x32xf32>
    tpu.vector_store %arg10[%c12_163, %c0_164], %500 {strides = array<i32>} : memref<32x64xf32, #tpu.memory_space<vmem>>, vector<4x32xf32>,
    %c16_165 = arith.constant 16 : index
    %c32_166 = arith.constant 32 : index
    %505 = vector.load %arg10[%c16_165, %c32_166] : memref<32x64xf32, #tpu.memory_space<vmem>>, vector<4x32xf32>
    tpu.vector_store %arg10[%c16_165, %c32_166], %503 {strides = array<i32>} : memref<32x64xf32, #tpu.memory_space<vmem>>, vector<4x32xf32>,
    %c16_167 = arith.constant 16 : index
    %c0_168 = arith.constant 0 : index
    %506 = vector.load %arg13[%c16_167, %c0_168] : memref<32x256xf32, #tpu.memory_space<vmem>>, vector<4x128xf32>
    %c12_169 = arith.constant 12 : index
    %c128_170 = arith.constant 128 : index
    %507 = vector.load %arg13[%c12_169, %c128_170] : memref<32x256xf32, #tpu.memory_space<vmem>>, vector<4x128xf32>
    %cst_171 = arith.constant dense<0.000000e+00> : vector<4x128xf32>
    %508 = tpu.matmul %500, %340, %cst_171 {dimension_numbers = #tpu.dot_dimension_numbers<[1], [0], [0], [1], [0, 0, 1, 1], [], []>} : vector<4x32xf32>, vector<32x128xf32>, vector<4x128xf32> -> vector<4x128xf32>
    %509 = arith.addf %506, %508 : vector<4x128xf32>
    %cst_172 = arith.constant dense<0.000000e+00> : vector<4x128xf32>
    %510 = tpu.matmul %503, %341, %cst_172 {dimension_numbers = #tpu.dot_dimension_numbers<[1], [0], [0], [1], [0, 0, 1, 1], [], []>} : vector<4x32xf32>, vector<32x128xf32>, vector<4x128xf32> -> vector<4x128xf32>
    %511 = arith.addf %507, %510 : vector<4x128xf32>
    %512 = vector.extract_strided_slice %509 {offsets = [0, 0], sizes = [4, 96], strides = [1, 1]} : vector<4x128xf32> to vector<4x96xf32>
    %513 = arith.negf %512 : vector<4x96xf32>
    %514 = math.exp %513 : vector<4x96xf32>
    %cst_173 = arith.constant 1.000000e+00 : f32
    %515 = vector.broadcast %cst_173 : f32 to vector<4x96xf32>
    %516 = arith.addf %515, %514 : vector<4x96xf32>
    %517 = arith.divf %515, %516 : vector<4x96xf32>
    %518 = vector.extract_strided_slice %511 {offsets = [0, 0], sizes = [4, 96], strides = [1, 1]} : vector<4x128xf32> to vector<4x96xf32>
    %519 = arith.negf %518 : vector<4x96xf32>
    %520 = math.exp %519 : vector<4x96xf32>
    %cst_174 = arith.constant 1.000000e+00 : f32
    %521 = vector.broadcast %cst_174 : f32 to vector<4x96xf32>
    %522 = arith.addf %521, %520 : vector<4x96xf32>
    %523 = arith.divf %521, %522 : vector<4x96xf32>
    %524 = vector.extract_strided_slice %509 {offsets = [0, 96], sizes = [4, 32], strides = [1, 1]} : vector<4x128xf32> to vector<4x32xf32>
    %525 = math.tanh %524 : vector<4x32xf32>
    %526 = vector.extract_strided_slice %511 {offsets = [0, 96], sizes = [4, 32], strides = [1, 1]} : vector<4x128xf32> to vector<4x32xf32>
    %527 = math.tanh %526 : vector<4x32xf32>
    %528 = vector.extract_strided_slice %517 {offsets = [0, 32], sizes = [4, 32], strides = [1, 1]} : vector<4x96xf32> to vector<4x32xf32>
    %529 = arith.mulf %528, %492 : vector<4x32xf32>
    %530 = vector.extract_strided_slice %517 {offsets = [0, 0], sizes = [4, 32], strides = [1, 1]} : vector<4x96xf32> to vector<4x32xf32>
    %531 = arith.mulf %530, %525 : vector<4x32xf32>
    %532 = arith.addf %529, %531 : vector<4x32xf32>
    %533 = vector.extract_strided_slice %523 {offsets = [0, 32], sizes = [4, 32], strides = [1, 1]} : vector<4x96xf32> to vector<4x32xf32>
    %534 = arith.mulf %533, %497 : vector<4x32xf32>
    %535 = vector.extract_strided_slice %523 {offsets = [0, 0], sizes = [4, 32], strides = [1, 1]} : vector<4x96xf32> to vector<4x32xf32>
    %536 = arith.mulf %535, %527 : vector<4x32xf32>
    %537 = arith.addf %534, %536 : vector<4x32xf32>
    %538 = vector.extract_strided_slice %517 {offsets = [0, 64], sizes = [4, 32], strides = [1, 1]} : vector<4x96xf32> to vector<4x32xf32>
    %539 = math.tanh %532 : vector<4x32xf32>
    %540 = arith.mulf %538, %539 : vector<4x32xf32>
    %541 = vector.extract_strided_slice %523 {offsets = [0, 64], sizes = [4, 32], strides = [1, 1]} : vector<4x96xf32> to vector<4x32xf32>
    %542 = math.tanh %537 : vector<4x32xf32>
    %543 = arith.mulf %541, %542 : vector<4x32xf32>
    %c16_175 = arith.constant 16 : index
    %c0_176 = arith.constant 0 : index
    %544 = vector.load %arg10[%c16_175, %c0_176] : memref<32x64xf32, #tpu.memory_space<vmem>>, vector<4x32xf32>
    tpu.vector_store %arg10[%c16_175, %c0_176], %540 {strides = array<i32>} : memref<32x64xf32, #tpu.memory_space<vmem>>, vector<4x32xf32>,
    %c12_177 = arith.constant 12 : index
    %c32_178 = arith.constant 32 : index
    %545 = vector.load %arg10[%c12_177, %c32_178] : memref<32x64xf32, #tpu.memory_space<vmem>>, vector<4x32xf32>
    tpu.vector_store %arg10[%c12_177, %c32_178], %543 {strides = array<i32>} : memref<32x64xf32, #tpu.memory_space<vmem>>, vector<4x32xf32>,
    %c20_179 = arith.constant 20 : index
    %c0_180 = arith.constant 0 : index
    %546 = vector.load %arg13[%c20_179, %c0_180] : memref<32x256xf32, #tpu.memory_space<vmem>>, vector<4x128xf32>
    %c8_181 = arith.constant 8 : index
    %c128_182 = arith.constant 128 : index
    %547 = vector.load %arg13[%c8_181, %c128_182] : memref<32x256xf32, #tpu.memory_space<vmem>>, vector<4x128xf32>
    %cst_183 = arith.constant dense<0.000000e+00> : vector<4x128xf32>
    %548 = tpu.matmul %540, %340, %cst_183 {dimension_numbers = #tpu.dot_dimension_numbers<[1], [0], [0], [1], [0, 0, 1, 1], [], []>} : vector<4x32xf32>, vector<32x128xf32>, vector<4x128xf32> -> vector<4x128xf32>
    %549 = arith.addf %546, %548 : vector<4x128xf32>
    %cst_184 = arith.constant dense<0.000000e+00> : vector<4x128xf32>
    %550 = tpu.matmul %543, %341, %cst_184 {dimension_numbers = #tpu.dot_dimension_numbers<[1], [0], [0], [1], [0, 0, 1, 1], [], []>} : vector<4x32xf32>, vector<32x128xf32>, vector<4x128xf32> -> vector<4x128xf32>
    %551 = arith.addf %547, %550 : vector<4x128xf32>
    %552 = vector.extract_strided_slice %549 {offsets = [0, 0], sizes = [4, 96], strides = [1, 1]} : vector<4x128xf32> to vector<4x96xf32>
    %553 = arith.negf %552 : vector<4x96xf32>
    %554 = math.exp %553 : vector<4x96xf32>
    %cst_185 = arith.constant 1.000000e+00 : f32
    %555 = vector.broadcast %cst_185 : f32 to vector<4x96xf32>
    %556 = arith.addf %555, %554 : vector<4x96xf32>
    %557 = arith.divf %555, %556 : vector<4x96xf32>
    %558 = vector.extract_strided_slice %551 {offsets = [0, 0], sizes = [4, 96], strides = [1, 1]} : vector<4x128xf32> to vector<4x96xf32>
    %559 = arith.negf %558 : vector<4x96xf32>
    %560 = math.exp %559 : vector<4x96xf32>
    %cst_186 = arith.constant 1.000000e+00 : f32
    %561 = vector.broadcast %cst_186 : f32 to vector<4x96xf32>
    %562 = arith.addf %561, %560 : vector<4x96xf32>
    %563 = arith.divf %561, %562 : vector<4x96xf32>
    %564 = vector.extract_strided_slice %549 {offsets = [0, 96], sizes = [4, 32], strides = [1, 1]} : vector<4x128xf32> to vector<4x32xf32>
    %565 = math.tanh %564 : vector<4x32xf32>
    %566 = vector.extract_strided_slice %551 {offsets = [0, 96], sizes = [4, 32], strides = [1, 1]} : vector<4x128xf32> to vector<4x32xf32>
    %567 = math.tanh %566 : vector<4x32xf32>
    %568 = vector.extract_strided_slice %557 {offsets = [0, 32], sizes = [4, 32], strides = [1, 1]} : vector<4x96xf32> to vector<4x32xf32>
    %569 = arith.mulf %568, %532 : vector<4x32xf32>
    %570 = vector.extract_strided_slice %557 {offsets = [0, 0], sizes = [4, 32], strides = [1, 1]} : vector<4x96xf32> to vector<4x32xf32>
    %571 = arith.mulf %570, %565 : vector<4x32xf32>
    %572 = arith.addf %569, %571 : vector<4x32xf32>
    %573 = vector.extract_strided_slice %563 {offsets = [0, 32], sizes = [4, 32], strides = [1, 1]} : vector<4x96xf32> to vector<4x32xf32>
    %574 = arith.mulf %573, %537 : vector<4x32xf32>
    %575 = vector.extract_strided_slice %563 {offsets = [0, 0], sizes = [4, 32], strides = [1, 1]} : vector<4x96xf32> to vector<4x32xf32>
    %576 = arith.mulf %575, %567 : vector<4x32xf32>
    %577 = arith.addf %574, %576 : vector<4x32xf32>
    %578 = vector.extract_strided_slice %557 {offsets = [0, 64], sizes = [4, 32], strides = [1, 1]} : vector<4x96xf32> to vector<4x32xf32>
    %579 = math.tanh %572 : vector<4x32xf32>
    %580 = arith.mulf %578, %579 : vector<4x32xf32>
    %581 = vector.extract_strided_slice %563 {offsets = [0, 64], sizes = [4, 32], strides = [1, 1]} : vector<4x96xf32> to vector<4x32xf32>
    %582 = math.tanh %577 : vector<4x32xf32>
    %583 = arith.mulf %581, %582 : vector<4x32xf32>
    %c20_187 = arith.constant 20 : index
    %c0_188 = arith.constant 0 : index
    %584 = vector.load %arg10[%c20_187, %c0_188] : memref<32x64xf32, #tpu.memory_space<vmem>>, vector<4x32xf32>
    tpu.vector_store %arg10[%c20_187, %c0_188], %580 {strides = array<i32>} : memref<32x64xf32, #tpu.memory_space<vmem>>, vector<4x32xf32>,
    %c8_189 = arith.constant 8 : index
    %c32_190 = arith.constant 32 : index
    %585 = vector.load %arg10[%c8_189, %c32_190] : memref<32x64xf32, #tpu.memory_space<vmem>>, vector<4x32xf32>
    tpu.vector_store %arg10[%c8_189, %c32_190], %583 {strides = array<i32>} : memref<32x64xf32, #tpu.memory_space<vmem>>, vector<4x32xf32>,
    %c24_191 = arith.constant 24 : index
    %c0_192 = arith.constant 0 : index
    %586 = vector.load %arg13[%c24_191, %c0_192] : memref<32x256xf32, #tpu.memory_space<vmem>>, vector<4x128xf32>
    %c4_193 = arith.constant 4 : index
    %c128_194 = arith.constant 128 : index
    %587 = vector.load %arg13[%c4_193, %c128_194] : memref<32x256xf32, #tpu.memory_space<vmem>>, vector<4x128xf32>
    %cst_195 = arith.constant dense<0.000000e+00> : vector<4x128xf32>
    %588 = tpu.matmul %580, %340, %cst_195 {dimension_numbers = #tpu.dot_dimension_numbers<[1], [0], [0], [1], [0, 0, 1, 1], [], []>} : vector<4x32xf32>, vector<32x128xf32>, vector<4x128xf32> -> vector<4x128xf32>
    %589 = arith.addf %586, %588 : vector<4x128xf32>
    %cst_196 = arith.constant dense<0.000000e+00> : vector<4x128xf32>
    %590 = tpu.matmul %583, %341, %cst_196 {dimension_numbers = #tpu.dot_dimension_numbers<[1], [0], [0], [1], [0, 0, 1, 1], [], []>} : vector<4x32xf32>, vector<32x128xf32>, vector<4x128xf32> -> vector<4x128xf32>
    %591 = arith.addf %587, %590 : vector<4x128xf32>
    %592 = vector.extract_strided_slice %589 {offsets = [0, 0], sizes = [4, 96], strides = [1, 1]} : vector<4x128xf32> to vector<4x96xf32>
    %593 = arith.negf %592 : vector<4x96xf32>
    %594 = math.exp %593 : vector<4x96xf32>
    %cst_197 = arith.constant 1.000000e+00 : f32
    %595 = vector.broadcast %cst_197 : f32 to vector<4x96xf32>
    %596 = arith.addf %595, %594 : vector<4x96xf32>
    %597 = arith.divf %595, %596 : vector<4x96xf32>
    %598 = vector.extract_strided_slice %591 {offsets = [0, 0], sizes = [4, 96], strides = [1, 1]} : vector<4x128xf32> to vector<4x96xf32>
    %599 = arith.negf %598 : vector<4x96xf32>
    %600 = math.exp %599 : vector<4x96xf32>
    %cst_198 = arith.constant 1.000000e+00 : f32
    %601 = vector.broadcast %cst_198 : f32 to vector<4x96xf32>
    %602 = arith.addf %601, %600 : vector<4x96xf32>
    %603 = arith.divf %601, %602 : vector<4x96xf32>
    %604 = vector.extract_strided_slice %589 {offsets = [0, 96], sizes = [4, 32], strides = [1, 1]} : vector<4x128xf32> to vector<4x32xf32>
    %605 = math.tanh %604 : vector<4x32xf32>
    %606 = vector.extract_strided_slice %591 {offsets = [0, 96], sizes = [4, 32], strides = [1, 1]} : vector<4x128xf32> to vector<4x32xf32>
    %607 = math.tanh %606 : vector<4x32xf32>
    %608 = vector.extract_strided_slice %597 {offsets = [0, 32], sizes = [4, 32], strides = [1, 1]} : vector<4x96xf32> to vector<4x32xf32>
    %609 = arith.mulf %608, %572 : vector<4x32xf32>
    %610 = vector.extract_strided_slice %597 {offsets = [0, 0], sizes = [4, 32], strides = [1, 1]} : vector<4x96xf32> to vector<4x32xf32>
    %611 = arith.mulf %610, %605 : vector<4x32xf32>
    %612 = arith.addf %609, %611 : vector<4x32xf32>
    %613 = vector.extract_strided_slice %603 {offsets = [0, 32], sizes = [4, 32], strides = [1, 1]} : vector<4x96xf32> to vector<4x32xf32>
    %614 = arith.mulf %613, %577 : vector<4x32xf32>
    %615 = vector.extract_strided_slice %603 {offsets = [0, 0], sizes = [4, 32], strides = [1, 1]} : vector<4x96xf32> to vector<4x32xf32>
    %616 = arith.mulf %615, %607 : vector<4x32xf32>
    %617 = arith.addf %614, %616 : vector<4x32xf32>
    %618 = vector.extract_strided_slice %597 {offsets = [0, 64], sizes = [4, 32], strides = [1, 1]} : vector<4x96xf32> to vector<4x32xf32>
    %619 = math.tanh %612 : vector<4x32xf32>
    %620 = arith.mulf %618, %619 : vector<4x32xf32>
    %621 = vector.extract_strided_slice %603 {offsets = [0, 64], sizes = [4, 32], strides = [1, 1]} : vector<4x96xf32> to vector<4x32xf32>
    %622 = math.tanh %617 : vector<4x32xf32>
    %623 = arith.mulf %621, %622 : vector<4x32xf32>
    %c24_199 = arith.constant 24 : index
    %c0_200 = arith.constant 0 : index
    %624 = vector.load %arg10[%c24_199, %c0_200] : memref<32x64xf32, #tpu.memory_space<vmem>>, vector<4x32xf32>
    tpu.vector_store %arg10[%c24_199, %c0_200], %620 {strides = array<i32>} : memref<32x64xf32, #tpu.memory_space<vmem>>, vector<4x32xf32>,
    %c4_201 = arith.constant 4 : index
    %c32_202 = arith.constant 32 : index
    %625 = vector.load %arg10[%c4_201, %c32_202] : memref<32x64xf32, #tpu.memory_space<vmem>>, vector<4x32xf32>
    tpu.vector_store %arg10[%c4_201, %c32_202], %623 {strides = array<i32>} : memref<32x64xf32, #tpu.memory_space<vmem>>, vector<4x32xf32>,
    %c28_203 = arith.constant 28 : index
    %c0_204 = arith.constant 0 : index
    %626 = vector.load %arg13[%c28_203, %c0_204] : memref<32x256xf32, #tpu.memory_space<vmem>>, vector<4x128xf32>
    %c0_205 = arith.constant 0 : index
    %c128_206 = arith.constant 128 : index
    %627 = vector.load %arg13[%c0_205, %c128_206] : memref<32x256xf32, #tpu.memory_space<vmem>>, vector<4x128xf32>
    %cst_207 = arith.constant dense<0.000000e+00> : vector<4x128xf32>
    %628 = tpu.matmul %620, %340, %cst_207 {dimension_numbers = #tpu.dot_dimension_numbers<[1], [0], [0], [1], [0, 0, 1, 1], [], []>} : vector<4x32xf32>, vector<32x128xf32>, vector<4x128xf32> -> vector<4x128xf32>
    %629 = arith.addf %626, %628 : vector<4x128xf32>
    %cst_208 = arith.constant dense<0.000000e+00> : vector<4x128xf32>
    %630 = tpu.matmul %623, %341, %cst_208 {dimension_numbers = #tpu.dot_dimension_numbers<[1], [0], [0], [1], [0, 0, 1, 1], [], []>} : vector<4x32xf32>, vector<32x128xf32>, vector<4x128xf32> -> vector<4x128xf32>
    %631 = arith.addf %627, %630 : vector<4x128xf32>
    %632 = vector.extract_strided_slice %629 {offsets = [0, 0], sizes = [4, 96], strides = [1, 1]} : vector<4x128xf32> to vector<4x96xf32>
    %633 = arith.negf %632 : vector<4x96xf32>
    %634 = math.exp %633 : vector<4x96xf32>
    %cst_209 = arith.constant 1.000000e+00 : f32
    %635 = vector.broadcast %cst_209 : f32 to vector<4x96xf32>
    %636 = arith.addf %635, %634 : vector<4x96xf32>
    %637 = arith.divf %635, %636 : vector<4x96xf32>
    %638 = vector.extract_strided_slice %631 {offsets = [0, 0], sizes = [4, 96], strides = [1, 1]} : vector<4x128xf32> to vector<4x96xf32>
    %639 = arith.negf %638 : vector<4x96xf32>
    %640 = math.exp %639 : vector<4x96xf32>
    %cst_210 = arith.constant 1.000000e+00 : f32
    %641 = vector.broadcast %cst_210 : f32 to vector<4x96xf32>
    %642 = arith.addf %641, %640 : vector<4x96xf32>
    %643 = arith.divf %641, %642 : vector<4x96xf32>
    %644 = vector.extract_strided_slice %629 {offsets = [0, 96], sizes = [4, 32], strides = [1, 1]} : vector<4x128xf32> to vector<4x32xf32>
    %645 = math.tanh %644 : vector<4x32xf32>
    %646 = vector.extract_strided_slice %631 {offsets = [0, 96], sizes = [4, 32], strides = [1, 1]} : vector<4x128xf32> to vector<4x32xf32>
    %647 = math.tanh %646 : vector<4x32xf32>
    %648 = vector.extract_strided_slice %637 {offsets = [0, 32], sizes = [4, 32], strides = [1, 1]} : vector<4x96xf32> to vector<4x32xf32>
    %649 = arith.mulf %648, %612 : vector<4x32xf32>
    %650 = vector.extract_strided_slice %637 {offsets = [0, 0], sizes = [4, 32], strides = [1, 1]} : vector<4x96xf32> to vector<4x32xf32>
    %651 = arith.mulf %650, %645 : vector<4x32xf32>
    %652 = arith.addf %649, %651 : vector<4x32xf32>
    %653 = vector.extract_strided_slice %643 {offsets = [0, 32], sizes = [4, 32], strides = [1, 1]} : vector<4x96xf32> to vector<4x32xf32>
    %654 = arith.mulf %653, %617 : vector<4x32xf32>
    %655 = vector.extract_strided_slice %643 {offsets = [0, 0], sizes = [4, 32], strides = [1, 1]} : vector<4x96xf32> to vector<4x32xf32>
    %656 = arith.mulf %655, %647 : vector<4x32xf32>
    %657 = arith.addf %654, %656 : vector<4x32xf32>
    %658 = vector.extract_strided_slice %637 {offsets = [0, 64], sizes = [4, 32], strides = [1, 1]} : vector<4x96xf32> to vector<4x32xf32>
    %659 = math.tanh %652 : vector<4x32xf32>
    %660 = arith.mulf %658, %659 : vector<4x32xf32>
    %661 = vector.extract_strided_slice %643 {offsets = [0, 64], sizes = [4, 32], strides = [1, 1]} : vector<4x96xf32> to vector<4x32xf32>
    %662 = math.tanh %657 : vector<4x32xf32>
    %663 = arith.mulf %661, %662 : vector<4x32xf32>
    %c28_211 = arith.constant 28 : index
    %c0_212 = arith.constant 0 : index
    %664 = vector.load %arg10[%c28_211, %c0_212] : memref<32x64xf32, #tpu.memory_space<vmem>>, vector<4x32xf32>
    tpu.vector_store %arg10[%c28_211, %c0_212], %660 {strides = array<i32>} : memref<32x64xf32, #tpu.memory_space<vmem>>, vector<4x32xf32>,
    %c0_213 = arith.constant 0 : index
    %c32_214 = arith.constant 32 : index
    %665 = vector.load %arg10[%c0_213, %c32_214] : memref<32x64xf32, #tpu.memory_space<vmem>>, vector<4x32xf32>
    tpu.vector_store %arg10[%c0_213, %c32_214], %663 {strides = array<i32>} : memref<32x64xf32, #tpu.memory_space<vmem>>, vector<4x32xf32>,
    return
  }
  func.func @transform_0(%arg0: i32) -> (i32, i32) {
    %c0_i32 = arith.constant 0 : i32
    %c0_i32_0 = arith.constant 0 : i32
    return %arg0, %c0_i32 : i32, i32
  }
  func.func @transform_1(%arg0: i32) -> (i32, i32) {
    %c0_i32 = arith.constant 0 : i32
    %c0_i32_0 = arith.constant 0 : i32
    %c0_i32_1 = arith.constant 0 : i32
    return %c0_i32, %c0_i32_0 : i32, i32
  }
  func.func @transform_2(%arg0: i32) -> (i32, i32) {
    %c0_i32 = arith.constant 0 : i32
    %c0_i32_0 = arith.constant 0 : i32
    %c0_i32_1 = arith.constant 0 : i32
    return %c0_i32, %c0_i32_0 : i32, i32
  }
  func.func @transform_3(%arg0: i32) -> (i32, i32) {
    %c0_i32 = arith.constant 0 : i32
    %c0_i32_0 = arith.constant 0 : i32
    %c0_i32_1 = arith.constant 0 : i32
    return %c0_i32, %c0_i32_0 : i32, i32
  }
  func.func @transform_4(%arg0: i32) -> (i32, i32) {
    %c0_i32 = arith.constant 0 : i32
    %c0_i32_0 = arith.constant 0 : i32
    %c0_i32_1 = arith.constant 0 : i32
    return %c0_i32, %c0_i32_0 : i32, i32
  }
  func.func @transform_5(%arg0: i32) -> (i32, i32) {
    %c0_i32 = arith.constant 0 : i32
    %c0_i32_0 = arith.constant 0 : i32
    %c0_i32_1 = arith.constant 0 : i32
    return %c0_i32, %c0_i32_0 : i32, i32
  }
  func.func @transform_6(%arg0: i32) -> (i32, i32) {
    %c0_i32 = arith.constant 0 : i32
    %c0_i32_0 = arith.constant 0 : i32
    %c0_i32_1 = arith.constant 0 : i32
    return %c0_i32, %c0_i32_0 : i32, i32
  }
  func.func @transform_7(%arg0: i32) -> (i32, i32) {
    %c0_i32 = arith.constant 0 : i32
    %c0_i32_0 = arith.constant 0 : i32
    %c0_i32_1 = arith.constant 0 : i32
    return %c0_i32, %c0_i32_0 : i32, i32
  }
  func.func @transform_8(%arg0: i32) -> (i32, i32) {
    %c0_i32 = arith.constant 0 : i32
    %c0_i32_0 = arith.constant 0 : i32
    %c0_i32_1 = arith.constant 0 : i32
    return %c0_i32, %c0_i32_0 : i32, i32
  }
  func.func @transform_9(%arg0: i32) -> (i32, i32) {
    %c0_i32 = arith.constant 0 : i32
    %c0_i32_0 = arith.constant 0 : i32
    return %arg0, %c0_i32 : i32, i32
  }
}

</mosaic_0001>

<bundles_post_ra>
// kernel: bilstm_forward_batched.1
= control target key start
LH: loop header
LB: loop body
LE: loop exit
PB: predicated region body
PF: predicated region fallthrough
CT: control target
= control target key end

     0   :  { %14 = vsyncpa [#allocation6], 0  ;;  %s6482_s0 = inlined_call_operand.vmem [shape: f32[64,16], index: 0, kind: input, shape index: {}]   ;;  %s6483_s1 = inlined_call_operand.hbm [shape: f32[16,256], index: 1, kind: input, shape index: {}]   ;;  %s6484_s2 = inlined_call_operand.hbm [shape: f32[32,128], index: 2, kind: input, shape index: {}]   ;;  %s6485_s3 = inlined_call_operand.hbm [shape: f32[32,128], index: 3, kind: input, shape index: {}]   ;;  %s6486_s4 = inlined_call_operand.vmem [shape: f32[1,256], index: 4, kind: input, shape index: {}]   ;;  %s6487_s5 = inlined_call_operand.vmem [shape: f32[64,256], index: 5, kind: input, shape index: {}]   ;;  %s6488_s6 = inlined_call_operand.hbm [shape: f32[32,128], index: 6, kind: input, shape index: {}]   ;;  %s6489_s7 = inlined_call_operand.vmem [shape: f32[32,128], index: 7, kind: input, shape index: {}]   ;;  %s6490_s8 = inlined_call_operand.vmem [shape: f32[1,256], index: 8, kind: input, shape index: {}]   ;;  %s6491_s9 = inlined_call_operand.vmem [shape: f32[64,64], index: 9, kind: output, shape index: {}]  }
   0x1   :  { %15 = vsyncpa [#allocation8], 0 }
   0x2   :  { %16 = vsyncpa [#allocation11], 0  ;;  %s5584_s30 = smov 0  }
   0x3 LB: > { %s5520_s10 = smov [#allocation7]   ;;  %s6492_s12 = sadd.s32 4294967295, %s5518_s30   ;;  %s5518_s30 = sphi %s5584_s30, %s22_s30  }
   0x4   : > { %s272_s11 = sshll.u32 %s5520_s10, 4  ;;  %p4264_p0 = scmp.ge.s32.totalorder %s5518_s30, 1  ;;  %s5598_s11 = int_to_ptr.vmem [resolvable:$true] %s272_s11 }
   0x5   : > { %p247_p1 = scmp.lt.s32.totalorder %s5518_s30, 3  ;;  %p5594_p2 = scmp.eq.s32.totalorder %s6492_s12, 0 }
   0x6   : > { %s5521_s15 = smov [#allocation5]   ;;  %s5522_s18 = smov [#allocation9]  }
   0x7   : > { %s6498_s13 = scalar_select %p5594_p2, 1, 0 }
   0x8   : > { %p5600_p3 = pnand %p4264_p0, %p247_p1  ;;  %s259_s16 = sshll.u32 %s5521_s15, 4  ;;  %s5606_s16 = int_to_ptr.vmem [resolvable:$true] %s259_s16 }
   0x9   : > { %s5614_s19 = sshll.u32 %s5522_s18, 4  ;;  %s5388_s22 = scalar_lea.hbm %s6484_s2, 512  ;;  %s286_s19 = int_to_ptr.vmem [resolvable:$true] %s5614_s19 }
   0xa   : > { %s6499_s14 = scalar_select %p5600_p3, 1, 0 }
   0xb   : > { %p5089_p4 = pneg %p5600_p3  ;;  %p5389_p6 = scmp.ne.s32.totalorder %s6484_s2, %s5388_s22 }
   0xc   : > { %p5395_p10 = scmp.lt.u32.totalorder %s5388_s22, %s6484_s2 }
   0xd   : > { %p5610_p5 = pnand %p5594_p2, %p5089_p4 }
   0xf   : > { %p5624_p7 = pneg %p5610_p5 }
  0x11   : > { %p5391_p8 = pnand %p5624_p7, %p5389_p6 }
  0x13   : > { %p5392_p9 = pneg %p5391_p8 }
  0x15   : > { %p5397_p11 = pnand %p5395_p10, %p5392_p9 }
  0x17   : > { %5400 = shalt.err (!%p5397_p11)
}
  0x18   : > { %s5401_s28 = scalar_lea.vmem %s5598_s11, 512  ;;  %p5409_p1 = scmp.lt.s32.totalorder %s5598_s11, %s5598_s11 }
  0x19   : > { %p5402_p12 = scmp.ne.s32.totalorder %s5598_s11, %s5401_s28  ;;  %p5410_p4 = scmp.lt.s32.totalorder %s5401_s28, %s5401_s28 }
  0x1b   : > { %p5404_p13 = pnand %p5402_p12, %p5624_p7  ;;  %p5411_p6 = por %p5410_p4, %p5409_p1 }
  0x1d   : > { %p5405_p0 = pneg %p5404_p13 }
  0x1f   : > { %p5412_p8 = pnand %p5411_p6, %p5405_p0 }
  0x21   : > { %5415 = shalt.err (!%p5412_p8)
}
  0x22   : > { %s6493_s29 = smov 128   ;;  %s5524_s10 = smov 8  }
  0x23   : > { %5095 = dma.hbm_to_vmem [thread:$0]  (!%p5610_p5), %s6484_s2, 512, %s5598_s11, [#allocation8], %s6493_s29, %s6493_s29, %s5524_s10  }
  0x24   : > { %s5416_s22 = scalar_lea.hbm %s6483_s1, 512 }
  0x25   : > { %p5417_p9 = scmp.ne.s32.totalorder %s6483_s1, %s5416_s22  ;;  %p5423_p12 = scmp.lt.u32.totalorder %s5416_s22, %s6483_s1 }
  0x27   : > { %p5419_p10 = pnand %p5417_p9, %p5624_p7 }
  0x29   : > { %p5420_p11 = pneg %p5419_p10 }
  0x2b   : > { %p5425_p13 = pnand %p5423_p12, %p5420_p11 }
  0x2d   : > { %5428 = shalt.err (!%p5425_p13)
}
  0x2e   : > { %s5429_s11 = scalar_lea.vmem %s5606_s16, 512  ;;  %p5437_p6 = scmp.lt.s32.totalorder %s5606_s16, %s5606_s16 }
  0x2f   : > { %p5430_p0 = scmp.ne.s32.totalorder %s5606_s16, %s5429_s11  ;;  %p5438_p8 = scmp.lt.s32.totalorder %s5429_s11, %s5429_s11 }
  0x31   : > { %p5432_p1 = pnand %p5430_p0, %p5624_p7  ;;  %p5439_p9 = por %p5438_p8, %p5437_p6 }
  0x33   : > { %p5433_p4 = pneg %p5432_p1 }
  0x35   : > { %p5440_p10 = pnand %p5439_p9, %p5433_p4 }
  0x37   : > { %5443 = shalt.err (!%p5440_p10)
}
  0x38   : > { %s5525_s28 = smov 256   ;;  %s5526_s15 = smov 16  }
  0x39   : > { %5092 = dma.hbm_to_vmem [thread:$0]  (!%p5610_p5), %s6483_s1, 512, %s5606_s16, [#allocation6], %s5525_s28, %s5525_s28, %s5526_s15  }
  0x3a   : > { %s5527_s21 = smov [#allocation10]   ;;  %s5444_s26 = scalar_lea.hbm %s6485_s3, 512 }
  0x3b   : > { %s304_s22 = sshll.u32 %s5527_s21, 4  ;;  %p5445_p11 = scmp.ne.s32.totalorder %s6485_s3, %s5444_s26  ;;  %s305_s22 = int_to_ptr.vmem [resolvable:$true] %s304_s22 }
  0x3c   : > { %p5451_p0 = scmp.lt.u32.totalorder %s5444_s26, %s6485_s3 }
  0x3d   : > { %p5447_p12 = pnand %p5445_p11, %p5624_p7 }
  0x3f   : > { %p5448_p13 = pneg %p5447_p12 }
  0x41   : > { %p5453_p1 = pnand %p5451_p0, %p5448_p13 }
  0x43   : > { %5456 = shalt.err (!%p5453_p1)
}
  0x44   : > { %s5457_s16 = scalar_lea.vmem %s286_s19, 512  ;;  %p5465_p9 = scmp.lt.s32.totalorder %s286_s19, %s286_s19 }
  0x45   : > { %p5458_p4 = scmp.ne.s32.totalorder %s286_s19, %s5457_s16  ;;  %p5466_p10 = scmp.lt.s32.totalorder %s5457_s16, %s5457_s16 }
  0x47   : > { %p5460_p6 = pnand %p5458_p4, %p5624_p7  ;;  %p5467_p2 = por %p5466_p10, %p5465_p9 }
  0x49   : > { %p5461_p8 = pneg %p5460_p6 }
  0x4b   : > { %p5468_p3 = pnand %p5467_p2, %p5461_p8 }
  0x4d   : > { %5471 = shalt.err (!%p5468_p3)
}
  0x4e   : > { %s6502_s28 = smov 128   ;;  %s5472_s20 = scalar_lea.hbm %s6488_s6, 512 }
  0x4f   : > { %5098 = dma.hbm_to_vmem [thread:$0]  (!%p5610_p5), %s6485_s3, 512, %s286_s19, [#allocation8], %s6502_s28, %s6502_s28, %s5524_s10  }
  0x50   : > { %p5473_p2 = scmp.ne.s32.totalorder %s6488_s6, %s5472_s20  ;;  %p5479_p12 = scmp.lt.u32.totalorder %s5472_s20, %s6488_s6 }
  0x52   : > { %p5475_p3 = pnand %p5473_p2, %p5624_p7 }
  0x54   : > { %p5476_p11 = pneg %p5475_p3 }
  0x56   : > { %p5481_p13 = pnand %p5479_p12, %p5476_p11 }
  0x58   : > { %5484 = shalt.err (!%p5481_p13)
}
  0x59   : > { %s5485_s27 = scalar_lea.vmem %s305_s22, 512  ;;  %p5493_p6 = scmp.lt.s32.totalorder %s305_s22, %s305_s22 }
  0x5a   : > { %p5486_p0 = scmp.ne.s32.totalorder %s305_s22, %s5485_s27  ;;  %p5494_p8 = scmp.lt.s32.totalorder %s5485_s27, %s5485_s27 }
  0x5c   : > { %p5488_p1 = pnand %p5486_p0, %p5624_p7  ;;  %p5495_p9 = por %p5494_p8, %p5493_p6 }
  0x5e   : > { %p5489_p4 = pneg %p5488_p1 }
  0x60   : > { %p5496_p10 = pnand %p5495_p9, %p5489_p4 }
  0x62   : > { %5499 = shalt.err (!%p5496_p10)
}
  0x63   : > { %5101 = dma.hbm_to_vmem [thread:$0]  (!%p5610_p5), %s6488_s6, 512, %s305_s22, [#allocation11], %s6502_s28, %s6502_s28, %s5524_s10  }
  0x64   : > { %p6503_p2 = scmp.ne.s32.totalorder %s6499_s14, 0 }
  0x65   : > { %p6504_p7 = scmp.ne.s32.totalorder (!%p6503_p2), %s6498_s13, 0 }
  0x66   : > { %335 = sbr.rel (%p6503_p2) target bundleno = 11438 (0x2cae), region = 56 }
  0x6d   : > { %5505 = dma.done.wait (%p6504_p7), [#allocation6], 512  }
  0x6e   : > { %5507 = vsyncadd (%p6504_p7), [#allocation6], 4294966784 }
  0x6f   : > { %5509 = dma.done.wait (%p6504_p7), [#allocation8], 1024  }
  0x70   : > { %5511 = vsyncadd (%p6504_p7), [#allocation8], 4294966272 }
  0x71   : > { %5513 = dma.done.wait (%p6504_p7), [#allocation11], 512  }
  0x72   : > { %5515 = vsyncadd (%p6504_p7), [#allocation11], 4294966784  ;;  %s6505_s14 = sadd.s32 4294967295, %s5518_s30   ;;  %v5528_v0 = vmov 0.0   ;;  %v5529_v1 = vmov 0.0|0.0   ;;  %vm5530_vm0 = vmmov 0   ;;  %v405_v24 = vlaneseq }
  0x73   : > { %s4275_s17 = sshll.u32 %s6505_s14, 2  ;;  %492 = vmatprep.mubr.f32.mxu0 %v5528_v0  ;;  %4865 = vmatprep.subr.bf16.mxu1 %v5529_v1  ;;  %v400_v2 = vld [vmem:[#allocation5 + $0x8] sm:$0xff]  ;;  %v402_v3 = vld [vmem:[#allocation5 + $0x18] sm:$0xff]  ;;  %v399_v4 = vld [vmem:[#allocation5] sm:$0xff]  ;;  %vm415_vm1 = vcmask 130048   ;;  %s5531_s12 = smov 32  }
  0x74   : > { %p384_p5 = scmp.lt.s32.totalorder %s4275_s17, 7  ;;  %4517 = vmatprep.mubr.msk.f32.mxu1 %vm5530_vm0, %v5528_v0  ;;  %v4861_v5 = vpack.c.bf16 %v402_v3, %v400_v2  ;;  %v401_v6 = vld [vmem:[#allocation5 + $0x10] sm:$0xff]  ;;  %v525_v7 = vld [vmem:[#allocation7] sm:$0xff]  ;;  %v526_v9 = vld [vmem:[#allocation7 + $0x8] sm:$0xff]  ;;  %v5788_v25 = vshrl.u32 %v405_v24, 7  ;;  %s5532_s29 = smov 64  }
  0x75   : > { %v4863_v8 = vpack.c.bf16 %v401_v6, %v399_v4  ;;  %v527_v10 = vld [vmem:[#allocation7 + $0x10] sm:$0xff]  ;;  %v5744_v11 = vpack.c.bf16 %v526_v9, %v525_v7  ;;  %v528_v12 = vld [vmem:[#allocation7 + $0x18] sm:$0xff]  ;;  %v529_v15 = vld [vmem:[#allocation9] sm:$0xff]  ;;  %vm535_vm2 = vcmask 261120   ;;  %vm736_vm3 = vcmask 257024   ;;  %s5533_s15 = smov 96  }
  0x76   : > { %s6507_s17 = smov (!%p384_p5, %s4275_s17), 7  ;;  %4862 = vmatprep.subr.bf16.mxu0 %v4861_v5  ;;  %v5748_v14 = vpack.c.bf16 %v528_v12, %v527_v10  ;;  %v530_v16 = vld [vmem:[#allocation9 + $0x8] sm:$0xff]  ;;  %v531_v19 = vld [vmem:[#allocation9 + $0x10] sm:$0xff]  ;;  %v532_v20 = vld [vmem:[#allocation9 + $0x18] sm:$0xff]  ;;  %v407_v26 = vsub.s32 0, %v5788_v25  ;;  %v411_v28 = vsub.s32 1, %v5788_v25 }
  0x77   : > { %s4276_s13 = sshll.u32 %s6507_s17, 3  ;;  %4864 = vmatpush1.bf16.msra.mxu0 %v4863_v8  ;;  %4867 = vmatpush3.bf16.msra.mxu1 %v5744_v11  ;;  %v5757_v18 = vpack.c.bf16 %v530_v16, %v529_v15  ;;  %v5766_v22 = vpack.c.bf16 %v532_v20, %v531_v19  ;;  %v403_v27 = vld [vmem:[%s6486_s4] sm:$0x3]  ;;  %vm956_vm4 = vcmask 261124   ;;  %vm742_vm5 = vcmask 523524  }
  0x78   : > { %s5742_s22 = scalar_lea.vmem %s6482_s0, %s4276_s13  ;;  %4877 = vmatprep.subr.bf16.mxu0 %v5529_v1  ;;  %4868 = vmatprep.subr.bf16.mxu1 %v5529_v1  ;;  %v408_v29 = vrot.slane %v403_v27, %v407_v26  ;;  %v412_v30 = vrot.slane %v403_v27, %v411_v28  ;;  %vm962_vm6 = vcmask 519424   ;;  %vm2310_vm7 = vcmask 523264   ;;  %s6208_s28 = scalar_lea.vmem %s6491_s9, %s4276_s13 }
  0x79   : > { %v395_v13 = vld [vmem:[%s5742_s22] sm:$0xff]  ;;  %v396_v17 = vld [vmem:[%s5742_s22 + $0x8] sm:$0xff]  ;;  %v397_v21 = vld [vmem:[%s5742_s22 + $0x10] sm:$0xff] }
  0x7a   : > { %4279 = vmatmul.mubr.msk.f32.vlgmr.msra.gmra.mrb[0].mxu0 %vm415_vm1, %v395_v13  ;;  %v398_v23 = vld [vmem:[%s5742_s22 + $0x18] sm:$0xff] }
  0x7b   : > { %498 = vmatprep.mubr.f32.mxu0 %v5528_v0  ;;  %4879 = vmatpush3.bf16.msra.mxu0 %v5744_v11 }
  0x7c   : > { %4870 = vmatpush3.bf16.msra.mxu1 %v5748_v14  ;;  %4880 = vmatprep.subr.bf16.mxu0 %v5529_v1 }
  0x7d   : > { %4871 = vmatprep.subr.bf16.mxu1 %v5529_v1 }
  0x7e   : > { %4280 = vmatmul.mubr.msk.f32.gmra.mrb[2].mxu0 %vm415_vm1, %v396_v17 }
  0x7f   : > { %504 = vmatprep.mubr.f32.mxu0 %v5528_v0  ;;  %4518 = vmatmul.mubr.f32.vlgmr.msra.gmra.mrb[0].mxu1 %v5528_v0 }
  0x80   : > { %4873 = vmatpush3.bf16.msra.mxu1 %v5757_v18  ;;  %4528 = vmatprep.mubr.msk.f32.mxu1 %vm5530_vm0, %v5528_v0 }
  0x81   : > { %4874 = vmatprep.subr.bf16.mxu1 %v5529_v1  ;;  %4882 = vmatpush3.bf16.msra.mxu0 %v5748_v14 }
  0x82   : > { %4281 = vmatmul.mubr.msk.f32.gmra.mrb[4].mxu0 %vm415_vm1, %v397_v21  ;;  %4889 = vmatprep.subr.bf16.mxu0 %v5529_v1 }
  0x83   : > { %510 = vmatprep.mubr.f32.mxu0 %v5528_v0 }
  0x84   : > { %4876 = vmatpush3.bf16.msra.mxu1 %v5766_v22 }
  0x85   : > { %4883 = vmatprep.subr.bf16.mxu1 %v5529_v1 }
  0x86   : > { %4282 = vmatmul.mubr.msk.f32.gmra.mrb[6].mxu0 %vm415_vm1, %v398_v23 }
  0x87   : > { %4529 = vmatmul.mubr.f32.vlgmr.msra.gmra.mrb[2].mxu1 %v5528_v0  ;;  %4539 = vmatprep.mubr.msk.f32.mxu0 %vm5530_vm0, %v5528_v0 }
  0x88   : > { %4885 = vmatpush3.bf16.msra.mxu1 %v5757_v18  ;;  %4550 = vmatprep.mubr.msk.f32.mxu1 %vm5530_vm0, %v5528_v0 }
  0x89   : > { %4886 = vmatprep.subr.bf16.mxu1 %v5529_v1 }
  0x8c   : > { %4888 = vmatpush3.bf16.msra.mxu1 %v5766_v22 }
  0x8d   : > { %4895 = vmatprep.subr.bf16.mxu1 %v5529_v1 }
 0x14d   : > { %v494_v31 = vpop.f32.mrb[0].mxu0 }
 0x14e   : > { %v495_v32 = vadd.f32 %v494_v31, %v408_v29  ;;  %v496_v33 = vpop.f32.mrb[1].mxu0 }
 0x14f   : > { %v497_v34 = vadd.f32 %v496_v33, %v412_v30 }
 0x150   : > { %517 = vst [vmem:[#allocation4] sm:$0xff] %v495_v32 }
 0x151   : > { %518 = vst [vmem:[#allocation4 + $0x8] sm:$0xff] %v497_v34  ;;  %v500_v35 = vpop.f32.mrb[2].mxu0 }
 0x152   : > { %v501_v36 = vadd.f32 %v500_v35, %v408_v29  ;;  %v502_v37 = vpop.f32.mrb[3].mxu0  ;;  %v605_v38 = vpop.f32.mrb[0].mxu1 }
 0x153   : > { %v503_v39 = vadd.f32 %v502_v37, %v412_v30  ;;  %v4519_v40 = vpop.f32.mrb[1].mxu1 }
 0x154   : > { %519 = vst [vmem:[#allocation4 + $0x10] sm:$0xff] %v501_v36 }
 0x155   : > { %520 = vst [vmem:[#allocation4 + $0x18] sm:$0xff] %v503_v39  ;;  %v506_v41 = vpop.f32.mrb[4].mxu0 }
 0x156   : > { %v507_v42 = vadd.f32 %v506_v41, %v408_v29  ;;  %v508_v43 = vpop.f32.mrb[5].mxu0 }
 0x157   : > { %v509_v44 = vadd.f32 %v508_v43, %v412_v30  ;;  %v533_v52 = vld [vmem:[#allocation4] sm:$0xf]  ;;  %v744_v37 = vld [vmem:[#allocation4] sm:$0xf0] }
 0x158   : > { %521 = vst [vmem:[#allocation4 + $0x20] sm:$0xff] %v507_v42  ;;  %v609_v55 = vadd.f32 %v605_v38, %v533_v52 }
 0x159   : > { %522 = vst [vmem:[#allocation4 + $0x28] sm:$0xff] %v509_v44  ;;  %v512_v45 = vpop.f32.mrb[6].mxu0 }
 0x15a   : > { %v513_v46 = vadd.f32 %v512_v45, %v408_v29  ;;  %v514_v47 = vpop.f32.mrb[7].mxu0  ;;  %v676_v48 = vpop.f32.mrb[2].mxu1  ;;  %v4283_v59 = vmul.f32 -1.442695, %v609_v55 }
 0x15b   : > { %v515_v49 = vadd.f32 %v514_v47, %v412_v30  ;;  %v4530_v50 = vpop.f32.mrb[3].mxu1  ;;  %v681_v51 = vrot.slane %v676_v48, 4 }
 0x15c   : > { %523 = vst [vmem:[#allocation4 + $0x30] sm:$0xff] %v513_v46 }
 0x15d   : > { %524 = vst [vmem:[#allocation4 + $0x38] sm:$0xff] %v515_v49 }
 0x164   : > { %v534_v53 = vld [vmem:[#allocation4 + $0x38] sm:$0xf0]  ;;  %v745_v30 = vld [vmem:[#allocation4 + $0x38] sm:$0xf] }
 0x165   : > { %v683_v54 = vadd.f32 %v681_v51, %v534_v53 }
 0x167   : > { %5132 = vtanh.f32 %v683_v54  ;;  %v4284_v58 = vmul.f32 -1.442695, %v683_v54 }
 0x168   : > { %5134 = vtanh.f32 %v609_v55 }
 0x169   : > { %5136 = vpow2.f32 %v4284_v58 }
 0x16a   : > { %5138 = vpow2.f32 %v4283_v59 }
 0x171   : > { %v5133_v56 = vpop.eup %5132 }
 0x172   : > { %711 = vrot.lane.b32.xlu0 %v5133_v56, %s5531_s12  ;;  %v5135_v57 = vpop.eup %5134 }
 0x173   : > { %v5137_v60 = vpop.eup %5136 }
 0x174   : > { %v693_v61 = vadd.f32 1.0, %v5137_v60  ;;  %v5139_v62 = vpop.eup %5138 }
 0x175   : > { %v687_v63 = vadd.f32 1.0, %v5139_v62 }
 0x176   : > { %700 = vrot.lane.b32.xlu0 %v5135_v57, %s5531_s12  ;;  %5140 = vrcp.f32 %v693_v61 }
 0x177   : > { %5142 = vrcp.f32 %v687_v63 }
 0x180   : > { %v5141_v2 = vpop.eup %5140 }
 0x181   : > { %v5143_v5 = vpop.eup %5142  ;;  %v709_v8 = vmul.f32 0.0, %v5141_v2 }
 0x182   : > { %v698_v12 = vmul.f32 0.0, %v5143_v5 }
 0x1e4   : > { %v712_v3 = vpop.permute.xlu0 %711 }
 0x1e5   : > { %v714_v4 = vmul.f32 %v5141_v2, %v712_v3 }
 0x1e7   : > { %716 = vrot.lane.b32.xlu1 %v714_v4, %s5531_s12 }
 0x1e8   : > { %v701_v6 = vpop.permute.xlu0 %700 }
 0x1e9   : > { %v703_v7 = vmul.f32 %v5143_v5, %v701_v6 }
 0x1eb   : > { %705 = vrot.lane.b32.xlu1 %v703_v7, %s5531_s12 }
 0x259   : > { %v717_v9 = vpop.permute.xlu1 %716 }
 0x25a   : > { %v5803_v10 = vadd.f32 %v717_v9, %v709_v8 }
 0x25c   : > { %5144 = vtanh.f32 %v5803_v10  ;;  %v927_v53 = vrot.slane %v5803_v10, 4 }
 0x25d   : > { %v706_v13 = vpop.permute.xlu1 %705 }
 0x25e   : > { %v5806_v15 = vadd.f32 %v706_v13, %v698_v12  ;;  %v965_v12 = vld [vmem:[#allocation4 + $0x28] sm:$0xf0] }
 0x260   : > { %5146 = vtanh.f32 %v5806_v15  ;;  %v913_v56 = vrot.slane %v5806_v15, 4  ;;  %v964_v15 = vld [vmem:[#allocation4 + $0x10] sm:$0xf] }
 0x266   : > { %v5145_v16 = vpop.eup %5144 }
 0x267   : > { %728 = vrot.lane.b32.xlu0 %v5145_v16, %s5531_s12 }
 0x26a   : > { %v5147_v17 = vpop.eup %5146 }
 0x26b   : > { %722 = vrot.lane.b32.xlu1 %v5147_v17, %s5531_s12 }
 0x2d9   : > { %v729_v19 = vpop.permute.xlu0 %728 }
 0x2da   : > { %v5811_v20 = vmul.f32 %v5141_v2, %v729_v19 }
 0x2dc   : > { %v822_v21 = vrot.slane %v5811_v20, 4 }
 0x2dd   : > { %v723_v23 = vpop.permute.xlu1 %722 }
 0x2de   : > { %v725_v24 = vmul.f32 %v5143_v5, %v723_v23  ;;  %823 = vrot.lane.b32.xlu0 %v822_v21, %s5532_s29 }
 0x2e0   : > { %733 = vrot.lane.b32.xlu1 %v725_v24, %s5532_s29 }
 0x350   : > { %v824_v27 = vpop.permute.xlu0 %823 }
 0x351   : > { %4551 = vmatmul.mubr.msk.f32.vlgmr.msra.gmra.mrb[4].mxu1 %vm535_vm2, %v824_v27 }
 0x352   : > { %v734_v29 = vpop.permute.xlu1 %733  ;;  %4897 = vmatpush3.bf16.msra.mxu1 %v5757_v18  ;;  %4572 = vmatprep.mubr.msk.f32.mxu1 %vm5530_vm0, %v5528_v0 }
 0x353   : > { %737 = vst.msk [vmem:[#allocation2] sm:$0xf] %vm736_vm3, %v734_v29  ;;  %4540 = vmatmul.mubr.msk.f32.vlgmr.msra.gmra.mrb[8].mxu0 %vm535_vm2, %v734_v29  ;;  %4898 = vmatprep.subr.bf16.mxu1 %v5529_v1 }
 0x354   : > { %4891 = vmatpush3.bf16.msra.mxu0 %v5744_v11  ;;  %4561 = vmatprep.mubr.msk.f32.mxu0 %vm5530_vm0, %v5528_v0 }
 0x355   : > { %4892 = vmatprep.subr.bf16.mxu0 %v5529_v1 }
 0x356   : > { %4900 = vmatpush3.bf16.msra.mxu1 %v5766_v22 }
 0x357   : > { %4907 = vmatprep.subr.bf16.mxu1 %v5529_v1 }
 0x358   : > { %4894 = vmatpush3.bf16.msra.mxu0 %v5748_v14 }
 0x359   : > { %4901 = vmatprep.subr.bf16.mxu0 %v5529_v1 }
 0x424   : > { %v893_v31 = vpop.f32.mrb[4].mxu1 }
 0x425   : > { %v897_v32 = vadd.f32 %v893_v31, %v745_v30  ;;  %v4552_v33 = vpop.f32.mrb[5].mxu1 }
 0x426   : > { %v814_v34 = vpop.f32.mrb[8].mxu0 }
 0x427   : > { %5148 = vtanh.f32 %v897_v32  ;;  %v819_v35 = vrot.slane %v814_v34, 4  ;;  %v4541_v36 = vpop.f32.mrb[9].mxu0  ;;  %v4288_v41 = vmul.f32 -1.442695, %v897_v32 }
 0x429   : > { %v821_v38 = vadd.f32 %v819_v35, %v744_v37 }
 0x42b   : > { %5150 = vtanh.f32 %v821_v38  ;;  %v4287_v42 = vmul.f32 -1.442695, %v821_v38 }
 0x42c   : > { %5152 = vpow2.f32 %v4288_v41 }
 0x42d   : > { %5154 = vpow2.f32 %v4287_v42 }
 0x431   : > { %v5149_v39 = vpop.eup %5148 }
 0x432   : > { %931 = vrot.lane.b32.xlu0 %v5149_v39, %s5531_s12 }
 0x435   : > { %v5151_v40 = vpop.eup %5150 }
 0x436   : > { %917 = vrot.lane.b32.xlu1 %v5151_v40, %s5531_s12  ;;  %v5153_v43 = vpop.eup %5152 }
 0x437   : > { %v907_v44 = vadd.f32 1.0, %v5153_v43  ;;  %v5155_v45 = vpop.eup %5154 }
 0x438   : > { %v901_v46 = vadd.f32 1.0, %v5155_v45 }
 0x439   : > { %5156 = vrcp.f32 %v907_v44 }
 0x43a   : > { %5158 = vrcp.f32 %v901_v46 }
 0x443   : > { %v5157_v47 = vpop.eup %5156 }
 0x444   : > { %v5159_v50 = vpop.eup %5158  ;;  %v929_v54 = vmul.f32 %v5157_v47, %v927_v53 }
 0x445   : > { %v915_v58 = vmul.f32 %v5159_v50, %v913_v56  ;;  %v1185_v56 = vld [vmem:[#allocation4 + $0x28] sm:$0xf] }
 0x4a4   : > { %v932_v48 = vpop.permute.xlu0 %931 }
 0x4a5   : > { %v934_v49 = vmul.f32 %v5157_v47, %v932_v48 }
 0x4a7   : > { %936 = vrot.lane.b32.xlu0 %v934_v49, %s5531_s12 }
 0x4a8   : > { %v918_v51 = vpop.permute.xlu1 %917 }
 0x4a9   : > { %v920_v52 = vmul.f32 %v5159_v50, %v918_v51 }
 0x4ab   : > { %922 = vrot.lane.b32.xlu1 %v920_v52, %s5531_s12 }
 0x519   : > { %v937_v55 = vpop.permute.xlu0 %936 }
 0x51a   : > { %v5837_v57 = vadd.f32 %v937_v55, %v929_v54 }
 0x51c   : > { %5160 = vtanh.f32 %v5837_v57  ;;  %v1149_v39 = vrot.slane %v5837_v57, 4 }
 0x51d   : > { %v923_v59 = vpop.permute.xlu1 %922 }
 0x51e   : > { %v5840_v60 = vadd.f32 %v923_v59, %v915_v58 }
 0x520   : > { %5162 = vtanh.f32 %v5840_v60  ;;  %v1135_v42 = vrot.slane %v5840_v60, 4 }
 0x526   : > { %v5161_v61 = vpop.eup %5160 }
 0x527   : > { %948 = vrot.lane.b32.xlu0 %v5161_v61, %s5531_s12 }
 0x52a   : > { %v5163_v62 = vpop.eup %5162 }
 0x52b   : > { %942 = vrot.lane.b32.xlu1 %v5163_v62, %s5531_s12 }
 0x599   : > { %v949_v63 = vpop.permute.xlu0 %948 }
 0x59a   : > { %v5845_v2 = vmul.f32 %v5157_v47, %v949_v63  ;;  %v1184_v63 = vld [vmem:[#allocation4 + $0x10] sm:$0xf0] }
 0x59c   : > { %1042 = vrot.lane.b32.xlu0 %v5845_v2, %s5532_s29 }
 0x59d   : > { %v943_v3 = vpop.permute.xlu1 %942 }
 0x59e   : > { %v5849_v4 = vmul.f32 %v5159_v50, %v943_v3 }
 0x5a0   : > { %v966_v5 = vrot.slane %v5849_v4, 4 }
 0x5a2   : > { %967 = vrot.lane.b32.xlu1 %v966_v5, %s5532_s29 }
 0x60e   : > { %v1043_v6 = vpop.permute.xlu0 %1042 }
 0x60f   : > { %4573 = vmatmul.mubr.msk.f32.vlgmr.msra.gmra.mrb[6].mxu1 %vm535_vm2, %v1043_v6 }
 0x610   : > { %4909 = vmatpush3.bf16.msra.mxu1 %v5757_v18  ;;  %4594 = vmatprep.mubr.msk.f32.mxu1 %vm5530_vm0, %v5528_v0 }
 0x611   : > { %4910 = vmatprep.subr.bf16.mxu1 %v5529_v1 }
 0x614   : > { %v968_v7 = vpop.permute.xlu1 %967  ;;  %4912 = vmatpush3.bf16.msra.mxu1 %v5766_v22 }
 0x615   : > { %4562 = vmatmul.mubr.msk.f32.vlgmr.msra.gmra.mrb[10].mxu0 %vm535_vm2, %v968_v7  ;;  %4919 = vmatprep.subr.bf16.mxu1 %v5529_v1 }
 0x616   : > { %4903 = vmatpush3.bf16.msra.mxu0 %v5744_v11  ;;  %4583 = vmatprep.mubr.msk.f32.mxu0 %vm5530_vm0, %v5528_v0 }
 0x617   : > { %4904 = vmatprep.subr.bf16.mxu0 %v5529_v1 }
 0x61a   : > { %4906 = vmatpush3.bf16.msra.mxu0 %v5748_v14 }
 0x61b   : > { %4913 = vmatprep.subr.bf16.mxu0 %v5529_v1 }
 0x6e2   : > { %v1112_v8 = vpop.f32.mrb[6].mxu1 }
 0x6e3   : > { %v1117_v9 = vrot.slane %v1112_v8, 4  ;;  %v4574_v10 = vpop.f32.mrb[7].mxu1 }
 0x6e5   : > { %v1119_v13 = vadd.f32 %v1117_v9, %v965_v12 }
 0x6e7   : > { %5164 = vtanh.f32 %v1119_v13  ;;  %v4292_v24 = vmul.f32 -1.442695, %v1119_v13 }
 0x6e8   : > { %v1037_v16 = vpop.f32.mrb[10].mxu0 }
 0x6e9   : > { %v1041_v17 = vadd.f32 %v1037_v16, %v964_v15  ;;  %v4563_v19 = vpop.f32.mrb[11].mxu0 }
 0x6eb   : > { %5166 = vtanh.f32 %v1041_v17  ;;  %v4291_v27 = vmul.f32 -1.442695, %v1041_v17 }
 0x6ec   : > { %5168 = vpow2.f32 %v4292_v24 }
 0x6ed   : > { %5170 = vpow2.f32 %v4291_v27 }
 0x6f1   : > { %v5165_v21 = vpop.eup %5164 }
 0x6f2   : > { %1153 = vrot.lane.b32.xlu0 %v5165_v21, %s5531_s12 }
 0x6f5   : > { %v5167_v23 = vpop.eup %5166 }
 0x6f6   : > { %1139 = vrot.lane.b32.xlu1 %v5167_v23, %s5531_s12  ;;  %v5169_v29 = vpop.eup %5168 }
 0x6f7   : > { %v1129_v30 = vadd.f32 1.0, %v5169_v29  ;;  %v5171_v31 = vpop.eup %5170 }
 0x6f8   : > { %v1123_v32 = vadd.f32 1.0, %v5171_v31 }
 0x6f9   : > { %5172 = vrcp.f32 %v1129_v30 }
 0x6fa   : > { %5174 = vrcp.f32 %v1123_v32 }
 0x703   : > { %v5173_v33 = vpop.eup %5172 }
 0x704   : > { %v5175_v36 = vpop.eup %5174  ;;  %v1151_v40 = vmul.f32 %v5173_v33, %v1149_v39 }
 0x705   : > { %v1137_v44 = vmul.f32 %v5175_v36, %v1135_v42 }
 0x764   : > { %v1154_v34 = vpop.permute.xlu0 %1153 }
 0x765   : > { %v1156_v35 = vmul.f32 %v5173_v33, %v1154_v34 }
 0x767   : > { %1158 = vrot.lane.b32.xlu0 %v1156_v35, %s5531_s12 }
 0x768   : > { %v1140_v37 = vpop.permute.xlu1 %1139 }
 0x769   : > { %v1142_v38 = vmul.f32 %v5175_v36, %v1140_v37 }
 0x76b   : > { %1144 = vrot.lane.b32.xlu1 %v1142_v38, %s5531_s12 }
 0x7d9   : > { %v1159_v41 = vpop.permute.xlu0 %1158 }
 0x7da   : > { %v5873_v43 = vadd.f32 %v1159_v41, %v1151_v40 }
 0x7dc   : > { %5176 = vtanh.f32 %v5873_v43  ;;  %v1367_v24 = vrot.slane %v5873_v43, 4 }
 0x7dd   : > { %v1145_v45 = vpop.permute.xlu1 %1144 }
 0x7de   : > { %v5876_v46 = vadd.f32 %v1145_v45, %v1137_v44 }
 0x7e0   : > { %5178 = vtanh.f32 %v5876_v46  ;;  %v1353_v30 = vrot.slane %v5876_v46, 4 }
 0x7e6   : > { %v5177_v47 = vpop.eup %5176 }
 0x7e7   : > { %1170 = vrot.lane.b32.xlu0 %v5177_v47, %s5531_s12  ;;  %v1403_v47 = vld [vmem:[#allocation4 + $0x18] sm:$0xf0] }
 0x7ea   : > { %v5179_v48 = vpop.eup %5178 }
 0x7eb   : > { %1164 = vrot.lane.b32.xlu1 %v5179_v48, %s5531_s12 }
 0x859   : > { %v1171_v49 = vpop.permute.xlu0 %1170 }
 0x85a   : > { %v5881_v50 = vmul.f32 %v5173_v33, %v1171_v49  ;;  %v1402_v49 = vld [vmem:[#allocation4 + $0x20] sm:$0xf] }
 0x85c   : > { %v1262_v51 = vrot.slane %v5881_v50, 4 }
 0x85d   : > { %v1165_v52 = vpop.permute.xlu1 %1164 }
 0x85e   : > { %v1167_v53 = vmul.f32 %v5175_v36, %v1165_v52  ;;  %1263 = vrot.lane.b32.xlu0 %v1262_v51, %s5532_s29 }
 0x860   : > { %1175 = vrot.lane.b32.xlu1 %v1167_v53, %s5532_s29 }
 0x8d0   : > { %v1264_v54 = vpop.permute.xlu0 %1263 }
 0x8d1   : > { %4595 = vmatmul.mubr.msk.f32.vlgmr.msra.gmra.mrb[8].mxu1 %vm535_vm2, %v1264_v54 }
 0x8d2   : > { %v1176_v55 = vpop.permute.xlu1 %1175  ;;  %4921 = vmatpush3.bf16.msra.mxu1 %v5757_v18  ;;  %4616 = vmatprep.mubr.msk.f32.mxu1 %vm5530_vm0, %v5528_v0 }
 0x8d3   : > { %1178 = vst.msk [vmem:[#allocation2 + $0x8] sm:$0xf] %vm736_vm3, %v1176_v55  ;;  %4584 = vmatmul.mubr.msk.f32.vlgmr.msra.gmra.mrb[12].mxu0 %vm535_vm2, %v1176_v55  ;;  %4922 = vmatprep.subr.bf16.mxu1 %v5529_v1 }
 0x8d4   : > { %4915 = vmatpush3.bf16.msra.mxu0 %v5744_v11  ;;  %4605 = vmatprep.mubr.msk.f32.mxu0 %vm5530_vm0, %v5528_v0 }
 0x8d5   : > { %4916 = vmatprep.subr.bf16.mxu0 %v5529_v1 }
 0x8d6   : > { %4924 = vmatpush3.bf16.msra.mxu1 %v5766_v22 }
 0x8d7   : > { %4931 = vmatprep.subr.bf16.mxu1 %v5529_v1 }
 0x8d8   : > { %4918 = vmatpush3.bf16.msra.mxu0 %v5748_v14 }
 0x8d9   : > { %4925 = vmatprep.subr.bf16.mxu0 %v5529_v1 }
 0x9a4   : > { %v1333_v57 = vpop.f32.mrb[8].mxu1 }
 0x9a5   : > { %v1337_v58 = vadd.f32 %v1333_v57, %v1185_v56  ;;  %v4596_v59 = vpop.f32.mrb[9].mxu1 }
 0x9a6   : > { %v1254_v60 = vpop.f32.mrb[12].mxu0 }
 0x9a7   : > { %5180 = vtanh.f32 %v1337_v58  ;;  %v1259_v61 = vrot.slane %v1254_v60, 4  ;;  %v4585_v62 = vpop.f32.mrb[13].mxu0  ;;  %v4296_v7 = vmul.f32 -1.442695, %v1337_v58 }
 0x9a9   : > { %v1261_v3 = vadd.f32 %v1259_v61, %v1184_v63 }
 0x9ab   : > { %5182 = vtanh.f32 %v1261_v3  ;;  %v4295_v8 = vmul.f32 -1.442695, %v1261_v3 }
 0x9ac   : > { %5184 = vpow2.f32 %v4296_v7 }
 0x9ad   : > { %5186 = vpow2.f32 %v4295_v8 }
 0x9b1   : > { %v5181_v5 = vpop.eup %5180 }
 0x9b2   : > { %1371 = vrot.lane.b32.xlu0 %v5181_v5, %s5531_s12 }
 0x9b5   : > { %v5183_v6 = vpop.eup %5182 }
 0x9b6   : > { %1357 = vrot.lane.b32.xlu1 %v5183_v6, %s5531_s12  ;;  %v5185_v9 = vpop.eup %5184 }
 0x9b7   : > { %v1347_v10 = vadd.f32 1.0, %v5185_v9  ;;  %v5187_v12 = vpop.eup %5186 }
 0x9b8   : > { %v1341_v13 = vadd.f32 1.0, %v5187_v12 }
 0x9b9   : > { %5188 = vrcp.f32 %v1347_v10 }
 0x9ba   : > { %5190 = vrcp.f32 %v1341_v13 }
 0x9c3   : > { %v5189_v15 = vpop.eup %5188 }
 0x9c4   : > { %v5191_v19 = vpop.eup %5190  ;;  %v1369_v27 = vmul.f32 %v5189_v15, %v1367_v24 }
 0x9c5   : > { %v1355_v32 = vmul.f32 %v5191_v19, %v1353_v30 }
 0xa24   : > { %v1372_v16 = vpop.permute.xlu0 %1371 }
 0xa25   : > { %v1374_v17 = vmul.f32 %v5189_v15, %v1372_v16 }
 0xa27   : > { %1376 = vrot.lane.b32.xlu0 %v1374_v17, %s5531_s12 }
 0xa28   : > { %v1358_v21 = vpop.permute.xlu1 %1357 }
 0xa29   : > { %v1360_v23 = vmul.f32 %v5191_v19, %v1358_v21 }
 0xa2b   : > { %1362 = vrot.lane.b32.xlu1 %v1360_v23, %s5531_s12 }
 0xa99   : > { %v1377_v29 = vpop.permute.xlu0 %1376 }
 0xa9a   : > { %v5907_v31 = vadd.f32 %v1377_v29, %v1369_v27 }
 0xa9c   : > { %5192 = vtanh.f32 %v5907_v31  ;;  %v1587_v8 = vrot.slane %v5907_v31, 4 }
 0xa9d   : > { %v1363_v33 = vpop.permute.xlu1 %1362 }
 0xa9e   : > { %v5910_v34 = vadd.f32 %v1363_v33, %v1355_v32  ;;  %v1623_v33 = vld [vmem:[#allocation4 + $0x18] sm:$0xf] }
 0xaa0   : > { %5194 = vtanh.f32 %v5910_v34  ;;  %v1573_v12 = vrot.slane %v5910_v34, 4 }
 0xaa6   : > { %v5193_v35 = vpop.eup %5192 }
 0xaa7   : > { %1388 = vrot.lane.b32.xlu0 %v5193_v35, %s5531_s12 }
 0xaaa   : > { %v5195_v36 = vpop.eup %5194 }
 0xaab   : > { %1382 = vrot.lane.b32.xlu1 %v5195_v36, %s5531_s12 }
 0xb19   : > { %v1389_v37 = vpop.permute.xlu0 %1388 }
 0xb1a   : > { %v5915_v38 = vmul.f32 %v5189_v15, %v1389_v37 }
 0xb1c   : > { %1480 = vrot.lane.b32.xlu0 %v5915_v38, %s5532_s29 }
 0xb1d   : > { %v1383_v39 = vpop.permute.xlu1 %1382 }
 0xb1e   : > { %v5919_v40 = vmul.f32 %v5191_v19, %v1383_v39 }
 0xb20   : > { %v1404_v41 = vrot.slane %v5919_v40, 4 }
 0xb22   : > { %1405 = vrot.lane.b32.xlu1 %v1404_v41, %s5532_s29 }
 0xb8e   : > { %v1481_v42 = vpop.permute.xlu0 %1480 }
 0xb8f   : > { %4617 = vmatmul.mubr.msk.f32.vlgmr.msra.gmra.mrb[10].mxu1 %vm535_vm2, %v1481_v42  ;;  %v1622_v42 = vld [vmem:[#allocation4 + $0x20] sm:$0xf0] }
 0xb90   : > { %4933 = vmatpush3.bf16.msra.mxu1 %v5757_v18  ;;  %4638 = vmatprep.mubr.msk.f32.mxu1 %vm5530_vm0, %v5528_v0 }
 0xb91   : > { %4934 = vmatprep.subr.bf16.mxu1 %v5529_v1 }
 0xb94   : > { %v1406_v43 = vpop.permute.xlu1 %1405  ;;  %4936 = vmatpush3.bf16.msra.mxu1 %v5766_v22 }
 0xb95   : > { %4606 = vmatmul.mubr.msk.f32.vlgmr.msra.gmra.mrb[14].mxu0 %vm535_vm2, %v1406_v43  ;;  %4943 = vmatprep.subr.bf16.mxu1 %v5529_v1 }
 0xb96   : > { %4927 = vmatpush3.bf16.msra.mxu0 %v5744_v11  ;;  %4627 = vmatprep.mubr.msk.f32.mxu0 %vm5530_vm0, %v5528_v0 }
 0xb97   : > { %4928 = vmatprep.subr.bf16.mxu0 %v5529_v1 }
 0xb9a   : > { %4930 = vmatpush3.bf16.msra.mxu0 %v5748_v14 }
 0xb9b   : > { %4937 = vmatprep.subr.bf16.mxu0 %v5529_v1 }
 0xc62   : > { %v1550_v44 = vpop.f32.mrb[10].mxu1 }
 0xc63   : > { %v1555_v45 = vrot.slane %v1550_v44, 4  ;;  %v4618_v46 = vpop.f32.mrb[11].mxu1 }
 0xc65   : > { %v1557_v48 = vadd.f32 %v1555_v45, %v1403_v47 }
 0xc67   : > { %5196 = vtanh.f32 %v1557_v48  ;;  %v4300_v56 = vmul.f32 -1.442695, %v1557_v48 }
 0xc68   : > { %v1475_v51 = vpop.f32.mrb[14].mxu0 }
 0xc69   : > { %v1479_v52 = vadd.f32 %v1475_v51, %v1402_v49  ;;  %v4607_v53 = vpop.f32.mrb[15].mxu0 }
 0xc6b   : > { %5198 = vtanh.f32 %v1479_v52  ;;  %v4299_v57 = vmul.f32 -1.442695, %v1479_v52 }
 0xc6c   : > { %5200 = vpow2.f32 %v4300_v56 }
 0xc6d   : > { %5202 = vpow2.f32 %v4299_v57 }
 0xc71   : > { %v5197_v54 = vpop.eup %5196 }
 0xc72   : > { %1591 = vrot.lane.b32.xlu0 %v5197_v54, %s5531_s12 }
 0xc75   : > { %v5199_v55 = vpop.eup %5198 }
 0xc76   : > { %1577 = vrot.lane.b32.xlu1 %v5199_v55, %s5531_s12  ;;  %v5201_v58 = vpop.eup %5200 }
 0xc77   : > { %v1567_v59 = vadd.f32 1.0, %v5201_v58  ;;  %v5203_v60 = vpop.eup %5202 }
 0xc78   : > { %v1561_v61 = vadd.f32 1.0, %v5203_v60 }
 0xc79   : > { %5204 = vrcp.f32 %v1567_v59 }
 0xc7a   : > { %5206 = vrcp.f32 %v1561_v61 }
 0xc83   : > { %v5205_v62 = vpop.eup %5204 }
 0xc84   : > { %v5207_v5 = vpop.eup %5206  ;;  %v1589_v9 = vmul.f32 %v5205_v62, %v1587_v8 }
 0xc85   : > { %v1575_v15 = vmul.f32 %v5207_v5, %v1573_v12 }
 0xce4   : > { %v1592_v63 = vpop.permute.xlu0 %1591 }
 0xce5   : > { %v1594_v3 = vmul.f32 %v5205_v62, %v1592_v63 }
 0xce7   : > { %1596 = vrot.lane.b32.xlu0 %v1594_v3, %s5531_s12 }
 0xce8   : > { %v1578_v6 = vpop.permute.xlu1 %1577 }
 0xce9   : > { %v1580_v7 = vmul.f32 %v5207_v5, %v1578_v6 }
 0xceb   : > { %1582 = vrot.lane.b32.xlu1 %v1580_v7, %s5531_s12 }
 0xd59   : > { %v1597_v10 = vpop.permute.xlu0 %1596 }
 0xd5a   : > { %v5943_v13 = vadd.f32 %v1597_v10, %v1589_v9 }
 0xd5c   : > { %5208 = vtanh.f32 %v5943_v13  ;;  %v1805_v59 = vrot.slane %v5943_v13, 4 }
 0xd5d   : > { %v1583_v16 = vpop.permute.xlu1 %1582 }
 0xd5e   : > { %v5946_v17 = vadd.f32 %v1583_v16, %v1575_v15 }
 0xd60   : > { %5210 = vtanh.f32 %v5946_v17 }
 0xd66   : > { %v5209_v19 = vpop.eup %5208 }
 0xd67   : > { %1608 = vrot.lane.b32.xlu0 %v5209_v19, %s5531_s12 }
 0xd6a   : > { %v5211_v21 = vpop.eup %5210 }
 0xd6b   : > { %1602 = vrot.lane.b32.xlu1 %v5211_v21, %s5531_s12 }
 0xdd9   : > { %v1609_v23 = vpop.permute.xlu0 %1608 }
 0xdda   : > { %v5951_v24 = vmul.f32 %v5205_v62, %v1609_v23  ;;  %v1791_v62 = vrot.slane %v5946_v17, 4  ;;  %v1841_v23 = vld [vmem:[#allocation4 + $0x8] sm:$0xf0] }
 0xddc   : > { %v1700_v27 = vrot.slane %v5951_v24, 4 }
 0xddd   : > { %v1603_v29 = vpop.permute.xlu1 %1602 }
 0xdde   : > { %v1605_v30 = vmul.f32 %v5207_v5, %v1603_v29  ;;  %1701 = vrot.lane.b32.xlu0 %v1700_v27, %s5532_s29 }
 0xde0   : > { %1613 = vrot.lane.b32.xlu1 %v1605_v30, %s5532_s29 }
 0xe50   : > { %v1702_v31 = vpop.permute.xlu0 %1701 }
 0xe51   : > { %4639 = vmatmul.mubr.msk.f32.vlgmr.msra.gmra.mrb[12].mxu1 %vm535_vm2, %v1702_v31 }
 0xe52   : > { %v5957_v32 = vpop.permute.xlu1 %1613  ;;  %4945 = vmatpush3.bf16.msra.mxu1 %v5757_v18  ;;  %4660 = vmatprep.mubr.msk.f32.mxu1 %vm5530_vm0, %v5528_v0 }
 0xe53   : > { %4628 = vmatmul.mubr.msk.f32.vlgmr.msra.gmra.mrb[16].mxu0 %vm535_vm2, %v5957_v32  ;;  %4946 = vmatprep.subr.bf16.mxu1 %v5529_v1 }
 0xe54   : > { %4939 = vmatpush3.bf16.msra.mxu0 %v5744_v11  ;;  %4649 = vmatprep.mubr.msk.f32.mxu0 %vm5530_vm0, %v5528_v0 }
 0xe55   : > { %4940 = vmatprep.subr.bf16.mxu0 %v5529_v1 }
 0xe56   : > { %4948 = vmatpush3.bf16.msra.mxu1 %v5766_v22 }
 0xe57   : > { %4955 = vmatprep.subr.bf16.mxu1 %v5529_v1 }
 0xe58   : > { %4942 = vmatpush3.bf16.msra.mxu0 %v5748_v14 }
 0xe59   : > { %4949 = vmatprep.subr.bf16.mxu0 %v5529_v1 }
 0xf24   : > { %v1771_v34 = vpop.f32.mrb[12].mxu1 }
 0xf25   : > { %v1775_v35 = vadd.f32 %v1771_v34, %v1623_v33  ;;  %v4640_v36 = vpop.f32.mrb[13].mxu1 }
 0xf26   : > { %v1692_v37 = vpop.f32.mrb[16].mxu0 }
 0xf27   : > { %5212 = vtanh.f32 %v1775_v35  ;;  %v1697_v39 = vrot.slane %v1692_v37, 4  ;;  %v4629_v41 = vpop.f32.mrb[17].mxu0  ;;  %v4304_v46 = vmul.f32 -1.442695, %v1775_v35 }
 0xf29   : > { %v1699_v43 = vadd.f32 %v1697_v39, %v1622_v42 }
 0xf2b   : > { %5214 = vtanh.f32 %v1699_v43  ;;  %v4303_v47 = vmul.f32 -1.442695, %v1699_v43 }
 0xf2c   : > { %5216 = vpow2.f32 %v4304_v46 }
 0xf2d   : > { %5218 = vpow2.f32 %v4303_v47 }
 0xf31   : > { %v5213_v44 = vpop.eup %5212 }
 0xf32   : > { %1809 = vrot.lane.b32.xlu0 %v5213_v44, %s5531_s12 }
 0xf35   : > { %v5215_v45 = vpop.eup %5214 }
 0xf36   : > { %1795 = vrot.lane.b32.xlu1 %v5215_v45, %s5531_s12  ;;  %v5217_v48 = vpop.eup %5216 }
 0xf37   : > { %v1785_v49 = vadd.f32 1.0, %v5217_v48  ;;  %v5219_v51 = vpop.eup %5218 }
 0xf38   : > { %v1779_v52 = vadd.f32 1.0, %v5219_v51 }
 0xf39   : > { %5220 = vrcp.f32 %v1785_v49 }
 0xf3a   : > { %5222 = vrcp.f32 %v1779_v52 }
 0xf43   : > { %v5221_v53 = vpop.eup %5220 }
 0xf44   : > { %v5223_v56 = vpop.eup %5222  ;;  %v1807_v60 = vmul.f32 %v5221_v53, %v1805_v59 }
 0xf45   : > { %v1793_v3 = vmul.f32 %v5223_v56, %v1791_v62 }
 0xfa4   : > { %v1810_v54 = vpop.permute.xlu0 %1809 }
 0xfa5   : > { %v1812_v55 = vmul.f32 %v5221_v53, %v1810_v54 }
 0xfa7   : > { %1814 = vrot.lane.b32.xlu0 %v1812_v55, %s5531_s12 }
 0xfa8   : > { %v1796_v57 = vpop.permute.xlu1 %1795 }
 0xfa9   : > { %v1798_v58 = vmul.f32 %v5223_v56, %v1796_v57 }
 0xfab   : > { %1800 = vrot.lane.b32.xlu1 %v1798_v58, %s5531_s12 }
0x1019   : > { %v1815_v61 = vpop.permute.xlu0 %1814 }
0x101a   : > { %v5979_v63 = vadd.f32 %v1815_v61, %v1807_v60 }
0x101c   : > { %5224 = vtanh.f32 %v5979_v63  ;;  %v2025_v47 = vrot.slane %v5979_v63, 4 }
0x101d   : > { %v1801_v5 = vpop.permute.xlu1 %1800 }
0x101e   : > { %v5982_v6 = vadd.f32 %v1801_v5, %v1793_v3  ;;  %v2061_v5 = vld [vmem:[#allocation4 + $0x8] sm:$0xf] }
0x1020   : > { %5226 = vtanh.f32 %v5982_v6  ;;  %v2011_v51 = vrot.slane %v5982_v6, 4 }
0x1026   : > { %v5225_v7 = vpop.eup %5224 }
0x1027   : > { %1826 = vrot.lane.b32.xlu0 %v5225_v7, %s5531_s12 }
0x102a   : > { %v5227_v8 = vpop.eup %5226 }
0x102b   : > { %1820 = vrot.lane.b32.xlu1 %v5227_v8, %s5531_s12 }
0x1099   : > { %v1827_v9 = vpop.permute.xlu0 %1826 }
0x109a   : > { %v5987_v10 = vmul.f32 %v5221_v53, %v1827_v9 }
0x109c   : > { %1918 = vrot.lane.b32.xlu0 %v5987_v10, %s5532_s29 }
0x109d   : > { %v1821_v12 = vpop.permute.xlu1 %1820 }
0x109e   : > { %v5991_v13 = vmul.f32 %v5223_v56, %v1821_v12 }
0x10a0   : > { %v1842_v15 = vrot.slane %v5991_v13, 4 }
0x10a2   : > { %1843 = vrot.lane.b32.xlu1 %v1842_v15, %s5532_s29 }
0x110e   : > { %v1919_v16 = vpop.permute.xlu0 %1918 }
0x110f   : > { %4661 = vmatmul.mubr.msk.f32.vlgmr.msra.gmra.mrb[14].mxu1 %vm535_vm2, %v1919_v16  ;;  %v2060_v16 = vld [vmem:[#allocation4 + $0x30] sm:$0xf0] }
0x1110   : > { %4957 = vmatpush3.bf16.msra.mxu1 %v5757_v18  ;;  %4682 = vmatprep.mubr.msk.f32.mxu1 %vm5530_vm0, %v5528_v0 }
0x1111   : > { %4958 = vmatprep.subr.bf16.mxu1 %v5529_v1 }
0x1114   : > { %v1844_v17 = vpop.permute.xlu1 %1843  ;;  %4960 = vmatpush3.bf16.msra.mxu1 %v5766_v22  ;;  %v1840_v22 = vld [vmem:[#allocation4 + $0x30] sm:$0xf] }
0x1115   : > { %4650 = vmatmul.mubr.msk.f32.vlgmr.msra.gmra.mrb[18].mxu0 %vm535_vm2, %v1844_v17  ;;  %4977 = vmatprep.subr.bf16.mxu1 %v5529_v1 }
0x1116   : > { %4951 = vmatpush3.bf16.msra.mxu0 %v5744_v11  ;;  %4671 = vmatprep.mubr.msk.f32.mxu0 %vm5530_vm0, %v5528_v0 }
0x1117   : > { %4952 = vmatprep.subr.bf16.mxu0 %v5529_v1 }
0x111a   : > { %4954 = vmatpush3.bf16.msra.mxu0 %v5748_v14 }
0x11e2   : > { %v1988_v18 = vpop.f32.mrb[14].mxu1 }
0x11e3   : > { %v1993_v19 = vrot.slane %v1988_v18, 4  ;;  %v4662_v21 = vpop.f32.mrb[15].mxu1 }
0x11e5   : > { %v1995_v27 = vadd.f32 %v1993_v19, %v1841_v23 }
0x11e7   : > { %5228 = vtanh.f32 %v1995_v27  ;;  %v4308_v34 = vmul.f32 -1.442695, %v1995_v27 }
0x11e8   : > { %v1913_v29 = vpop.f32.mrb[18].mxu0 }
0x11e9   : > { %v1917_v30 = vadd.f32 %v1913_v29, %v1840_v22  ;;  %v4651_v31 = vpop.f32.mrb[19].mxu0 }
0x11eb   : > { %5230 = vtanh.f32 %v1917_v30  ;;  %v4307_v14 = vmul.f32 -1.442695, %v1917_v30 }
0x11ec   : > { %5232 = vpow2.f32 %v4308_v34 }
0x11ed   : > { %5234 = vpow2.f32 %v4307_v14 }
0x11f1   : > { %v5229_v33 = vpop.eup %5228 }
0x11f2   : > { %2029 = vrot.lane.b32.xlu0 %v5229_v33, %s5531_s12 }
0x11f5   : > { %v5231_v11 = vpop.eup %5230 }
0x11f6   : > { %2015 = vrot.lane.b32.xlu1 %v5231_v11, %s5531_s12  ;;  %v5233_v35 = vpop.eup %5232 }
0x11f7   : > { %v2005_v36 = vadd.f32 1.0, %v5233_v35  ;;  %v5235_v37 = vpop.eup %5234 }
0x11f8   : > { %v1999_v39 = vadd.f32 1.0, %v5235_v37 }
0x11f9   : > { %5236 = vrcp.f32 %v2005_v36 }
0x11fa   : > { %5238 = vrcp.f32 %v1999_v39 }
0x1203   : > { %v5237_v41 = vpop.eup %5236 }
0x1204   : > { %v5239_v44 = vpop.eup %5238  ;;  %v2027_v48 = vmul.f32 %v5237_v41, %v2025_v47 }
0x1205   : > { %v2013_v53 = vmul.f32 %v5239_v44, %v2011_v51 }
0x1264   : > { %v2030_v42 = vpop.permute.xlu0 %2029 }
0x1265   : > { %v2032_v43 = vmul.f32 %v5237_v41, %v2030_v42 }
0x1267   : > { %2034 = vrot.lane.b32.xlu0 %v2032_v43, %s5531_s12 }
0x1268   : > { %v2016_v45 = vpop.permute.xlu1 %2015 }
0x1269   : > { %v2018_v46 = vmul.f32 %v5239_v44, %v2016_v45 }
0x126b   : > { %2020 = vrot.lane.b32.xlu1 %v2018_v46, %s5531_s12 }
0x12d9   : > { %v2035_v49 = vpop.permute.xlu0 %2034 }
0x12da   : > { %v2037_v52 = vadd.f32 %v2035_v49, %v2027_v48  ;;  %v2283_v48 = vld [vmem:[%s6487_s5 + $0x8] sm:$0xff]  ;;  %v2285_v49 = vld [vmem:[%s6487_s5 + $0x18] sm:$0xff] }
0x12db   : > { %v4961_v51 = vpack.c.bf16 %v2285_v49, %v2283_v48  ;;  %v2298_v49 = vld [vmem:[%s6490_s8] sm:$0x3] }
0x12dc   : > { %5240 = vtanh.f32 %v2037_v52  ;;  %v2243_v36 = vrot.slane %v2037_v52, 4  ;;  %v2287_v52 = vld [vmem:[%s6487_s5 + $0x28] sm:$0xff] }
0x12dd   : > { %v2021_v54 = vpop.permute.xlu1 %2020  ;;  %4962 = vmatprep.subr.bf16.mxu0 %v4961_v51  ;;  %v2307_v51 = vrot.slane %v2298_v49, %v411_v28 }
0x12de   : > { %v2023_v55 = vadd.f32 %v2021_v54, %v2013_v53  ;;  %v2289_v53 = vld [vmem:[%s6487_s5 + $0x38] sm:$0xff] }
0x12e0   : > { %5242 = vtanh.f32 %v2023_v55 }
0x12e6   : > { %v5241_v56 = vpop.eup %5240 }
0x12e7   : > { %2046 = vrot.lane.b32.xlu0 %v5241_v56, %s5531_s12  ;;  %v2286_v56 = vld [vmem:[%s6487_s5 + $0x20] sm:$0xff] }
0x12ea   : > { %v5243_v57 = vpop.eup %5242 }
0x12eb   : > { %2040 = vrot.lane.b32.xlu1 %v5243_v57, %s5531_s12 }
0x1359   : > { %v2047_v58 = vpop.permute.xlu0 %2046 }
0x135a   : > { %v2049_v59 = vmul.f32 %v5237_v41, %v2047_v58  ;;  %v2229_v41 = vrot.slane %v2023_v55, 4  ;;  %v4965_v55 = vpack.c.bf16 %v2289_v53, %v2287_v52  ;;  %v2291_v58 = vld [vmem:[%s6487_s5 + $0x48] sm:$0xff] }
0x135c   : > { %v2138_v60 = vrot.slane %v2049_v59, 4 }
0x135d   : > { %v2041_v61 = vpop.permute.xlu1 %2040 }
0x135e   : > { %v2043_v62 = vmul.f32 %v5239_v44, %v2041_v61  ;;  %2139 = vrot.lane.b32.xlu0 %v2138_v60, %s5532_s29 }
0x1360   : > { %2051 = vrot.lane.b32.xlu1 %v2043_v62, %s5532_s29  ;;  %v2297_v62 = vld [vmem:[%s6487_s5 + $0x78] sm:$0xff] }
0x13d0   : > { %v2140_v63 = vpop.permute.xlu0 %2139 }
0x13d1   : > { %4683 = vmatmul.mubr.msk.f32.vlgmr.msra.gmra.mrb[16].mxu1 %vm535_vm2, %v2140_v63 }
0x13d2   : > { %v6019_v3 = vpop.permute.xlu1 %2051  ;;  %4693 = vmatprep.mubr.msk.f32.mxu1 %vm5530_vm0, %v5528_v0 }
0x13d3   : > { %4672 = vmatmul.mubr.msk.f32.vlgmr.msra.gmra.mrb[20].mxu0 %vm535_vm2, %v6019_v3 }
0x13d4   : > { %2387 = vmatprep.mubr.f32.mxu0 %v5528_v0 }
0x14a4   : > { %v2209_v6 = vpop.f32.mrb[16].mxu1 }
0x14a5   : > { %v2213_v7 = vadd.f32 %v2209_v6, %v2061_v5  ;;  %v4684_v8 = vpop.f32.mrb[17].mxu1  ;;  %v2294_v5 = vld [vmem:[%s6487_s5 + $0x60] sm:$0xff]  ;;  %v2296_v6 = vld [vmem:[%s6487_s5 + $0x70] sm:$0xff] }
0x14a6   : > { %v2130_v9 = vpop.f32.mrb[20].mxu0  ;;  %v2420_v8 = vld [vmem:[#allocation10] sm:$0xff] }
0x14a7   : > { %5244 = vtanh.f32 %v2213_v7  ;;  %v2135_v12 = vrot.slane %v2130_v9, 4  ;;  %v4673_v15 = vpop.f32.mrb[21].mxu0  ;;  %v4312_v21 = vmul.f32 -1.442695, %v2213_v7  ;;  %v4975_v7 = vpack.c.bf16 %v2296_v6, %v2294_v5  ;;  %v2421_v9 = vld [vmem:[#allocation10 + $0x8] sm:$0xff] }
0x14a9   : > { %v2137_v17 = vadd.f32 %v2135_v12, %v2060_v16  ;;  %v6102_v12 = vpack.c.bf16 %v2421_v9, %v2420_v8 }
0x14ab   : > { %5246 = vtanh.f32 %v2137_v17  ;;  %v4311_v23 = vmul.f32 -1.442695, %v2137_v17  ;;  %4979 = vmatpush3.bf16.msra.mxu1 %v6102_v12  ;;  %v2422_v17 = vld [vmem:[#allocation10 + $0x10] sm:$0xff] }
0x14ac   : > { %5248 = vpow2.f32 %v4312_v21  ;;  %4980 = vmatprep.subr.bf16.mxu1 %v5529_v1 }
0x14ad   : > { %5250 = vpow2.f32 %v4311_v23 }
0x14b1   : > { %v5245_v18 = vpop.eup %5244 }
0x14b2   : > { %2247 = vrot.lane.b32.xlu0 %v5245_v18, %s5531_s12  ;;  %v2423_v18 = vld [vmem:[#allocation10 + $0x18] sm:$0xff] }
0x14b3   : > { %v6108_v23 = vpack.c.bf16 %v2423_v18, %v2422_v17 }
0x14b5   : > { %v5247_v19 = vpop.eup %5246  ;;  %4982 = vmatpush3.bf16.msra.mxu1 %v6108_v23 }
0x14b6   : > { %2233 = vrot.lane.b32.xlu1 %v5247_v19, %s5531_s12  ;;  %v5249_v27 = vpop.eup %5248  ;;  %4983 = vmatprep.subr.bf16.mxu1 %v5529_v1 }
0x14b7   : > { %v2223_v22 = vadd.f32 1.0, %v5249_v27  ;;  %v5251_v29 = vpop.eup %5250 }
0x14b8   : > { %v2217_v30 = vadd.f32 1.0, %v5251_v29  ;;  %4694 = vmatmul.mubr.f32.vlgmr.msra.gmra.mrb[18].mxu1 %v5528_v0  ;;  %v2424_v29 = vld [vmem:[%s6489_s7] sm:$0xff] }
0x14b9   : > { %5252 = vrcp.f32 %v2223_v22  ;;  %4704 = vmatprep.mubr.msk.f32.mxu1 %vm5530_vm0, %v5528_v0 }
0x14ba   : > { %5254 = vrcp.f32 %v2217_v30  ;;  %v2425_v30 = vld [vmem:[%s6489_s7 + $0x8] sm:$0xff] }
0x14c3   : > { %v6028_v31 = vpop.eup %5252 }
0x14c4   : > { %v6032_v34 = vpop.eup %5254  ;;  %v2245_v37 = vmul.f32 %v6028_v31, %v2243_v36 }
0x14c5   : > { %v2231_v43 = vmul.f32 %v6032_v34, %v2229_v41 }
0x1524   : > { %v2248_v33 = vpop.permute.xlu0 %2247 }
0x1525   : > { %v2250_v11 = vmul.f32 %v6028_v31, %v2248_v33  ;;  %v2427_v33 = vld [vmem:[%s6489_s7 + $0x18] sm:$0xff] }
0x1527   : > { %2252 = vrot.lane.b32.xlu0 %v2250_v11, %s5531_s12 }
0x1528   : > { %v2234_v14 = vpop.permute.xlu1 %2233 }
0x1529   : > { %v2236_v35 = vmul.f32 %v6032_v34, %v2234_v14 }
0x152b   : > { %2238 = vrot.lane.b32.xlu1 %v2236_v35, %s5531_s12 }
0x1599   : > { %v2253_v39 = vpop.permute.xlu0 %2252 }
0x159a   : > { %v2255_v42 = vadd.f32 %v2253_v39, %v2245_v37 }
0x159c   : > { %5256 = vtanh.f32 %v2255_v42 }
0x159d   : > { %v2239_v44 = vpop.permute.xlu1 %2238 }
0x159e   : > { %v2241_v45 = vadd.f32 %v2239_v44, %v2231_v43 }
0x15a0   : > { %5258 = vtanh.f32 %v2241_v45 }
0x15a6   : > { %v5257_v46 = vpop.eup %5256 }
0x15a7   : > { %2264 = vrot.lane.b32.xlu0 %v5257_v46, %s5531_s12  ;;  %v2496_v46 = vpop.f32.mrb[18].mxu1 }
0x15aa   : > { %v5259_v47 = vpop.eup %5258 }
0x15ab   : > { %953 = vrot.lane.b32.xlu0 %v5849_v4, %s5532_s29  ;;  %2258 = vrot.lane.b32.xlu1 %v5259_v47, %s5531_s12  ;;  %v2282_v4 = vld [vmem:[%s6487_s5] sm:$0xff]  ;;  %v4695_v47 = vpop.f32.mrb[19].mxu1 }
0x15af   : > { %1618 = vrot.lane.b32.xlu0 %v5951_v24, %s5533_s15  ;;  %2056 = vrot.lane.b32.xlu1 %v2049_v59, %s5533_s15  ;;  %v2284_v24 = vld [vmem:[%s6487_s5 + $0x10] sm:$0xff]  ;;  %v2293_v59 = vld [vmem:[%s6487_s5 + $0x58] sm:$0xff] }
0x15b0   : > { %v4963_v54 = vpack.c.bf16 %v2284_v24, %v2282_v4  ;;  %v4969_v60 = vpack.c.bf16 %v2293_v59, %v2291_v58  ;;  %v2303_v4 = vrot.slane %v2298_v49, %v407_v26 }
0x15b2   : > { %4964 = vmatpush1.bf16.msra.mxu0 %v4963_v54 }
0x15b3   : > { %1393 = vrot.lane.b32.xlu1 %v5919_v40, %s5532_s29  ;;  %v2288_v40 = vld [vmem:[%s6487_s5 + $0x30] sm:$0xff]  ;;  %4966 = vmatprep.subr.bf16.mxu0 %v4965_v55 }
0x15b4   : > { %v4967_v57 = vpack.c.bf16 %v2288_v40, %v2286_v56 }
0x15b6   : > { %4968 = vmatpush1.bf16.msra.mxu0 %v4967_v57 }
0x15b7   : > { %1836 = vrot.lane.b32.xlu1 %v5987_v10, %s5533_s15  ;;  %v2290_v10 = vld [vmem:[%s6487_s5 + $0x40] sm:$0xff]  ;;  %4970 = vmatprep.subr.bf16.mxu0 %v4969_v60 }
0x15bb   : > { %1398 = vrot.lane.b32.xlu1 %v5915_v38, %s5533_s15  ;;  %v2292_v38 = vld [vmem:[%s6487_s5 + $0x50] sm:$0xff] }
0x15bc   : > { %v4971_v61 = vpack.c.bf16 %v2292_v38, %v2290_v10 }
0x15be   : > { %4972 = vmatpush1.bf16.msra.mxu0 %v4971_v61 }
0x15bf   : > { %739 = vrot.lane.b32.xlu1 %v5811_v20, %s5533_s15  ;;  %v2295_v20 = vld [vmem:[%s6487_s5 + $0x68] sm:$0xff] }
0x15c0   : > { %v4973_v63 = vpack.c.bf16 %v2297_v62, %v2295_v20 }
0x15c2   : > { %4974 = vmatprep.subr.bf16.mxu0 %v4973_v63 }
0x15c3   : > { %4976 = vmatpush1.bf16.msra.mxu0 %v4975_v7 }
0x15c4   : > { %4995 = vmatprep.subr.bf16.mxu0 %v5529_v1 }
0x1619   : > { %v2265_v15 = vpop.permute.xlu0 %2264 }
0x161a   : > { %v2267_v16 = vmul.f32 %v6028_v31, %v2265_v15  ;;  %v2426_v31 = vld [vmem:[%s6489_s7 + $0x10] sm:$0xff] }
0x161b   : > { %v6139_v14 = vpack.c.bf16 %v2427_v33, %v2426_v31 }
0x161c   : > { %2274 = vrot.lane.b32.xlu0 %v2267_v16, %s5533_s15 }
0x161d   : > { %v954_v19 = vpop.permute.xlu0 %953  ;;  %v2259_v21 = vpop.permute.xlu1 %2258 }
0x161e   : > { %957 = vst.msk [vmem:[#allocation2] sm:$0xf0] %vm956_vm4, %v954_v19  ;;  %v2261_v27 = vmul.f32 %v6032_v34, %v2259_v21 }
0x1620   : > { %1180 = vrot.lane.b32.xlu0 %v5881_v50, %s5533_s15  ;;  %2269 = vrot.lane.b32.xlu1 %v2261_v27, %s5532_s29  ;;  %v6129_v50 = vpack.c.bf16 %v2425_v30, %v2424_v29 }
0x1621   : > { %v2057_v22 = vpop.permute.xlu1 %2056  ;;  %v1619_v34 = vpop.permute.xlu0 %1618 }
0x1622   : > { %2059 = vst.msk [vmem:[#allocation2] sm:$0xf0] %vm742_vm5, %v2057_v22  ;;  %4985 = vmatpush3.bf16.msra.mxu1 %v6129_v50 }
0x1623   : > { %4986 = vmatprep.subr.bf16.mxu1 %v5529_v1 }
0x1624   : > { %1831 = vrot.lane.b32.xlu0 %v5991_v13, %s5532_s29 }
0x1625   : > { %v1394_v11 = vpop.permute.xlu1 %1393 }
0x1626   : > { %1396 = vst.msk [vmem:[#allocation2 + $0x8] sm:$0xf0] %vm956_vm4, %v1394_v11  ;;  %4988 = vmatpush3.bf16.msra.mxu1 %v6139_v14 }
0x1627   : > { %1621 = vst.msk [vmem:[#allocation2 + $0x8] sm:$0xf0] %vm742_vm5, %v1619_v34  ;;  %4989 = vmatprep.subr.bf16.mxu1 %v5529_v1 }
0x1628   : > { %959 = vrot.lane.b32.xlu0 %v5845_v2, %s5533_s15 }
0x1629   : > { %v1837_v13 = vpop.permute.xlu1 %1836  ;;  %4705 = vmatmul.mubr.f32.vlgmr.msra.gmra.mrb[20].mxu1 %v5528_v0 }
0x162a   : > { %1839 = vst.msk [vmem:[#allocation2 + $0x8] sm:$0xf] %vm962_vm6, %v1837_v13  ;;  %4991 = vmatpush3.bf16.msra.mxu1 %v6102_v12  ;;  %4715 = vmatprep.mubr.msk.f32.mxu1 %vm5530_vm0, %v5528_v0 }
0x162b   : > { %4992 = vmatprep.subr.bf16.mxu1 %v5529_v1 }
0x162d   : > { %v1399_v35 = vpop.permute.xlu1 %1398 }
0x162e   : > { %1401 = vst.msk [vmem:[#allocation2 + $0x10] sm:$0xf] %vm962_vm6, %v1399_v35  ;;  %4994 = vmatpush3.bf16.msra.mxu1 %v6108_v23 }
0x162f   : > { %1616 = vst.msk [vmem:[#allocation2 + $0x10] sm:$0xf] %vm736_vm3, %v5957_v32  ;;  %5001 = vmatprep.subr.bf16.mxu1 %v5529_v1 }
0x1631   : > { %v740_v2 = vpop.permute.xlu1 %739  ;;  %v2279_v43 = vld [vmem:[#allocation2 + $0x8] sm:$0xff] }
0x1632   : > { %743 = vst.msk [vmem:[#allocation2 + $0x18] sm:$0xf0] %vm742_vm5, %v740_v2 }
0x168e   : > { %v2275_v36 = vpop.permute.xlu0 %2274 }
0x168f   : > { %2277 = vst.msk [vmem:[#allocation2] sm:$0xf] %vm962_vm6, %v2275_v36 }
0x1692   : > { %v1181_v37 = vpop.permute.xlu0 %1180  ;;  %v2270_v39 = vpop.permute.xlu1 %2269 }
0x1693   : > { %1183 = vst.msk [vmem:[#allocation2 + $0x10] sm:$0xf0] %vm742_vm5, %v1181_v37 }
0x1694   : > { %2272 = vst.msk [vmem:[#allocation2 + $0x18] sm:$0xf0] %vm956_vm4, %v2270_v39 }
0x1696   : > { %v1832_v32 = vpop.permute.xlu0 %1831  ;;  %v2278_v41 = vld [vmem:[#allocation2] sm:$0xff] }
0x1697   : > { %1834 = vst.msk [vmem:[#allocation2 + $0x10] sm:$0xf0] %vm956_vm4, %v1832_v32  ;;  %4313 = vmatmul.mubr.msk.f32.vlgmr.msra.gmra.mrb[22].mxu0 %vm2310_vm7, %v2278_v41 }
0x1698   : > { %2393 = vmatprep.mubr.f32.mxu0 %v5528_v0  ;;  %4997 = vmatpush3.bf16.msra.mxu0 %v6129_v50 }
0x1699   : > { %4998 = vmatprep.subr.bf16.mxu0 %v5529_v1 }
0x169a   : > { %v960_v42 = vpop.permute.xlu0 %959 }
0x169b   : > { %963 = vst.msk [vmem:[#allocation2 + $0x18] sm:$0xf] %vm962_vm6, %v960_v42  ;;  %4314 = vmatmul.mubr.msk.f32.gmra.mrb[24].mxu0 %vm2310_vm7, %v2279_v43 }
0x169c   : > { %2054 = vst.msk [vmem:[#allocation2 + $0x18] sm:$0xf] %vm736_vm3, %v6019_v3  ;;  %2399 = vmatprep.mubr.f32.mxu0 %v5528_v0  ;;  %5000 = vmatpush3.bf16.msra.mxu0 %v6139_v14 }
0x169d   : > { %5007 = vmatprep.subr.bf16.mxu0 %v5529_v1 }
0x169e   : > { %v2280_v44 = vld [vmem:[#allocation2 + $0x10] sm:$0xff] }
0x169f   : > { %4315 = vmatmul.mubr.msk.f32.gmra.mrb[26].mxu0 %vm2310_vm7, %v2280_v44 }
0x16a0   : > { %2405 = vmatprep.mubr.f32.mxu0 %v5528_v0 }
0x16a3   : > { %v2281_v45 = vld [vmem:[#allocation2 + $0x18] sm:$0xff] }
0x16a4   : > { %4316 = vmatmul.mubr.msk.f32.gmra.mrb[28].mxu0 %vm2310_vm7, %v2281_v45 }
0x16a5   : > { %4726 = vmatprep.mubr.msk.f32.mxu0 %vm5530_vm0, %v5528_v0 }
0x16fc   : > { %v2567_v3 = vpop.f32.mrb[20].mxu1 }
0x16fd   : > { %v4706_v48 = vpop.f32.mrb[21].mxu1  ;;  %v2572_v62 = vrot.slane %v2567_v3, 4 }
0x176a   : > { %v2389_v24 = vpop.f32.mrb[22].mxu0 }
0x176b   : > { %v2390_v52 = vadd.f32 %v2389_v24, %v2303_v4  ;;  %v2391_v53 = vpop.f32.mrb[23].mxu0 }
0x176c   : > { %v2392_v54 = vadd.f32 %v2391_v53, %v2307_v51 }
0x176d   : > { %2412 = vst [vmem:[#allocation4] sm:$0xff] %v2390_v52 }
0x176e   : > { %2413 = vst [vmem:[#allocation4 + $0x8] sm:$0xff] %v2392_v54  ;;  %v2395_v55 = vpop.f32.mrb[24].mxu0 }
0x176f   : > { %v2396_v56 = vadd.f32 %v2395_v55, %v2303_v4  ;;  %v2397_v40 = vpop.f32.mrb[25].mxu0 }
0x1770   : > { %v2398_v57 = vadd.f32 %v2397_v40, %v2307_v51 }
0x1771   : > { %2414 = vst [vmem:[#allocation4 + $0x10] sm:$0xff] %v2396_v56 }
0x1772   : > { %2415 = vst [vmem:[#allocation4 + $0x18] sm:$0xff] %v2398_v57  ;;  %v2401_v58 = vpop.f32.mrb[26].mxu0 }
0x1773   : > { %v2402_v59 = vadd.f32 %v2401_v58, %v2303_v4  ;;  %v2403_v60 = vpop.f32.mrb[27].mxu0 }
0x1774   : > { %v2404_v10 = vadd.f32 %v2403_v60, %v2307_v51  ;;  %v2428_v26 = vld [vmem:[#allocation4] sm:$0xf]  ;;  %v2633_v3 = vld [vmem:[#allocation4] sm:$0xf0] }
0x1775   : > { %2416 = vst [vmem:[#allocation4 + $0x20] sm:$0xff] %v2402_v59  ;;  %v2500_v25 = vadd.f32 %v2496_v46, %v2428_v26 }
0x1776   : > { %2417 = vst [vmem:[#allocation4 + $0x28] sm:$0xff] %v2404_v10 }
0x1777   : > { %5260 = vtanh.f32 %v2500_v25  ;;  %v2407_v28 = vpop.f32.mrb[28].mxu0  ;;  %v4317_v8 = vmul.f32 -1.442695, %v2500_v25 }
0x1778   : > { %v2408_v38 = vadd.f32 %v2407_v28, %v2303_v4  ;;  %v2409_v61 = vpop.f32.mrb[29].mxu0 }
0x1779   : > { %v2410_v20 = vadd.f32 %v2409_v61, %v2307_v51 }
0x177a   : > { %2418 = vst [vmem:[#allocation4 + $0x30] sm:$0xff] %v2408_v38 }
0x177b   : > { %2419 = vst [vmem:[#allocation4 + $0x38] sm:$0xff] %v2410_v20 }
0x1781   : > { %v5261_v63 = vpop.eup %5260 }
0x1782   : > { %v2429_v5 = vld [vmem:[#allocation4 + $0x38] sm:$0xf0]  ;;  %2591 = vrot.lane.b32.xlu0 %v5261_v63, %s5531_s12  ;;  %v2634_v4 = vld [vmem:[#allocation4 + $0x38] sm:$0xf] }
0x1783   : > { %v2574_v6 = vadd.f32 %v2572_v62, %v2429_v5 }
0x1785   : > { %5262 = vtanh.f32 %v2574_v6  ;;  %v4318_v15 = vmul.f32 -1.442695, %v2574_v6 }
0x1786   : > { %5264 = vpow2.f32 %v4317_v8 }
0x1787   : > { %5266 = vpow2.f32 %v4318_v15 }
0x178f   : > { %v5263_v7 = vpop.eup %5262 }
0x1790   : > { %2602 = vrot.lane.b32.xlu1 %v5263_v7, %s5531_s12  ;;  %v5265_v9 = vpop.eup %5264 }
0x1791   : > { %v2578_v16 = vadd.f32 1.0, %v5265_v9  ;;  %v5267_v17 = vpop.eup %5266 }
0x1792   : > { %v2584_v19 = vadd.f32 1.0, %v5267_v17 }
0x1793   : > { %5268 = vrcp.f32 %v2578_v16 }
0x1794   : > { %5270 = vrcp.f32 %v2584_v19 }
0x179d   : > { %v5269_v18 = vpop.eup %5268 }
0x179e   : > { %v5271_v22 = vpop.eup %5270  ;;  %v2589_v31 = vmul.f32 0.0, %v5269_v18 }
0x179f   : > { %v2600_v13 = vmul.f32 0.0, %v5271_v22 }
0x17f4   : > { %v2592_v21 = vpop.permute.xlu0 %2591 }
0x17f5   : > { %v2594_v27 = vmul.f32 %v5269_v18, %v2592_v21 }
0x17f7   : > { %2596 = vrot.lane.b32.xlu0 %v2594_v27, %s5531_s12 }
0x1802   : > { %v2603_v29 = vpop.permute.xlu1 %2602 }
0x1803   : > { %v2605_v30 = vmul.f32 %v5271_v22, %v2603_v29 }
0x1805   : > { %2607 = vrot.lane.b32.xlu1 %v2605_v30, %s5531_s12 }
0x1869   : > { %v2597_v33 = vpop.permute.xlu0 %2596 }
0x186a   : > { %v6190_v11 = vadd.f32 %v2597_v33, %v2589_v31 }
0x186c   : > { %5272 = vtanh.f32 %v6190_v11  ;;  %v2802_v38 = vrot.slane %v6190_v11, 4 }
0x1876   : > { %v5273_v34 = vpop.eup %5272 }
0x1877   : > { %v2608_v35 = vpop.permute.xlu1 %2607  ;;  %2613 = vrot.lane.b32.xlu0 %v5273_v34, %s5531_s12 }
0x1878   : > { %v6194_v2 = vadd.f32 %v2608_v35, %v2600_v13  ;;  %v2852_v35 = vld [vmem:[#allocation4 + $0x28] sm:$0xf0] }
0x187a   : > { %5274 = vtanh.f32 %v6194_v2  ;;  %v2816_v63 = vrot.slane %v6194_v2, 4 }
0x1884   : > { %v5275_v36 = vpop.eup %5274 }
0x1885   : > { %2619 = vrot.lane.b32.xlu1 %v5275_v36, %s5531_s12 }
0x18e9   : > { %v2614_v37 = vpop.permute.xlu0 %2613 }
0x18ea   : > { %v2616_v39 = vmul.f32 %v5269_v18, %v2614_v37 }
0x18ec   : > { %2624 = vrot.lane.b32.xlu0 %v2616_v39, %s5532_s29 }
0x18f7   : > { %v2620_v32 = vpop.permute.xlu1 %2619 }
0x18f8   : > { %v6199_v41 = vmul.f32 %v5271_v22, %v2620_v32  ;;  %v2851_v22 = vld [vmem:[#allocation4 + $0x10] sm:$0xf] }
0x18fa   : > { %v2711_v42 = vrot.slane %v6199_v41, 4 }
0x18fc   : > { %2712 = vrot.lane.b32.xlu1 %v2711_v42, %s5532_s29 }
0x195e   : > { %v2625_v43 = vpop.permute.xlu0 %2624 }
0x195f   : > { %2627 = vst.msk [vmem:[%s6208_s28] sm:$0xf] %vm736_vm3, %v2625_v43  ;;  %4716 = vmatmul.mubr.msk.f32.vlgmr.msra.gmra.mrb[22].mxu1 %vm535_vm2, %v2625_v43 }
0x1960   : > { %5003 = vmatpush3.bf16.msra.mxu1 %v6102_v12  ;;  %4737 = vmatprep.mubr.msk.f32.mxu1 %vm5530_vm0, %v5528_v0 }
0x1961   : > { %5004 = vmatprep.subr.bf16.mxu1 %v5529_v1 }
0x1964   : > { %5006 = vmatpush3.bf16.msra.mxu1 %v6108_v23 }
0x1965   : > { %5013 = vmatprep.subr.bf16.mxu1 %v5529_v1 }
0x196e   : > { %v2713_v44 = vpop.permute.xlu1 %2712 }
0x196f   : > { %4727 = vmatmul.mubr.msk.f32.vlgmr.msra.gmra.mrb[30].mxu0 %vm535_vm2, %v2713_v44 }
0x1970   : > { %5009 = vmatpush3.bf16.msra.mxu0 %v6129_v50  ;;  %4748 = vmatprep.mubr.msk.f32.mxu0 %vm5530_vm0, %v5528_v0 }
0x1971   : > { %5010 = vmatprep.subr.bf16.mxu0 %v5529_v1 }
0x1974   : > { %5012 = vmatpush3.bf16.msra.mxu0 %v6139_v14 }
0x1975   : > { %5019 = vmatprep.subr.bf16.mxu0 %v5529_v1 }
0x1a32   : > { %v2703_v45 = vpop.f32.mrb[22].mxu1 }
0x1a33   : > { %v2708_v46 = vrot.slane %v2703_v45, 4  ;;  %v4717_v47 = vpop.f32.mrb[23].mxu1 }
0x1a35   : > { %v2710_v48 = vadd.f32 %v2708_v46, %v2633_v3 }
0x1a37   : > { %5276 = vtanh.f32 %v2710_v48  ;;  %v4321_v54 = vmul.f32 -1.442695, %v2710_v48 }
0x1a41   : > { %v5277_v49 = vpop.eup %5276 }
0x1a42   : > { %v2782_v51 = vpop.f32.mrb[30].mxu0  ;;  %2806 = vrot.lane.b32.xlu0 %v5277_v49, %s5531_s12 }
0x1a43   : > { %v2786_v24 = vadd.f32 %v2782_v51, %v2634_v4  ;;  %v4728_v52 = vpop.f32.mrb[31].mxu0 }
0x1a45   : > { %5278 = vtanh.f32 %v2786_v24  ;;  %v4322_v56 = vmul.f32 -1.442695, %v2786_v24 }
0x1a46   : > { %5280 = vpow2.f32 %v4321_v54 }
0x1a47   : > { %5282 = vpow2.f32 %v4322_v56 }
0x1a4f   : > { %v5279_v53 = vpop.eup %5278 }
0x1a50   : > { %2820 = vrot.lane.b32.xlu1 %v5279_v53, %s5531_s12  ;;  %v5281_v55 = vpop.eup %5280 }
0x1a51   : > { %v2790_v40 = vadd.f32 1.0, %v5281_v55  ;;  %v5283_v57 = vpop.eup %5282 }
0x1a52   : > { %v2796_v59 = vadd.f32 1.0, %v5283_v57 }
0x1a53   : > { %5284 = vrcp.f32 %v2790_v40 }
0x1a54   : > { %5286 = vrcp.f32 %v2796_v59 }
0x1a5d   : > { %v5285_v58 = vpop.eup %5284 }
0x1a5e   : > { %v5287_v26 = vpop.eup %5286  ;;  %v2804_v61 = vmul.f32 %v5285_v58, %v2802_v38 }
0x1a5f   : > { %v2818_v6 = vmul.f32 %v5287_v26, %v2816_v63 }
0x1ab4   : > { %v2807_v60 = vpop.permute.xlu0 %2806 }
0x1ab5   : > { %v2809_v10 = vmul.f32 %v5285_v58, %v2807_v60 }
0x1ab7   : > { %2811 = vrot.lane.b32.xlu0 %v2809_v10, %s5531_s12 }
0x1ac2   : > { %v2821_v25 = vpop.permute.xlu1 %2820 }
0x1ac3   : > { %v2823_v28 = vmul.f32 %v5287_v26, %v2821_v25 }
0x1ac5   : > { %2825 = vrot.lane.b32.xlu1 %v2823_v28, %s5531_s12 }
0x1b29   : > { %v2812_v20 = vpop.permute.xlu0 %2811 }
0x1b2a   : > { %v6231_v62 = vadd.f32 %v2812_v20, %v2804_v61 }
0x1b2c   : > { %5288 = vtanh.f32 %v6231_v62  ;;  %v3022_v4 = vrot.slane %v6231_v62, 4  ;;  %v3071_v62 = vld [vmem:[#allocation4 + $0x10] sm:$0xf0] }
0x1b36   : > { %v5289_v5 = vpop.eup %5288 }
0x1b37   : > { %v2826_v7 = vpop.permute.xlu1 %2825  ;;  %2831 = vrot.lane.b32.xlu0 %v5289_v5, %s5531_s12 }
0x1b38   : > { %v6236_v8 = vadd.f32 %v2826_v7, %v2818_v6  ;;  %v3072_v6 = vld [vmem:[#allocation4 + $0x28] sm:$0xf] }
0x1b3a   : > { %5290 = vtanh.f32 %v6236_v8  ;;  %v3036_v53 = vrot.slane %v6236_v8, 4 }
0x1b44   : > { %v5291_v9 = vpop.eup %5290 }
0x1b45   : > { %2837 = vrot.lane.b32.xlu1 %v5291_v9, %s5531_s12 }
0x1ba9   : > { %v2832_v15 = vpop.permute.xlu0 %2831 }
0x1baa   : > { %v6240_v16 = vmul.f32 %v5285_v58, %v2832_v15 }
0x1bac   : > { %v2853_v17 = vrot.slane %v6240_v16, 4 }
0x1bae   : > { %2854 = vrot.lane.b32.xlu1 %v2853_v17, %s5532_s29 }
0x1bb7   : > { %v2838_v18 = vpop.permute.xlu1 %2837 }
0x1bb8   : > { %v6244_v19 = vmul.f32 %v5287_v26, %v2838_v18 }
0x1bba   : > { %2929 = vrot.lane.b32.xlu0 %v6244_v19, %s5532_s29 }
0x1c20   : > { %v2855_v21 = vpop.permute.xlu1 %2854 }
0x1c21   : > { %4738 = vmatmul.mubr.msk.f32.vlgmr.msra.gmra.mrb[24].mxu1 %vm535_vm2, %v2855_v21 }
0x1c22   : > { %5015 = vmatpush3.bf16.msra.mxu1 %v6102_v12  ;;  %4759 = vmatprep.mubr.msk.f32.mxu1 %vm5530_vm0, %v5528_v0 }
0x1c23   : > { %5016 = vmatprep.subr.bf16.mxu1 %v5529_v1 }
0x1c26   : > { %5018 = vmatpush3.bf16.msra.mxu1 %v6108_v23 }
0x1c27   : > { %5025 = vmatprep.subr.bf16.mxu1 %v5529_v1 }
0x1c2c   : > { %v2930_v27 = vpop.permute.xlu0 %2929 }
0x1c2d   : > { %4749 = vmatmul.mubr.msk.f32.vlgmr.msra.gmra.mrb[32].mxu0 %vm535_vm2, %v2930_v27 }
0x1c2e   : > { %5021 = vmatpush3.bf16.msra.mxu0 %v6129_v50  ;;  %4770 = vmatprep.mubr.msk.f32.mxu0 %vm5530_vm0, %v5528_v0 }
0x1c2f   : > { %5022 = vmatprep.subr.bf16.mxu0 %v5529_v1 }
0x1c32   : > { %5024 = vmatpush3.bf16.msra.mxu0 %v6139_v14 }
0x1c33   : > { %5031 = vmatprep.subr.bf16.mxu0 %v5529_v1 }
0x1cf4   : > { %v2924_v29 = vpop.f32.mrb[24].mxu1 }
0x1cf5   : > { %v2928_v30 = vadd.f32 %v2924_v29, %v2851_v22  ;;  %v4739_v31 = vpop.f32.mrb[25].mxu1 }
0x1cf7   : > { %5292 = vtanh.f32 %v2928_v30  ;;  %v4325_v37 = vmul.f32 -1.442695, %v2928_v30 }
0x1d00   : > { %v2999_v33 = vpop.f32.mrb[32].mxu0 }
0x1d01   : > { %v5293_v11 = vpop.eup %5292  ;;  %v3004_v34 = vrot.slane %v2999_v33, 4  ;;  %v4750_v13 = vpop.f32.mrb[33].mxu0 }
0x1d02   : > { %3026 = vrot.lane.b32.xlu0 %v5293_v11, %s5531_s12 }
0x1d03   : > { %v3006_v2 = vadd.f32 %v3004_v34, %v2852_v35 }
0x1d05   : > { %5294 = vtanh.f32 %v3006_v2  ;;  %v4326_v32 = vmul.f32 -1.442695, %v3006_v2 }
0x1d06   : > { %5296 = vpow2.f32 %v4325_v37 }
0x1d07   : > { %5298 = vpow2.f32 %v4326_v32 }
0x1d0f   : > { %v5295_v36 = vpop.eup %5294 }
0x1d10   : > { %3040 = vrot.lane.b32.xlu1 %v5295_v36, %s5531_s12  ;;  %v5297_v39 = vpop.eup %5296 }
0x1d11   : > { %v3010_v42 = vadd.f32 1.0, %v5297_v39  ;;  %v5299_v43 = vpop.eup %5298 }
0x1d12   : > { %v3016_v45 = vadd.f32 1.0, %v5299_v43 }
0x1d13   : > { %5300 = vrcp.f32 %v3010_v42 }
0x1d14   : > { %5302 = vrcp.f32 %v3016_v45 }
0x1d1d   : > { %v5301_v44 = vpop.eup %5300 }
0x1d1e   : > { %v5303_v3 = vpop.eup %5302  ;;  %v3024_v51 = vmul.f32 %v5301_v44, %v3022_v4 }
0x1d1f   : > { %v3038_v55 = vmul.f32 %v5303_v3, %v3036_v53 }
0x1d74   : > { %v3027_v46 = vpop.permute.xlu0 %3026 }
0x1d75   : > { %v3029_v47 = vmul.f32 %v5301_v44, %v3027_v46 }
0x1d77   : > { %3031 = vrot.lane.b32.xlu0 %v3029_v47, %s5531_s12 }
0x1d82   : > { %v3041_v48 = vpop.permute.xlu1 %3040 }
0x1d83   : > { %v3043_v49 = vmul.f32 %v5303_v3, %v3041_v48 }
0x1d85   : > { %3045 = vrot.lane.b32.xlu1 %v3043_v49, %s5531_s12 }
0x1de9   : > { %v3032_v24 = vpop.permute.xlu0 %3031 }
0x1dea   : > { %v6267_v52 = vadd.f32 %v3032_v24, %v3024_v51  ;;  %v3289_v24 = vld [vmem:[#allocation4 + $0x20] sm:$0xf] }
0x1dec   : > { %5304 = vtanh.f32 %v6267_v52  ;;  %v3240_v35 = vrot.slane %v6267_v52, 4 }
0x1df6   : > { %v5305_v54 = vpop.eup %5304 }
0x1df7   : > { %v3046_v56 = vpop.permute.xlu1 %3045  ;;  %3051 = vrot.lane.b32.xlu0 %v5305_v54, %s5531_s12 }
0x1df8   : > { %v6272_v40 = vadd.f32 %v3046_v56, %v3038_v55 }
0x1dfa   : > { %5306 = vtanh.f32 %v6272_v40  ;;  %v3254_v39 = vrot.slane %v6272_v40, 4 }
0x1e04   : > { %v5307_v57 = vpop.eup %5306 }
0x1e05   : > { %3057 = vrot.lane.b32.xlu1 %v5307_v57, %s5531_s12 }
0x1e69   : > { %v3052_v58 = vpop.permute.xlu0 %3051 }
0x1e6a   : > { %v3054_v59 = vmul.f32 %v5301_v44, %v3052_v58  ;;  %v3290_v58 = vld [vmem:[#allocation4 + $0x18] sm:$0xf0] }
0x1e6c   : > { %3062 = vrot.lane.b32.xlu0 %v3054_v59, %s5532_s29 }
0x1e77   : > { %v3058_v60 = vpop.permute.xlu1 %3057 }
0x1e78   : > { %v6277_v10 = vmul.f32 %v5303_v3, %v3058_v60 }
0x1e7a   : > { %v3149_v26 = vrot.slane %v6277_v10, 4 }
0x1e7c   : > { %3150 = vrot.lane.b32.xlu1 %v3149_v26, %s5532_s29 }
0x1ede   : > { %v6281_v25 = vpop.permute.xlu0 %3062 }
0x1edf   : > { %4760 = vmatmul.mubr.msk.f32.vlgmr.msra.gmra.mrb[26].mxu1 %vm535_vm2, %v6281_v25  ;;  %3065 = vst.msk [vmem:[%s6208_s28 + $0x8] sm:$0xf] %vm736_vm3, %v6281_v25 }
0x1ee0   : > { %5027 = vmatpush3.bf16.msra.mxu1 %v6102_v12  ;;  %4781 = vmatprep.mubr.msk.f32.mxu1 %vm5530_vm0, %v5528_v0 }
0x1ee1   : > { %5028 = vmatprep.subr.bf16.mxu1 %v5529_v1 }
0x1ee4   : > { %5030 = vmatpush3.bf16.msra.mxu1 %v6108_v23 }
0x1ee5   : > { %5037 = vmatprep.subr.bf16.mxu1 %v5529_v1 }
0x1eee   : > { %v3151_v28 = vpop.permute.xlu1 %3150 }
0x1eef   : > { %4771 = vmatmul.mubr.msk.f32.vlgmr.msra.gmra.mrb[34].mxu0 %vm535_vm2, %v3151_v28 }
0x1ef0   : > { %5033 = vmatpush3.bf16.msra.mxu0 %v6129_v50  ;;  %4792 = vmatprep.mubr.msk.f32.mxu0 %vm5530_vm0, %v5528_v0 }
0x1ef1   : > { %5034 = vmatprep.subr.bf16.mxu0 %v5529_v1 }
0x1ef4   : > { %5036 = vmatpush3.bf16.msra.mxu0 %v6139_v14 }
0x1ef5   : > { %5043 = vmatprep.subr.bf16.mxu0 %v5529_v1 }
0x1fb2   : > { %v3141_v38 = vpop.f32.mrb[26].mxu1 }
0x1fb3   : > { %v3146_v61 = vrot.slane %v3141_v38, 4  ;;  %v4761_v20 = vpop.f32.mrb[27].mxu1 }
0x1fb5   : > { %v3148_v63 = vadd.f32 %v3146_v61, %v3071_v62 }
0x1fb7   : > { %5308 = vtanh.f32 %v3148_v63  ;;  %v4329_v17 = vmul.f32 -1.442695, %v3148_v63 }
0x1fc1   : > { %v5309_v5 = vpop.eup %5308 }
0x1fc2   : > { %v3220_v7 = vpop.f32.mrb[34].mxu0  ;;  %3244 = vrot.lane.b32.xlu0 %v5309_v5, %s5531_s12 }
0x1fc3   : > { %v3224_v8 = vadd.f32 %v3220_v7, %v3072_v6  ;;  %v4772_v9 = vpop.f32.mrb[35].mxu0 }
0x1fc5   : > { %5310 = vtanh.f32 %v3224_v8  ;;  %v4330_v21 = vmul.f32 -1.442695, %v3224_v8 }
0x1fc6   : > { %5312 = vpow2.f32 %v4329_v17 }
0x1fc7   : > { %5314 = vpow2.f32 %v4330_v21 }
0x1fcf   : > { %v5311_v15 = vpop.eup %5310 }
0x1fd0   : > { %3258 = vrot.lane.b32.xlu1 %v5311_v15, %s5531_s12  ;;  %v5313_v18 = vpop.eup %5312 }
0x1fd1   : > { %v3228_v27 = vadd.f32 1.0, %v5313_v18  ;;  %v5315_v22 = vpop.eup %5314 }
0x1fd2   : > { %v3234_v30 = vadd.f32 1.0, %v5315_v22 }
0x1fd3   : > { %5316 = vrcp.f32 %v3228_v27 }
0x1fd4   : > { %5318 = vrcp.f32 %v3234_v30 }
0x1fdd   : > { %v5317_v29 = vpop.eup %5316 }
0x1fde   : > { %v5319_v11 = vpop.eup %5318  ;;  %v3242_v2 = vmul.f32 %v5317_v29, %v3240_v35 }
0x1fdf   : > { %v3256_v42 = vmul.f32 %v5319_v11, %v3254_v39 }
0x2034   : > { %v3245_v31 = vpop.permute.xlu0 %3244 }
0x2035   : > { %v3247_v33 = vmul.f32 %v5317_v29, %v3245_v31 }
0x2037   : > { %3249 = vrot.lane.b32.xlu0 %v3247_v33, %s5531_s12 }
0x2042   : > { %v3259_v34 = vpop.permute.xlu1 %3258 }
0x2043   : > { %v3261_v13 = vmul.f32 %v5319_v11, %v3259_v34 }
0x2045   : > { %3263 = vrot.lane.b32.xlu1 %v3261_v13, %s5531_s12 }
0x20a9   : > { %v3250_v36 = vpop.permute.xlu0 %3249 }
0x20aa   : > { %v6303_v37 = vadd.f32 %v3250_v36, %v3242_v2 }
0x20ac   : > { %5320 = vtanh.f32 %v6303_v37  ;;  %v3460_v15 = vrot.slane %v6303_v37, 4 }
0x20b6   : > { %v5321_v32 = vpop.eup %5320 }
0x20b7   : > { %v3264_v43 = vpop.permute.xlu1 %3263  ;;  %3269 = vrot.lane.b32.xlu0 %v5321_v32, %s5531_s12 }
0x20b8   : > { %v6308_v44 = vadd.f32 %v3264_v43, %v3256_v42  ;;  %v3509_v43 = vld [vmem:[#allocation4 + $0x20] sm:$0xf0] }
0x20ba   : > { %5322 = vtanh.f32 %v6308_v44  ;;  %v3474_v27 = vrot.slane %v6308_v44, 4 }
0x20c4   : > { %v5323_v45 = vpop.eup %5322 }
0x20c5   : > { %3275 = vrot.lane.b32.xlu1 %v5323_v45, %s5531_s12 }
0x2129   : > { %v3270_v46 = vpop.permute.xlu0 %3269 }
0x212a   : > { %v6312_v47 = vmul.f32 %v5317_v29, %v3270_v46  ;;  %v3510_v46 = vld [vmem:[#allocation4 + $0x18] sm:$0xf] }
0x212c   : > { %v3291_v3 = vrot.slane %v6312_v47, 4 }
0x212e   : > { %3292 = vrot.lane.b32.xlu1 %v3291_v3, %s5532_s29 }
0x2137   : > { %v3276_v48 = vpop.permute.xlu1 %3275 }
0x2138   : > { %v6316_v49 = vmul.f32 %v5319_v11, %v3276_v48 }
0x213a   : > { %3367 = vrot.lane.b32.xlu0 %v6316_v49, %s5532_s29 }
0x21a0   : > { %v3293_v4 = vpop.permute.xlu1 %3292 }
0x21a1   : > { %4782 = vmatmul.mubr.msk.f32.vlgmr.msra.gmra.mrb[28].mxu1 %vm535_vm2, %v3293_v4 }
0x21a2   : > { %5039 = vmatpush3.bf16.msra.mxu1 %v6102_v12  ;;  %4803 = vmatprep.mubr.msk.f32.mxu1 %vm5530_vm0, %v5528_v0 }
0x21a3   : > { %5040 = vmatprep.subr.bf16.mxu1 %v5529_v1 }
0x21a6   : > { %5042 = vmatpush3.bf16.msra.mxu1 %v6108_v23 }
0x21a7   : > { %5049 = vmatprep.subr.bf16.mxu1 %v5529_v1 }
0x21ac   : > { %v3368_v51 = vpop.permute.xlu0 %3367 }
0x21ad   : > { %4793 = vmatmul.mubr.msk.f32.vlgmr.msra.gmra.mrb[36].mxu0 %vm535_vm2, %v3368_v51 }
0x21ae   : > { %5045 = vmatpush3.bf16.msra.mxu0 %v6129_v50  ;;  %4814 = vmatprep.mubr.msk.f32.mxu0 %vm5530_vm0, %v5528_v0 }
0x21af   : > { %5046 = vmatprep.subr.bf16.mxu0 %v5529_v1 }
0x21b2   : > { %5048 = vmatpush3.bf16.msra.mxu0 %v6139_v14 }
0x21b3   : > { %5055 = vmatprep.subr.bf16.mxu0 %v5529_v1 }
0x2274   : > { %v3362_v52 = vpop.f32.mrb[28].mxu1 }
0x2275   : > { %v3366_v53 = vadd.f32 %v3362_v52, %v3289_v24  ;;  %v4783_v54 = vpop.f32.mrb[29].mxu1 }
0x2277   : > { %5324 = vtanh.f32 %v3366_v53  ;;  %v4333_v26 = vmul.f32 -1.442695, %v3366_v53 }
0x2280   : > { %v3437_v55 = vpop.f32.mrb[36].mxu0 }
0x2281   : > { %v5325_v56 = vpop.eup %5324  ;;  %v3442_v40 = vrot.slane %v3437_v55, 4  ;;  %v4794_v57 = vpop.f32.mrb[37].mxu0 }
0x2282   : > { %3464 = vrot.lane.b32.xlu0 %v5325_v56, %s5531_s12 }
0x2283   : > { %v3444_v59 = vadd.f32 %v3442_v40, %v3290_v58 }
0x2285   : > { %5326 = vtanh.f32 %v3444_v59  ;;  %v4334_v38 = vmul.f32 -1.442695, %v3444_v59 }
0x2286   : > { %5328 = vpow2.f32 %v4333_v26 }
0x2287   : > { %5330 = vpow2.f32 %v4334_v38 }
0x228f   : > { %v5327_v60 = vpop.eup %5326 }
0x2290   : > { %3478 = vrot.lane.b32.xlu1 %v5327_v60, %s5531_s12  ;;  %v5329_v28 = vpop.eup %5328 }
0x2291   : > { %v3448_v61 = vadd.f32 1.0, %v5329_v28  ;;  %v5331_v20 = vpop.eup %5330 }
0x2292   : > { %v3454_v63 = vadd.f32 1.0, %v5331_v20 }
0x2293   : > { %5332 = vrcp.f32 %v3448_v61 }
0x2294   : > { %5334 = vrcp.f32 %v3454_v63 }
0x229d   : > { %v5333_v62 = vpop.eup %5332 }
0x229e   : > { %v5335_v7 = vpop.eup %5334  ;;  %v3462_v17 = vmul.f32 %v5333_v62, %v3460_v15 }
0x229f   : > { %v3476_v29 = vmul.f32 %v5335_v7, %v3474_v27 }
0x22f4   : > { %v3465_v5 = vpop.permute.xlu0 %3464 }
0x22f5   : > { %v3467_v6 = vmul.f32 %v5333_v62, %v3465_v5 }
0x22f7   : > { %3469 = vrot.lane.b32.xlu0 %v3467_v6, %s5531_s12 }
0x2302   : > { %v3479_v8 = vpop.permute.xlu1 %3478 }
0x2303   : > { %v3481_v9 = vmul.f32 %v5335_v7, %v3479_v8 }
0x2305   : > { %3483 = vrot.lane.b32.xlu1 %v3481_v9, %s5531_s12 }
0x2369   : > { %v3470_v18 = vpop.permute.xlu0 %3469 }
0x236a   : > { %v6339_v21 = vadd.f32 %v3470_v18, %v3462_v17 }
0x236c   : > { %5336 = vtanh.f32 %v6339_v21  ;;  %v3678_v28 = vrot.slane %v6339_v21, 4 }
0x2376   : > { %v5337_v22 = vpop.eup %5336 }
0x2377   : > { %v3484_v30 = vpop.permute.xlu1 %3483  ;;  %3489 = vrot.lane.b32.xlu0 %v5337_v22, %s5531_s12 }
0x2378   : > { %v6344_v31 = vadd.f32 %v3484_v30, %v3476_v29 }
0x237a   : > { %5338 = vtanh.f32 %v6344_v31 }
0x2384   : > { %v5339_v33 = vpop.eup %5338 }
0x2385   : > { %3495 = vrot.lane.b32.xlu1 %v5339_v33, %s5531_s12 }
0x23e9   : > { %v3490_v11 = vpop.permute.xlu0 %3489 }
0x23ea   : > { %v3492_v34 = vmul.f32 %v5333_v62, %v3490_v11  ;;  %v3692_v62 = vrot.slane %v6344_v31, 4 }
0x23ec   : > { %3500 = vrot.lane.b32.xlu0 %v3492_v34, %s5532_s29 }
0x23f7   : > { %v3496_v13 = vpop.permute.xlu1 %3495 }
0x23f8   : > { %v6349_v35 = vmul.f32 %v5335_v7, %v3496_v13  ;;  %v3728_v13 = vld [vmem:[#allocation4 + $0x8] sm:$0xf0] }
0x23fa   : > { %v3587_v2 = vrot.slane %v6349_v35, 4 }
0x23fc   : > { %3588 = vrot.lane.b32.xlu1 %v3587_v2, %s5532_s29 }
0x245e   : > { %v6353_v36 = vpop.permute.xlu0 %3500 }
0x245f   : > { %4804 = vmatmul.mubr.msk.f32.vlgmr.msra.gmra.mrb[30].mxu1 %vm535_vm2, %v6353_v36 }
0x2460   : > { %5051 = vmatpush3.bf16.msra.mxu1 %v6102_v12  ;;  %4825 = vmatprep.mubr.msk.f32.mxu1 %vm5530_vm0, %v5528_v0 }
0x2461   : > { %5052 = vmatprep.subr.bf16.mxu1 %v5529_v1 }
0x2464   : > { %5054 = vmatpush3.bf16.msra.mxu1 %v6108_v23 }
0x2465   : > { %5061 = vmatprep.subr.bf16.mxu1 %v5529_v1 }
0x246e   : > { %v3589_v37 = vpop.permute.xlu1 %3588 }
0x246f   : > { %4815 = vmatmul.mubr.msk.f32.vlgmr.msra.gmra.mrb[38].mxu0 %vm535_vm2, %v3589_v37 }
0x2470   : > { %5057 = vmatpush3.bf16.msra.mxu0 %v6129_v50  ;;  %4836 = vmatprep.mubr.msk.f32.mxu0 %vm5530_vm0, %v5528_v0 }
0x2471   : > { %5058 = vmatprep.subr.bf16.mxu0 %v5529_v1 }
0x2474   : > { %5060 = vmatpush3.bf16.msra.mxu0 %v6139_v14 }
0x2475   : > { %5067 = vmatprep.subr.bf16.mxu0 %v5529_v1 }
0x2532   : > { %v3579_v39 = vpop.f32.mrb[30].mxu1 }
0x2533   : > { %v3584_v32 = vrot.slane %v3579_v39, 4  ;;  %v4805_v42 = vpop.f32.mrb[31].mxu1 }
0x2535   : > { %v3586_v44 = vadd.f32 %v3584_v32, %v3509_v43 }
0x2537   : > { %5340 = vtanh.f32 %v3586_v44  ;;  %v4337_v24 = vmul.f32 -1.442695, %v3586_v44 }
0x2541   : > { %v5341_v45 = vpop.eup %5340 }
0x2542   : > { %v3658_v3 = vpop.f32.mrb[38].mxu0  ;;  %3682 = vrot.lane.b32.xlu0 %v5341_v45, %s5531_s12 }
0x2543   : > { %v3662_v48 = vadd.f32 %v3658_v3, %v3510_v46  ;;  %v4816_v4 = vpop.f32.mrb[39].mxu0 }
0x2545   : > { %5342 = vtanh.f32 %v3662_v48  ;;  %v4338_v53 = vmul.f32 -1.442695, %v3662_v48 }
0x2546   : > { %5344 = vpow2.f32 %v4337_v24 }
0x2547   : > { %5346 = vpow2.f32 %v4338_v53 }
0x254f   : > { %v5343_v51 = vpop.eup %5342 }
0x2550   : > { %3696 = vrot.lane.b32.xlu1 %v5343_v51, %s5531_s12  ;;  %v5345_v52 = vpop.eup %5344 }
0x2551   : > { %v3666_v54 = vadd.f32 1.0, %v5345_v52  ;;  %v5347_v55 = vpop.eup %5346 }
0x2552   : > { %v3672_v40 = vadd.f32 1.0, %v5347_v55 }
0x2553   : > { %5348 = vrcp.f32 %v3666_v54 }
0x2554   : > { %5350 = vrcp.f32 %v3672_v40 }
0x255d   : > { %v5349_v56 = vpop.eup %5348 }
0x255e   : > { %v5351_v59 = vpop.eup %5350  ;;  %v3680_v38 = vmul.f32 %v5349_v56, %v3678_v28 }
0x255f   : > { %v3694_v5 = vmul.f32 %v5351_v59, %v3692_v62 }
0x25b4   : > { %v3683_v57 = vpop.permute.xlu0 %3682 }
0x25b5   : > { %v3685_v58 = vmul.f32 %v5349_v56, %v3683_v57 }
0x25b7   : > { %3687 = vrot.lane.b32.xlu0 %v3685_v58, %s5531_s12 }
0x25c2   : > { %v3697_v60 = vpop.permute.xlu1 %3696 }
0x25c3   : > { %v3699_v26 = vmul.f32 %v5351_v59, %v3697_v60 }
0x25c5   : > { %3701 = vrot.lane.b32.xlu1 %v3699_v26, %s5531_s12 }
0x2629   : > { %v3688_v61 = vpop.permute.xlu0 %3687 }
0x262a   : > { %v6375_v20 = vadd.f32 %v3688_v61, %v3680_v38 }
0x262c   : > { %5352 = vtanh.f32 %v6375_v20  ;;  %v3898_v48 = vrot.slane %v6375_v20, 4 }
0x2636   : > { %v5353_v63 = vpop.eup %5352 }
0x2637   : > { %v3702_v6 = vpop.permute.xlu1 %3701  ;;  %3707 = vrot.lane.b32.xlu0 %v5353_v63, %s5531_s12  ;;  %v3947_v63 = vld [vmem:[#allocation4 + $0x30] sm:$0xf0] }
0x2638   : > { %v6380_v7 = vadd.f32 %v3702_v6, %v3694_v5 }
0x263a   : > { %5354 = vtanh.f32 %v6380_v7  ;;  %v3912_v52 = vrot.slane %v6380_v7, 4  ;;  %v3948_v7 = vld [vmem:[#allocation4 + $0x8] sm:$0xf] }
0x2644   : > { %v5355_v8 = vpop.eup %5354 }
0x2645   : > { %3713 = vrot.lane.b32.xlu1 %v5355_v8, %s5531_s12 }
0x26a9   : > { %v3708_v9 = vpop.permute.xlu0 %3707 }
0x26aa   : > { %v6384_v15 = vmul.f32 %v5349_v56, %v3708_v9 }
0x26ac   : > { %v3729_v17 = vrot.slane %v6384_v15, 4 }
0x26ae   : > { %3730 = vrot.lane.b32.xlu1 %v3729_v17, %s5532_s29 }
0x26b7   : > { %v3714_v18 = vpop.permute.xlu1 %3713 }
0x26b8   : > { %v6388_v21 = vmul.f32 %v5351_v59, %v3714_v18 }
0x26ba   : > { %3805 = vrot.lane.b32.xlu0 %v6388_v21, %s5532_s29 }
0x2720   : > { %v3731_v27 = vpop.permute.xlu1 %3730 }
0x2721   : > { %4826 = vmatmul.mubr.msk.f32.vlgmr.msra.gmra.mrb[32].mxu1 %vm535_vm2, %v3731_v27 }
0x2722   : > { %5063 = vmatpush3.bf16.msra.mxu1 %v6102_v12  ;;  %4847 = vmatprep.mubr.msk.f32.mxu1 %vm5530_vm0, %v5528_v0  ;;  %v3727_v12 = vld [vmem:[#allocation4 + $0x30] sm:$0xf] }
0x2723   : > { %5064 = vmatprep.subr.bf16.mxu1 %v5529_v1 }
0x2726   : > { %5066 = vmatpush3.bf16.msra.mxu1 %v6108_v23 }
0x272c   : > { %v3806_v22 = vpop.permute.xlu0 %3805 }
0x272d   : > { %4837 = vmatmul.mubr.msk.f32.vlgmr.msra.gmra.mrb[40].mxu0 %vm535_vm2, %v3806_v22 }
0x272e   : > { %5069 = vmatpush3.bf16.msra.mxu0 %v6129_v50  ;;  %4858 = vmatprep.mubr.msk.f32.mxu0 %vm5530_vm0, %v5528_v0 }
0x272f   : > { %5070 = vmatprep.subr.bf16.mxu0 %v5529_v1 }
0x2732   : > { %5072 = vmatpush3.bf16.msra.mxu0 %v6139_v14 }
0x27f4   : > { %v3800_v29 = vpop.f32.mrb[32].mxu1 }
0x27f5   : > { %v3804_v30 = vadd.f32 %v3800_v29, %v3727_v12  ;;  %v4827_v31 = vpop.f32.mrb[33].mxu1 }
0x27f7   : > { %5356 = vtanh.f32 %v3804_v30  ;;  %v4341_v0 = vmul.f32 -1.442695, %v3804_v30 }
0x2800   : > { %v3875_v33 = vpop.f32.mrb[40].mxu0 }
0x2801   : > { %v5357_v11 = vpop.eup %5356  ;;  %v3880_v23 = vrot.slane %v3875_v33, 4  ;;  %v4838_v34 = vpop.f32.mrb[41].mxu0 }
0x2802   : > { %3902 = vrot.lane.b32.xlu0 %v5357_v11, %s5531_s12 }
0x2803   : > { %v3882_v50 = vadd.f32 %v3880_v23, %v3728_v13 }
0x2805   : > { %5358 = vtanh.f32 %v3882_v50  ;;  %v4342_v14 = vmul.f32 -1.442695, %v3882_v50 }
0x2806   : > { %5360 = vpow2.f32 %v4341_v0 }
0x2807   : > { %5362 = vpow2.f32 %v4342_v14 }
0x280f   : > { %v5359_v2 = vpop.eup %5358 }
0x2810   : > { %3916 = vrot.lane.b32.xlu1 %v5359_v2, %s5531_s12  ;;  %v5361_v1 = vpop.eup %5360 }
0x2811   : > { %v3886_v37 = vadd.f32 1.0, %v5361_v1  ;;  %v5363_v39 = vpop.eup %5362 }
0x2812   : > { %v3892_v42 = vadd.f32 1.0, %v5363_v39 }
0x2813   : > { %5364 = vrcp.f32 %v3886_v37 }
0x2814   : > { %5366 = vrcp.f32 %v3892_v42 }
0x281d   : > { %v5365_v32 = vpop.eup %5364 }
0x281e   : > { %v5367_v45 = vpop.eup %5366  ;;  %v3900_v4 = vmul.f32 %v5365_v32, %v3898_v48 }
0x281f   : > { %v3914_v54 = vmul.f32 %v5367_v45, %v3912_v52 }
0x2874   : > { %v3903_v43 = vpop.permute.xlu0 %3902 }
0x2875   : > { %v3905_v44 = vmul.f32 %v5365_v32, %v3903_v43 }
0x2877   : > { %3907 = vrot.lane.b32.xlu0 %v3905_v44, %s5531_s12 }
0x2882   : > { %v3917_v46 = vpop.permute.xlu1 %3916 }
0x2883   : > { %v3919_v3 = vmul.f32 %v5367_v45, %v3917_v46 }
0x2885   : > { %3921 = vrot.lane.b32.xlu1 %v3919_v3, %s5531_s12 }
0x28e9   : > { %v3908_v51 = vpop.permute.xlu0 %3907 }
0x28ea   : > { %v3910_v24 = vadd.f32 %v3908_v51, %v3900_v4 }
0x28ec   : > { %5368 = vtanh.f32 %v3910_v24  ;;  %v4116_v2 = vrot.slane %v3910_v24, 4 }
0x28f6   : > { %v5369_v53 = vpop.eup %5368 }
0x28f7   : > { %v3922_v55 = vpop.permute.xlu1 %3921  ;;  %3927 = vrot.lane.b32.xlu0 %v5369_v53, %s5531_s12 }
0x28f8   : > { %v3924_v56 = vadd.f32 %v3922_v55, %v3914_v54 }
0x28fa   : > { %5370 = vtanh.f32 %v3924_v56  ;;  %v4130_v37 = vrot.slane %v3924_v56, 4 }
0x2904   : > { %v5371_v40 = vpop.eup %5370 }
0x2905   : > { %3933 = vrot.lane.b32.xlu1 %v5371_v40, %s5531_s12 }
0x2969   : > { %v3928_v57 = vpop.permute.xlu0 %3927 }
0x296a   : > { %v3930_v58 = vmul.f32 %v5365_v32, %v3928_v57 }
0x296c   : > { %3938 = vrot.lane.b32.xlu0 %v3930_v58, %s5532_s29 }
0x2977   : > { %v3934_v59 = vpop.permute.xlu1 %3933 }
0x2978   : > { %v3936_v60 = vmul.f32 %v5367_v45, %v3934_v59 }
0x297a   : > { %v4025_v26 = vrot.slane %v3936_v60, 4 }
0x297c   : > { %4026 = vrot.lane.b32.xlu1 %v4025_v26, %s5532_s29 }
0x29de   : > { %v6414_v28 = vpop.permute.xlu0 %3938 }
0x29df   : > { %4848 = vmatmul.mubr.msk.f32.vlgmr.msra.gmra.mrb[34].mxu1 %vm535_vm2, %v6414_v28 }
0x29ee   : > { %v4027_v38 = vpop.permute.xlu1 %4026 }
0x29ef   : > { %4859 = vmatmul.mubr.msk.f32.vlgmr.msra.gmra.mrb[42].mxu0 %vm535_vm2, %v4027_v38 }
0x2ab2   : > { %v4017_v61 = vpop.f32.mrb[34].mxu1 }
0x2ab3   : > { %v4022_v20 = vrot.slane %v4017_v61, 4  ;;  %v4849_v62 = vpop.f32.mrb[35].mxu1 }
0x2ab5   : > { %v4024_v5 = vadd.f32 %v4022_v20, %v3947_v63 }
0x2ab7   : > { %5372 = vtanh.f32 %v4024_v5  ;;  %v4345_v27 = vmul.f32 -1.442695, %v4024_v5 }
0x2ac1   : > { %v5373_v6 = vpop.eup %5372 }
0x2ac2   : > { %v4096_v8 = vpop.f32.mrb[42].mxu0  ;;  %4120 = vrot.lane.b32.xlu0 %v5373_v6, %s5531_s12 }
0x2ac3   : > { %v4100_v9 = vadd.f32 %v4096_v8, %v3948_v7  ;;  %v4860_v17 = vpop.f32.mrb[43].mxu0 }
0x2ac5   : > { %5374 = vtanh.f32 %v4100_v9  ;;  %v4346_v12 = vmul.f32 -1.442695, %v4100_v9 }
0x2ac6   : > { %5376 = vpow2.f32 %v4345_v27 }
0x2ac7   : > { %5378 = vpow2.f32 %v4346_v12 }
0x2acf   : > { %v5375_v18 = vpop.eup %5374 }
0x2ad0   : > { %4134 = vrot.lane.b32.xlu1 %v5375_v18, %s5531_s12  ;;  %v5377_v22 = vpop.eup %5376 }
0x2ad1   : > { %v4104_v29 = vadd.f32 1.0, %v5377_v22  ;;  %v5379_v30 = vpop.eup %5378 }
0x2ad2   : > { %v4110_v33 = vadd.f32 1.0, %v5379_v30 }
0x2ad3   : > { %5380 = vrcp.f32 %v4104_v29 }
0x2ad4   : > { %5382 = vrcp.f32 %v4110_v33 }
0x2add   : > { %v5381_v31 = vpop.eup %5380 }
0x2ade   : > { %v5383_v34 = vpop.eup %5382  ;;  %v4118_v0 = vmul.f32 %v5381_v31, %v4116_v2 }
0x2adf   : > { %v4132_v32 = vmul.f32 %v5383_v34, %v4130_v37 }
0x2b34   : > { %v4121_v11 = vpop.permute.xlu0 %4120 }
0x2b35   : > { %v4123_v23 = vmul.f32 %v5381_v31, %v4121_v11 }
0x2b37   : > { %4125 = vrot.lane.b32.xlu0 %v4123_v23, %s5531_s12 }
0x2b42   : > { %v4135_v13 = vpop.permute.xlu1 %4134 }
0x2b43   : > { %v4137_v50 = vmul.f32 %v5383_v34, %v4135_v13 }
0x2b45   : > { %4139 = vrot.lane.b32.xlu1 %v4137_v50, %s5531_s12 }
0x2ba9   : > { %v4126_v1 = vpop.permute.xlu0 %4125 }
0x2baa   : > { %v4128_v14 = vadd.f32 %v4126_v1, %v4118_v0 }
0x2bac   : > { %5384 = vtanh.f32 %v4128_v14 }
0x2bb6   : > { %v5385_v39 = vpop.eup %5384 }
0x2bb7   : > { %v4140_v42 = vpop.permute.xlu1 %4139  ;;  %4145 = vrot.lane.b32.xlu0 %v5385_v39, %s5531_s12 }
0x2bb8   : > { %v4142_v43 = vadd.f32 %v4140_v42, %v4132_v32 }
0x2bba   : > { %5386 = vtanh.f32 %v4142_v43 }
0x2bbb   : > { %2629 = vrot.lane.b32.xlu0 %v6199_v41, %s5533_s15 }
0x2bbf   : > { %2847 = vrot.lane.b32.xlu0 %v6244_v19, %s5533_s15 }
0x2bc3   : > { %3280 = vrot.lane.b32.xlu0 %v6312_v47, %s5532_s29 }
0x2bc4   : > { %v5387_v44 = vpop.eup %5386 }
0x2bc5   : > { %4151 = vrot.lane.b32.xlu1 %v5387_v44, %s5531_s12 }
0x2bc7   : > { %3505 = vrot.lane.b32.xlu0 %v6349_v35, %s5533_s15 }
0x2bc9   : > { %2842 = vrot.lane.b32.xlu1 %v6240_v16, %s5532_s29 }
0x2bcb   : > { %3723 = vrot.lane.b32.xlu0 %v6388_v21, %s5533_s15 }
0x2bcd   : > { %3067 = vrot.lane.b32.xlu1 %v6277_v10, %s5533_s15 }
0x2bd1   : > { %3285 = vrot.lane.b32.xlu1 %v6316_v49, %s5533_s15 }
0x2bd5   : > { %3718 = vrot.lane.b32.xlu1 %v6384_v15, %s5532_s29 }
0x2bd9   : > { %3943 = vrot.lane.b32.xlu1 %v3936_v60, %s5533_s15 }
0x2c29   : > { %v4146_v41 = vpop.permute.xlu0 %4145 }
0x2c2a   : > { %v4148_v19 = vmul.f32 %v5381_v31, %v4146_v41 }
0x2c2c   : > { %4156 = vrot.lane.b32.xlu0 %v4148_v19, %s5532_s29 }
0x2c2d   : > { %v2630_v16 = vpop.permute.xlu0 %2629 }
0x2c2e   : > { %2632 = vst.msk [vmem:[%s6208_s28 + $0x18] sm:$0xf0] %vm742_vm5, %v2630_v16 }
0x2c31   : > { %v2848_v10 = vpop.permute.xlu0 %2847 }
0x2c32   : > { %2850 = vst.msk [vmem:[%s6208_s28 + $0x18] sm:$0xf] %vm962_vm6, %v2848_v10 }
0x2c33   : > { %3941 = vst.msk [vmem:[%s6208_s28 + $0x18] sm:$0xf] %vm736_vm3, %v6414_v28 }
0x2c35   : > { %v3281_v35 = vpop.permute.xlu0 %3280 }
0x2c36   : > { %3283 = vst.msk [vmem:[%s6208_s28 + $0x8] sm:$0xf0] %vm956_vm4, %v3281_v35 }
0x2c37   : > { %v4152_v47 = vpop.permute.xlu1 %4151 }
0x2c38   : > { %v4154_v49 = vmul.f32 %v5383_v34, %v4152_v47 }
0x2c39   : > { %v3506_v21 = vpop.permute.xlu0 %3505 }
0x2c3a   : > { %4161 = vrot.lane.b32.xlu1 %v4154_v49, %s5533_s15  ;;  %3508 = vst.msk [vmem:[%s6208_s28 + $0x8] sm:$0xf0] %vm742_vm5, %v3506_v21 }
0x2c3b   : > { %v2843_v15 = vpop.permute.xlu1 %2842 }
0x2c3c   : > { %2845 = vst.msk [vmem:[%s6208_s28] sm:$0xf0] %vm956_vm4, %v2843_v15 }
0x2c3d   : > { %v3724_v46 = vpop.permute.xlu0 %3723 }
0x2c3e   : > { %3726 = vst.msk [vmem:[%s6208_s28 + $0x8] sm:$0xf] %vm962_vm6, %v3724_v46 }
0x2c3f   : > { %v3068_v45 = vpop.permute.xlu1 %3067 }
0x2c40   : > { %3070 = vst.msk [vmem:[%s6208_s28 + $0x10] sm:$0xf0] %vm742_vm5, %v3068_v45 }
0x2c43   : > { %v3286_v25 = vpop.permute.xlu1 %3285 }
0x2c44   : > { %3288 = vst.msk [vmem:[%s6208_s28 + $0x10] sm:$0xf] %vm962_vm6, %v3286_v25 }
0x2c45   : > { %3503 = vst.msk [vmem:[%s6208_s28 + $0x10] sm:$0xf] %vm736_vm3, %v6353_v36 }
0x2c47   : > { %v3719_v3 = vpop.permute.xlu1 %3718 }
0x2c48   : > { %3721 = vst.msk [vmem:[%s6208_s28 + $0x10] sm:$0xf0] %vm956_vm4, %v3719_v3 }
0x2c4b   : > { %v3944_v48 = vpop.permute.xlu1 %3943 }
0x2c4c   : > { %3946 = vst.msk [vmem:[%s6208_s28] sm:$0xf0] %vm742_vm5, %v3944_v48 }
0x2c9e   : > { %v4157_v4 = vpop.permute.xlu0 %4156 }
0x2c9f   : > { %4159 = vst.msk [vmem:[%s6208_s28 + $0x18] sm:$0xf0] %vm956_vm4, %v4157_v4 }
0x2cac   : > { %v4162_v51 = vpop.permute.xlu1 %4161 }
0x2cad   : > { %4164 = vst.msk [vmem:[%s6208_s28] sm:$0xf] %vm962_vm6, %v4162_v51 }
0x2cae PF: > { %s22_s30 = sadd.s32 1, %s5518_s30  }
0x2caf   : > { %p19_p3 = scmp.ge.s32.totalorder %s22_s30, 4  }
0x2cb1   :  { %21 = sbr.rel (!%p19_p3) target bundleno = 3 (0x3), region = 103 }
0x2cb8   :  { %4187 = vsyncpa [#allocation6], 1 }
0x2cb9   :  { %4189 = vsyncpa [#allocation6 + $0x1], 1 }
0x2cba   :  { %4190 = vsyncpa [#allocation8], 1 }
0x2cbb   :  { %4191 = vsyncpa [#allocation11], 1 }

</bundles_post_ra>
